<compile_context>
chip_gen: v5e
topology: v5e:2x2
jax: 0.10.0
libtpu: 0.0.40
codegen_flags: <defaults>
</compile_context>

<pallas_src>
import functools
import math

import jax
import jax.numpy as jnp
from jax.experimental import pallas as pl
from jax.experimental.pallas import tpu as pltpu

K = 5        # conv kernel size
C2 = 32      # conv2 out channels 20 -> 32 (padded; keeps each pool half 128 lanes)
F1 = 64      # fc1 out features  50 -> 64
CO = 128     # fc2 out classes   10 -> 128 (lane-dense final store)
HALF1 = 128  # conv1 pool-W half width: 10 ch * 12 cols + 8 pad
HALF2 = 128  # conv2 pool-W half width:  4 cols * 32 padded ch


# ----------------------------------------------------------------------------
# Fused forward kernel (one batch tile of `tb` images per grid step)
# ----------------------------------------------------------------------------
def _fused_forward_kernel(x_ref, t1_ref, t2_ref, wf1_ref, wf2_ref,
                          b1_ref, b2_ref, bf1_ref, bf2_ref, out_ref, *, tb):
    """Layouts (rows = (spatial_row, image) with image minor):
      x_ref   : (4, 6, tb, 140)  conv1 LHS, split by output-row parity r,
                                 lanes = (row tap di, input col win)
      h1[s]   : (6*tb, 128)      pool1 rows p = 2u+s, lanes = c1*12 + q (120 real)
      zp      : (4*tb, 128)      pool2 rows (p2, n), lanes = q2*32 + c2 (20 real)
      out_ref : (tb, 128)
    """
    f32 = jnp.float32
    bf16 = jnp.bfloat16

    t1 = t1_ref[...]                                     # (140, 256) bf16
    b1 = b1_ref[...]                                     # (1, 128) f32

    # ---- conv1: one stacked-tap matmul per output-row parity ---------------
    def conv1_rows(r):
        lhs = x_ref[r].reshape(6 * tb, K * 28).astype(bf16)
        return jnp.dot(lhs, t1, preferred_element_type=f32)   # (6*tb, 256)

    # maxpool(2) + bias + relu (bias per channel => commutes with max-pool)
    h1 = []
    for s in range(2):                                   # parity of pooled row p
        yh = jnp.maximum(conv1_rows(2 * s), conv1_rows(2 * s + 1))      # pool H
        hp = jnp.maximum(yh[:, :HALF1], yh[:, HALF1:]) + b1             # pool W
        h1.append(jnp.maximum(hp, 0.0).astype(bf16))     # (6*tb, 128) bf16

    # ---- conv2 (+ Dropout2d == identity) + maxpool(2) + bias + relu --------
    # TODO(synk): training-mode Dropout2d / F.dropout not implemented (eval).
    def conv2_rows(a):
        acc = None
        for di in range(K):
            s, off = (a + di) % 2, (a + di) // 2
            lhs = h1[s][off * tb:(off + 4) * tb, :]      # (4*tb, 128) bf16
            term = jnp.dot(lhs, t2_ref[di], preferred_element_type=f32)
            acc = term if acc is None else acc + term
        return acc                                       # (4*tb, 256)

    zh = jnp.maximum(conv2_rows(0), conv2_rows(1))                      # pool H
    zp = jnp.maximum(zh[:, :HALF2], zh[:, HALF2:]) + b2_ref[...]        # pool W
    zp = jnp.maximum(zp, 0.0).astype(bf16)               # (4*tb, 128)

    # ---- fc1 + relu (contract over (p2, q2, c2) as 4 resident matmuls) -----
    hacc = None
    for p2 in range(4):
        term = jnp.dot(zp[p2 * tb:(p2 + 1) * tb, :], wf1_ref[p2],
                       preferred_element_type=f32)
        hacc = term if hacc is None else hacc + term
    h = jnp.maximum(hacc + bf1_ref[...], 0.0).astype(bf16)   # (tb, F1)

    # ---- (F.dropout == identity) + fc2; lane-dense (tb, 128) store ---------
    out = jnp.dot(h, wf2_ref[...], preferred_element_type=f32) + bf2_ref[...]
    out_ref[...] = out.astype(out_ref.dtype)


# ----------------------------------------------------------------------------
# One-time parameter packing (wrapper-side layout plumbing, plain XLA)
# ----------------------------------------------------------------------------
def _pack_conv1(w1):
    """conv1 (10,1,5,5) -> stacked banded-Toeplitz T1 of shape (140, 256).
    Rows = di*28 + win (kernel-row tap, absolute input col).
    Cols = half*128 + c1*12 + q  (pool-W half, channel c1<10, pooled col q<12);
    lanes 120..127 of each half are zero padding."""
    w = w1.astype(jnp.float32)[:, 0]                     # (10, 5, 5)
    win = jnp.arange(28)
    q = jnp.arange(12)
    t = jnp.zeros((K, 28, 2, 10, 12), jnp.float32)
    for di in range(K):
        for dj in range(K):
            for half in range(2):
                # output col j = 2q + half reads input col win = j + dj
                sel = (win[:, None] == (2 * q + half + dj)[None, :]).astype(jnp.float32)
                t = t.at[di, :, half].add(jnp.einsum('wq,c->wcq', sel, w[:, di, dj]))
    t = jnp.pad(t.reshape(K, 28, 2, 120), ((0, 0), (0, 0), (0, 0), (0, 8)))
    return t.reshape(K * 28, 2 * 128)


def _pack_conv2(w2):
    """conv2 (20,10,5,5) -> per-row-tap Toeplitz T2 of shape (5, 128, 256).
    Rows = c1*12 + qin (channel-major conv1-pool lanes, 120 real -> pad 128).
    Cols = half*128 + q2*32 + c2  (c2<20 real, zero-padded to 32)."""
    w = w2.astype(jnp.float32)                           # (20, 10, 5, 5)
    qin = jnp.arange(12)
    q2 = jnp.arange(4)
    t = jnp.zeros((K, 10, 12, 2, 4, C2), jnp.float32)
    for di in range(K):
        for dj in range(K):
            for half in range(2):
                sel = (qin[:, None] == (2 * q2 + half + dj)[None, :]).astype(jnp.float32)
                blk = jnp.einsum('iq,oc->ciqo', sel, w[:, :, di, dj])   # (10,12,4,20)
                t = t.at[di, :, :, half, :, :20].add(blk)
    t = jnp.pad(t.reshape(K, 120, 2 * 4 * C2), ((0, 0), (0, 8), (0, 0)))
    return t                                             # (5, 128, 256)


def pack_params(params):
    """Repack PyTorch-layout weights into the kernel's resident bf16 layout."""
    # fc1: permute columns once so the kernel's (p2, q2, channel) flatten order
    # matches PyTorch's NCHW x.view(-1, 20*4*4).
    fw1 = params["fc1_w"].reshape(50, 20, 4, 4)          # [f, c, p2, q2]
    fw1 = jnp.transpose(fw1, (2, 3, 1, 0))               # [p2, q2, c, f]
    wf1 = jnp.zeros((4, 4, C2, F1), jnp.float32).at[:, :, :20, :50].set(fw1)
    wf2 = jnp.zeros((F1, CO), jnp.float32).at[:50, :10].set(params["fc2_w"].T)

    b1 = jnp.zeros((128,), jnp.float32).at[:120].set(
        jnp.repeat(params["conv1_b"].astype(jnp.float32), 12))
    b2 = jnp.zeros((C2,), jnp.float32).at[:20].set(params["conv2_b"])

    return {
        "t1": _pack_conv1(params["conv1_w"]).astype(jnp.bfloat16),   # (140, 256)
        "t2": _pack_conv2(params["conv2_w"]).astype(jnp.bfloat16),   # (5, 128, 256)
        "wf1": wf1.reshape(4, 4 * C2, F1).astype(jnp.bfloat16),      # (4, 128, 64)
        "wf2": wf2.astype(jnp.bfloat16),                             # (64, 128)
        "b1": b1[None, :],                                           # (1, 128) f32
        "b2": jnp.tile(b2, 4)[None, :],                              # (1, 128) f32
        "bf1": jnp.zeros((F1,), jnp.float32).at[:50].set(params["fc1_b"])[None, :],
        "bf2": jnp.zeros((CO,), jnp.float32).at[:10].set(params["fc2_b"])[None, :],
    }


# ----------------------------------------------------------------------------
# Forward wrapper
# ----------------------------------------------------------------------------
def _pick_tb(n):
    """Batch tile: multiple of 16 (bf16 sublane pack), capped at 128, chosen so
    larger batches give >= 2 grid steps (v7x has 2 TensorCores)."""
    n16 = max(16, -(-n // 16) * 16)
    if n16 == 16:
        return 16
    return min(128, -(-(n16 // 2) // 16) * 16)


@jax.jit
def cnn_mnist_forward(x, packed):
    """x: (N, 1, 28, 28) float32 -> logits (N, 10). One fused Pallas kernel."""
    n = x.shape[0]
    tb = _pick_tb(n)
    n_pad = -(-n // tb) * tb

    # Wrapper-side layout plumbing on the tiny raw input: pre-concatenate the 5
    # shifted kernel-row views (stacked conv1 K), split by output-row parity,
    # image index minor so in-kernel row groups stay sublane-tile aligned.
    xs = jnp.pad(x.reshape(n, 28, 28).astype(jnp.float32),
                 ((0, n_pad - n), (0, 0), (0, 0)))
    rows = (jnp.arange(4)[:, None, None]
            + 4 * jnp.arange(6)[None, :, None]
            + jnp.arange(K)[None, None, :])              # r + 4k + di, all < 28
    xg = xs[:, rows, :]                                  # (Np, 4, 6, 5, 28)
    xc = jnp.transpose(xg, (1, 2, 0, 3, 4)).reshape(4, 6, n_pad, K * 28)

    def const_spec(a):
        return pl.BlockSpec(a.shape, lambda b, _nd=a.ndim: (0,) * _nd)

    out = pl.pallas_call(
        functools.partial(_fused_forward_kernel, tb=tb),
        out_shape=jax.ShapeDtypeStruct((n_pad, CO), jnp.float32),
        grid=(n_pad // tb,),
        in_specs=[
            pl.BlockSpec((4, 6, tb, K * 28), lambda b: (0, 0, b, 0)),
            const_spec(packed["t1"]),
            const_spec(packed["t2"]),
            const_spec(packed["wf1"]),
            const_spec(packed["wf2"]),
            const_spec(packed["b1"]),
            const_spec(packed["b2"]),
            const_spec(packed["bf1"]),
            const_spec(packed["bf2"]),
        ],
        out_specs=pl.BlockSpec((tb, CO), lambda b: (b, 0)),
        compiler_params=pltpu.CompilerParams(
            dimension_semantics=("parallel",),
            vmem_limit_bytes=48 * 1024 * 1024),
    )(xc, packed["t1"], packed["t2"], packed["wf1"], packed["wf2"],
      packed["b1"], packed["b2"], packed["bf1"], packed["bf2"])

    return out[:n, :10]


# ----------------------------------------------------------------------------
# Pure-JAX reference (eval-mode PyTorch semantics) and parameter init
# ----------------------------------------------------------------------------
def reference_forward(x, params):
    def conv(h, w, b):
        y = jax.lax.conv_general_dilated(
            h, w.astype(jnp.float32), (1, 1), "VALID",
            dimension_numbers=("NCHW", "OIHW", "NCHW"))
        return y + b[None, :, None, None]

    def pool2(h):
        return jax.lax.reduce_window(h, -jnp.inf, jax.lax.max,
                                     (1, 1, 2, 2), (1, 1, 2, 2), "VALID")

    h = jax.nn.relu(pool2(conv(x.astype(jnp.float32),
                               params["conv1_w"], params["conv1_b"])))
    h = jax.nn.relu(pool2(conv(h, params["conv2_w"], params["conv2_b"])))
    h = h.reshape(h.shape[0], -1)                        # NCHW flatten, like torch
    h = jax.nn.relu(h @ params["fc1_w"].T + params["fc1_b"])
    return h @ params["fc2_w"].T + params["fc2_b"]


def init_params(key):
    def uinit(k, shape, fan_in):
        bound = 1.0 / math.sqrt(fan_in)
        return jax.random.uniform(k, shape, jnp.float32, -bound, bound)

    ks = jax.random.split(key, 8)
    return {
        "conv1_w": uinit(ks[0], (10, 1, 5, 5), 25),
        "conv1_b": uinit(ks[1], (10,), 25),
        "conv2_w": uinit(ks[2], (20, 10, 5, 5), 250),
        "conv2_b": uinit(ks[3], (20,), 250),
        "fc1_w": uinit(ks[4], (50, 320), 320),
        "fc1_b": uinit(ks[5], (50,), 320),
        "fc2_w": uinit(ks[6], (10, 50), 50),
        "fc2_b": uinit(ks[7], (10,), 50),
    }


if __name__ == "__main__":
    key = jax.random.PRNGKey(0)
    pkey, xkey = jax.random.split(key)
    params = init_params(pkey)
    packed = pack_params(params)

    # MNIST-shaped input: fc1 expects 20*4*4 = 320, which forces 28x28 input.
    x = jax.random.normal(xkey, (2, 1, 28, 28), dtype=jnp.float32)

    out = jax.block_until_ready(cnn_mnist_forward(x, packed))
    assert out.shape == (2, 10), out.shape

    ref = jax.block_until_ready(reference_forward(x, params))
    err = float(jnp.max(jnp.abs(out - ref)))
    assert err < 6e-2, f"max abs err vs reference: {err}"
    print("KERNEL_OK")
</pallas_src>

<mosaic_0001>
module attributes {stable_mosaic.version = 11 : i64} {
  func.func @_fused_forward_kernel(%arg0: i32, %arg1: memref<4x6x16x140xf32, #tpu.memory_space<vmem>>, %arg2: memref<140x256xbf16, #tpu.memory_space<vmem>>, %arg3: memref<5x128x256xbf16, #tpu.memory_space<vmem>>, %arg4: memref<4x128x64xbf16, #tpu.memory_space<vmem>>, %arg5: memref<64x128xbf16, #tpu.memory_space<vmem>>, %arg6: memref<1x128xf32, #tpu.memory_space<vmem>>, %arg7: memref<1x128xf32, #tpu.memory_space<vmem>>, %arg8: memref<1x64xf32, #tpu.memory_space<vmem>>, %arg9: memref<1x128xf32, #tpu.memory_space<vmem>>, %arg10: memref<16x128xf32, #tpu.memory_space<vmem>>) attributes {dimension_semantics = [#tpu.dimension_semantics<parallel>], iteration_bounds = array<i64: 1>, scalar_prefetch = 0 : i64, scratch_operands = 0 : i64, tpu.core_type = #tpu.core_type<tc>, window_params = [{transform_indices = @transform_0, window_bounds = array<i64: 4, 6, 16, 140>}, {pipeline_mode = #tpu.pipeline_mode<synchronous>, transform_indices = @transform_1, window_bounds = array<i64: 140, 256>}, {pipeline_mode = #tpu.pipeline_mode<synchronous>, transform_indices = @transform_2, window_bounds = array<i64: 5, 128, 256>}, {pipeline_mode = #tpu.pipeline_mode<synchronous>, transform_indices = @transform_3, window_bounds = array<i64: 4, 128, 64>}, {pipeline_mode = #tpu.pipeline_mode<synchronous>, transform_indices = @transform_4, window_bounds = array<i64: 64, 128>}, {pipeline_mode = #tpu.pipeline_mode<synchronous>, transform_indices = @transform_5, window_bounds = array<i64: 1, 128>}, {pipeline_mode = #tpu.pipeline_mode<synchronous>, transform_indices = @transform_6, window_bounds = array<i64: 1, 128>}, {pipeline_mode = #tpu.pipeline_mode<synchronous>, transform_indices = @transform_7, window_bounds = array<i64: 1, 64>}, {pipeline_mode = #tpu.pipeline_mode<synchronous>, transform_indices = @transform_8, window_bounds = array<i64: 1, 128>}, {transform_indices = @transform_9, window_bounds = array<i64: 16, 128>}]} {
    %c0 = arith.constant 0 : index
    %c0_0 = arith.constant 0 : index
    %0 = vector.load %arg2[%c0, %c0_0] : memref<140x256xbf16, #tpu.memory_space<vmem>>, vector<140x256xbf16>
    %c0_1 = arith.constant 0 : index
    %c0_2 = arith.constant 0 : index
    %1 = vector.load %arg6[%c0_1, %c0_2] : memref<1x128xf32, #tpu.memory_space<vmem>>, vector<1x128xf32>
    %c0_3 = arith.constant 0 : index
    %c0_4 = arith.constant 0 : index
    %c0_5 = arith.constant 0 : index
    %c0_6 = arith.constant 0 : index
    %2 = vector.load %arg1[%c0_3, %c0_4, %c0_5, %c0_6] : memref<4x6x16x140xf32, #tpu.memory_space<vmem>>, vector<1x6x16x140xf32>
    %3 = vector.shape_cast %2 : vector<1x6x16x140xf32> to vector<6x16x140xf32>
    %4 = vector.shape_cast %3 : vector<6x16x140xf32> to vector<96x140xf32>
    %5 = arith.truncf %4 : vector<96x140xf32> to vector<96x140xbf16>
    %cst = arith.constant dense<0.000000e+00> : vector<96x256xf32>
    %6 = tpu.matmul %5, %0, %cst {dimension_numbers = #tpu.dot_dimension_numbers<[1], [0], [0], [1], [0, 0, 1, 1], [], []>} : vector<96x140xbf16>, vector<140x256xbf16>, vector<96x256xf32> -> vector<96x256xf32>
    %c1 = arith.constant 1 : index
    %c0_7 = arith.constant 0 : index
    %c0_8 = arith.constant 0 : index
    %c0_9 = arith.constant 0 : index
    %7 = vector.load %arg1[%c1, %c0_7, %c0_8, %c0_9] : memref<4x6x16x140xf32, #tpu.memory_space<vmem>>, vector<1x6x16x140xf32>
    %8 = vector.shape_cast %7 : vector<1x6x16x140xf32> to vector<6x16x140xf32>
    %9 = vector.shape_cast %8 : vector<6x16x140xf32> to vector<96x140xf32>
    %10 = arith.truncf %9 : vector<96x140xf32> to vector<96x140xbf16>
    %cst_10 = arith.constant dense<0.000000e+00> : vector<96x256xf32>
    %11 = tpu.matmul %10, %0, %cst_10 {dimension_numbers = #tpu.dot_dimension_numbers<[1], [0], [0], [1], [0, 0, 1, 1], [], []>} : vector<96x140xbf16>, vector<140x256xbf16>, vector<96x256xf32> -> vector<96x256xf32>
    %12 = arith.maximumf %6, %11 : vector<96x256xf32>
    %13 = vector.extract_strided_slice %12 {offsets = [0, 0], sizes = [96, 128], strides = [1, 1]} : vector<96x256xf32> to vector<96x128xf32>
    %14 = vector.extract_strided_slice %12 {offsets = [0, 128], sizes = [96, 128], strides = [1, 1]} : vector<96x256xf32> to vector<96x128xf32>
    %15 = arith.maximumf %13, %14 : vector<96x128xf32>
    %16 = vector.broadcast %1 : vector<1x128xf32> to vector<96x128xf32>
    %17 = arith.addf %15, %16 : vector<96x128xf32>
    %cst_11 = arith.constant 0.000000e+00 : f32
    %18 = vector.broadcast %cst_11 : f32 to vector<96x128xf32>
    %19 = arith.maximumf %17, %18 : vector<96x128xf32>
    %20 = arith.truncf %19 : vector<96x128xf32> to vector<96x128xbf16>
    %c2 = arith.constant 2 : index
    %c0_12 = arith.constant 0 : index
    %c0_13 = arith.constant 0 : index
    %c0_14 = arith.constant 0 : index
    %21 = vector.load %arg1[%c2, %c0_12, %c0_13, %c0_14] : memref<4x6x16x140xf32, #tpu.memory_space<vmem>>, vector<1x6x16x140xf32>
    %22 = vector.shape_cast %21 : vector<1x6x16x140xf32> to vector<6x16x140xf32>
    %23 = vector.shape_cast %22 : vector<6x16x140xf32> to vector<96x140xf32>
    %24 = arith.truncf %23 : vector<96x140xf32> to vector<96x140xbf16>
    %cst_15 = arith.constant dense<0.000000e+00> : vector<96x256xf32>
    %25 = tpu.matmul %24, %0, %cst_15 {dimension_numbers = #tpu.dot_dimension_numbers<[1], [0], [0], [1], [0, 0, 1, 1], [], []>} : vector<96x140xbf16>, vector<140x256xbf16>, vector<96x256xf32> -> vector<96x256xf32>
    %c3 = arith.constant 3 : index
    %c0_16 = arith.constant 0 : index
    %c0_17 = arith.constant 0 : index
    %c0_18 = arith.constant 0 : index
    %26 = vector.load %arg1[%c3, %c0_16, %c0_17, %c0_18] : memref<4x6x16x140xf32, #tpu.memory_space<vmem>>, vector<1x6x16x140xf32>
    %27 = vector.shape_cast %26 : vector<1x6x16x140xf32> to vector<6x16x140xf32>
    %28 = vector.shape_cast %27 : vector<6x16x140xf32> to vector<96x140xf32>
    %29 = arith.truncf %28 : vector<96x140xf32> to vector<96x140xbf16>
    %cst_19 = arith.constant dense<0.000000e+00> : vector<96x256xf32>
    %30 = tpu.matmul %29, %0, %cst_19 {dimension_numbers = #tpu.dot_dimension_numbers<[1], [0], [0], [1], [0, 0, 1, 1], [], []>} : vector<96x140xbf16>, vector<140x256xbf16>, vector<96x256xf32> -> vector<96x256xf32>
    %31 = arith.maximumf %25, %30 : vector<96x256xf32>
    %32 = vector.extract_strided_slice %31 {offsets = [0, 0], sizes = [96, 128], strides = [1, 1]} : vector<96x256xf32> to vector<96x128xf32>
    %33 = vector.extract_strided_slice %31 {offsets = [0, 128], sizes = [96, 128], strides = [1, 1]} : vector<96x256xf32> to vector<96x128xf32>
    %34 = arith.maximumf %32, %33 : vector<96x128xf32>
    %35 = vector.broadcast %1 : vector<1x128xf32> to vector<96x128xf32>
    %36 = arith.addf %34, %35 : vector<96x128xf32>
    %cst_20 = arith.constant 0.000000e+00 : f32
    %37 = vector.broadcast %cst_20 : f32 to vector<96x128xf32>
    %38 = arith.maximumf %36, %37 : vector<96x128xf32>
    %39 = arith.truncf %38 : vector<96x128xf32> to vector<96x128xbf16>
    %40 = vector.extract_strided_slice %20 {offsets = [0, 0], sizes = [64, 128], strides = [1, 1]} : vector<96x128xbf16> to vector<64x128xbf16>
    %c0_21 = arith.constant 0 : index
    %c0_22 = arith.constant 0 : index
    %c0_23 = arith.constant 0 : index
    %41 = vector.load %arg3[%c0_21, %c0_22, %c0_23] : memref<5x128x256xbf16, #tpu.memory_space<vmem>>, vector<1x128x256xbf16>
    %42 = vector.shape_cast %41 : vector<1x128x256xbf16> to vector<128x256xbf16>
    %cst_24 = arith.constant dense<0.000000e+00> : vector<64x256xf32>
    %43 = tpu.matmul %40, %42, %cst_24 {dimension_numbers = #tpu.dot_dimension_numbers<[1], [0], [0], [1], [0, 0, 1, 1], [], []>} : vector<64x128xbf16>, vector<128x256xbf16>, vector<64x256xf32> -> vector<64x256xf32>
    %44 = vector.extract_strided_slice %39 {offsets = [0, 0], sizes = [64, 128], strides = [1, 1]} : vector<96x128xbf16> to vector<64x128xbf16>
    %c1_25 = arith.constant 1 : index
    %c0_26 = arith.constant 0 : index
    %c0_27 = arith.constant 0 : index
    %45 = vector.load %arg3[%c1_25, %c0_26, %c0_27] : memref<5x128x256xbf16, #tpu.memory_space<vmem>>, vector<1x128x256xbf16>
    %46 = vector.shape_cast %45 : vector<1x128x256xbf16> to vector<128x256xbf16>
    %cst_28 = arith.constant dense<0.000000e+00> : vector<64x256xf32>
    %47 = tpu.matmul %44, %46, %cst_28 {dimension_numbers = #tpu.dot_dimension_numbers<[1], [0], [0], [1], [0, 0, 1, 1], [], []>} : vector<64x128xbf16>, vector<128x256xbf16>, vector<64x256xf32> -> vector<64x256xf32>
    %48 = arith.addf %43, %47 : vector<64x256xf32>
    %49 = vector.extract_strided_slice %20 {offsets = [16, 0], sizes = [64, 128], strides = [1, 1]} : vector<96x128xbf16> to vector<64x128xbf16>
    %c2_29 = arith.constant 2 : index
    %c0_30 = arith.constant 0 : index
    %c0_31 = arith.constant 0 : index
    %50 = vector.load %arg3[%c2_29, %c0_30, %c0_31] : memref<5x128x256xbf16, #tpu.memory_space<vmem>>, vector<1x128x256xbf16>
    %51 = vector.shape_cast %50 : vector<1x128x256xbf16> to vector<128x256xbf16>
    %cst_32 = arith.constant dense<0.000000e+00> : vector<64x256xf32>
    %52 = tpu.matmul %49, %51, %cst_32 {dimension_numbers = #tpu.dot_dimension_numbers<[1], [0], [0], [1], [0, 0, 1, 1], [], []>} : vector<64x128xbf16>, vector<128x256xbf16>, vector<64x256xf32> -> vector<64x256xf32>
    %53 = arith.addf %48, %52 : vector<64x256xf32>
    %54 = vector.extract_strided_slice %39 {offsets = [16, 0], sizes = [64, 128], strides = [1, 1]} : vector<96x128xbf16> to vector<64x128xbf16>
    %c3_33 = arith.constant 3 : index
    %c0_34 = arith.constant 0 : index
    %c0_35 = arith.constant 0 : index
    %55 = vector.load %arg3[%c3_33, %c0_34, %c0_35] : memref<5x128x256xbf16, #tpu.memory_space<vmem>>, vector<1x128x256xbf16>
    %56 = vector.shape_cast %55 : vector<1x128x256xbf16> to vector<128x256xbf16>
    %cst_36 = arith.constant dense<0.000000e+00> : vector<64x256xf32>
    %57 = tpu.matmul %54, %56, %cst_36 {dimension_numbers = #tpu.dot_dimension_numbers<[1], [0], [0], [1], [0, 0, 1, 1], [], []>} : vector<64x128xbf16>, vector<128x256xbf16>, vector<64x256xf32> -> vector<64x256xf32>
    %58 = arith.addf %53, %57 : vector<64x256xf32>
    %59 = vector.extract_strided_slice %20 {offsets = [32, 0], sizes = [64, 128], strides = [1, 1]} : vector<96x128xbf16> to vector<64x128xbf16>
    %c4 = arith.constant 4 : index
    %c0_37 = arith.constant 0 : index
    %c0_38 = arith.constant 0 : index
    %60 = vector.load %arg3[%c4, %c0_37, %c0_38] : memref<5x128x256xbf16, #tpu.memory_space<vmem>>, vector<1x128x256xbf16>
    %61 = vector.shape_cast %60 : vector<1x128x256xbf16> to vector<128x256xbf16>
    %cst_39 = arith.constant dense<0.000000e+00> : vector<64x256xf32>
    %62 = tpu.matmul %59, %61, %cst_39 {dimension_numbers = #tpu.dot_dimension_numbers<[1], [0], [0], [1], [0, 0, 1, 1], [], []>} : vector<64x128xbf16>, vector<128x256xbf16>, vector<64x256xf32> -> vector<64x256xf32>
    %63 = arith.addf %58, %62 : vector<64x256xf32>
    %64 = vector.extract_strided_slice %39 {offsets = [0, 0], sizes = [64, 128], strides = [1, 1]} : vector<96x128xbf16> to vector<64x128xbf16>
    %c0_40 = arith.constant 0 : index
    %c0_41 = arith.constant 0 : index
    %c0_42 = arith.constant 0 : index
    %65 = vector.load %arg3[%c0_40, %c0_41, %c0_42] : memref<5x128x256xbf16, #tpu.memory_space<vmem>>, vector<1x128x256xbf16>
    %66 = vector.shape_cast %65 : vector<1x128x256xbf16> to vector<128x256xbf16>
    %cst_43 = arith.constant dense<0.000000e+00> : vector<64x256xf32>
    %67 = tpu.matmul %64, %66, %cst_43 {dimension_numbers = #tpu.dot_dimension_numbers<[1], [0], [0], [1], [0, 0, 1, 1], [], []>} : vector<64x128xbf16>, vector<128x256xbf16>, vector<64x256xf32> -> vector<64x256xf32>
    %68 = vector.extract_strided_slice %20 {offsets = [16, 0], sizes = [64, 128], strides = [1, 1]} : vector<96x128xbf16> to vector<64x128xbf16>
    %c1_44 = arith.constant 1 : index
    %c0_45 = arith.constant 0 : index
    %c0_46 = arith.constant 0 : index
    %69 = vector.load %arg3[%c1_44, %c0_45, %c0_46] : memref<5x128x256xbf16, #tpu.memory_space<vmem>>, vector<1x128x256xbf16>
    %70 = vector.shape_cast %69 : vector<1x128x256xbf16> to vector<128x256xbf16>
    %cst_47 = arith.constant dense<0.000000e+00> : vector<64x256xf32>
    %71 = tpu.matmul %68, %70, %cst_47 {dimension_numbers = #tpu.dot_dimension_numbers<[1], [0], [0], [1], [0, 0, 1, 1], [], []>} : vector<64x128xbf16>, vector<128x256xbf16>, vector<64x256xf32> -> vector<64x256xf32>
    %72 = arith.addf %67, %71 : vector<64x256xf32>
    %73 = vector.extract_strided_slice %39 {offsets = [16, 0], sizes = [64, 128], strides = [1, 1]} : vector<96x128xbf16> to vector<64x128xbf16>
    %c2_48 = arith.constant 2 : index
    %c0_49 = arith.constant 0 : index
    %c0_50 = arith.constant 0 : index
    %74 = vector.load %arg3[%c2_48, %c0_49, %c0_50] : memref<5x128x256xbf16, #tpu.memory_space<vmem>>, vector<1x128x256xbf16>
    %75 = vector.shape_cast %74 : vector<1x128x256xbf16> to vector<128x256xbf16>
    %cst_51 = arith.constant dense<0.000000e+00> : vector<64x256xf32>
    %76 = tpu.matmul %73, %75, %cst_51 {dimension_numbers = #tpu.dot_dimension_numbers<[1], [0], [0], [1], [0, 0, 1, 1], [], []>} : vector<64x128xbf16>, vector<128x256xbf16>, vector<64x256xf32> -> vector<64x256xf32>
    %77 = arith.addf %72, %76 : vector<64x256xf32>
    %78 = vector.extract_strided_slice %20 {offsets = [32, 0], sizes = [64, 128], strides = [1, 1]} : vector<96x128xbf16> to vector<64x128xbf16>
    %c3_52 = arith.constant 3 : index
    %c0_53 = arith.constant 0 : index
    %c0_54 = arith.constant 0 : index
    %79 = vector.load %arg3[%c3_52, %c0_53, %c0_54] : memref<5x128x256xbf16, #tpu.memory_space<vmem>>, vector<1x128x256xbf16>
    %80 = vector.shape_cast %79 : vector<1x128x256xbf16> to vector<128x256xbf16>
    %cst_55 = arith.constant dense<0.000000e+00> : vector<64x256xf32>
    %81 = tpu.matmul %78, %80, %cst_55 {dimension_numbers = #tpu.dot_dimension_numbers<[1], [0], [0], [1], [0, 0, 1, 1], [], []>} : vector<64x128xbf16>, vector<128x256xbf16>, vector<64x256xf32> -> vector<64x256xf32>
    %82 = arith.addf %77, %81 : vector<64x256xf32>
    %83 = vector.extract_strided_slice %39 {offsets = [32, 0], sizes = [64, 128], strides = [1, 1]} : vector<96x128xbf16> to vector<64x128xbf16>
    %c4_56 = arith.constant 4 : index
    %c0_57 = arith.constant 0 : index
    %c0_58 = arith.constant 0 : index
    %84 = vector.load %arg3[%c4_56, %c0_57, %c0_58] : memref<5x128x256xbf16, #tpu.memory_space<vmem>>, vector<1x128x256xbf16>
    %85 = vector.shape_cast %84 : vector<1x128x256xbf16> to vector<128x256xbf16>
    %cst_59 = arith.constant dense<0.000000e+00> : vector<64x256xf32>
    %86 = tpu.matmul %83, %85, %cst_59 {dimension_numbers = #tpu.dot_dimension_numbers<[1], [0], [0], [1], [0, 0, 1, 1], [], []>} : vector<64x128xbf16>, vector<128x256xbf16>, vector<64x256xf32> -> vector<64x256xf32>
    %87 = arith.addf %82, %86 : vector<64x256xf32>
    %88 = arith.maximumf %63, %87 : vector<64x256xf32>
    %89 = vector.extract_strided_slice %88 {offsets = [0, 0], sizes = [64, 128], strides = [1, 1]} : vector<64x256xf32> to vector<64x128xf32>
    %90 = vector.extract_strided_slice %88 {offsets = [0, 128], sizes = [64, 128], strides = [1, 1]} : vector<64x256xf32> to vector<64x128xf32>
    %91 = arith.maximumf %89, %90 : vector<64x128xf32>
    %c0_60 = arith.constant 0 : index
    %c0_61 = arith.constant 0 : index
    %92 = vector.load %arg7[%c0_60, %c0_61] : memref<1x128xf32, #tpu.memory_space<vmem>>, vector<1x128xf32>
    %93 = vector.broadcast %92 : vector<1x128xf32> to vector<64x128xf32>
    %94 = arith.addf %91, %93 : vector<64x128xf32>
    %cst_62 = arith.constant 0.000000e+00 : f32
    %95 = vector.broadcast %cst_62 : f32 to vector<64x128xf32>
    %96 = arith.maximumf %94, %95 : vector<64x128xf32>
    %97 = arith.truncf %96 : vector<64x128xf32> to vector<64x128xbf16>
    %98 = vector.extract_strided_slice %97 {offsets = [0, 0], sizes = [16, 128], strides = [1, 1]} : vector<64x128xbf16> to vector<16x128xbf16>
    %c0_63 = arith.constant 0 : index
    %c0_64 = arith.constant 0 : index
    %c0_65 = arith.constant 0 : index
    %99 = vector.load %arg4[%c0_63, %c0_64, %c0_65] : memref<4x128x64xbf16, #tpu.memory_space<vmem>>, vector<1x128x64xbf16>
    %100 = vector.shape_cast %99 : vector<1x128x64xbf16> to vector<128x64xbf16>
    %cst_66 = arith.constant dense<0.000000e+00> : vector<16x64xf32>
    %101 = tpu.matmul %98, %100, %cst_66 {dimension_numbers = #tpu.dot_dimension_numbers<[1], [0], [0], [1], [0, 0, 1, 1], [], []>} : vector<16x128xbf16>, vector<128x64xbf16>, vector<16x64xf32> -> vector<16x64xf32>
    %102 = vector.extract_strided_slice %97 {offsets = [16, 0], sizes = [16, 128], strides = [1, 1]} : vector<64x128xbf16> to vector<16x128xbf16>
    %c1_67 = arith.constant 1 : index
    %c0_68 = arith.constant 0 : index
    %c0_69 = arith.constant 0 : index
    %103 = vector.load %arg4[%c1_67, %c0_68, %c0_69] : memref<4x128x64xbf16, #tpu.memory_space<vmem>>, vector<1x128x64xbf16>
    %104 = vector.shape_cast %103 : vector<1x128x64xbf16> to vector<128x64xbf16>
    %cst_70 = arith.constant dense<0.000000e+00> : vector<16x64xf32>
    %105 = tpu.matmul %102, %104, %cst_70 {dimension_numbers = #tpu.dot_dimension_numbers<[1], [0], [0], [1], [0, 0, 1, 1], [], []>} : vector<16x128xbf16>, vector<128x64xbf16>, vector<16x64xf32> -> vector<16x64xf32>
    %106 = arith.addf %101, %105 : vector<16x64xf32>
    %107 = vector.extract_strided_slice %97 {offsets = [32, 0], sizes = [16, 128], strides = [1, 1]} : vector<64x128xbf16> to vector<16x128xbf16>
    %c2_71 = arith.constant 2 : index
    %c0_72 = arith.constant 0 : index
    %c0_73 = arith.constant 0 : index
    %108 = vector.load %arg4[%c2_71, %c0_72, %c0_73] : memref<4x128x64xbf16, #tpu.memory_space<vmem>>, vector<1x128x64xbf16>
    %109 = vector.shape_cast %108 : vector<1x128x64xbf16> to vector<128x64xbf16>
    %cst_74 = arith.constant dense<0.000000e+00> : vector<16x64xf32>
    %110 = tpu.matmul %107, %109, %cst_74 {dimension_numbers = #tpu.dot_dimension_numbers<[1], [0], [0], [1], [0, 0, 1, 1], [], []>} : vector<16x128xbf16>, vector<128x64xbf16>, vector<16x64xf32> -> vector<16x64xf32>
    %111 = arith.addf %106, %110 : vector<16x64xf32>
    %112 = vector.extract_strided_slice %97 {offsets = [48, 0], sizes = [16, 128], strides = [1, 1]} : vector<64x128xbf16> to vector<16x128xbf16>
    %c3_75 = arith.constant 3 : index
    %c0_76 = arith.constant 0 : index
    %c0_77 = arith.constant 0 : index
    %113 = vector.load %arg4[%c3_75, %c0_76, %c0_77] : memref<4x128x64xbf16, #tpu.memory_space<vmem>>, vector<1x128x64xbf16>
    %114 = vector.shape_cast %113 : vector<1x128x64xbf16> to vector<128x64xbf16>
    %cst_78 = arith.constant dense<0.000000e+00> : vector<16x64xf32>
    %115 = tpu.matmul %112, %114, %cst_78 {dimension_numbers = #tpu.dot_dimension_numbers<[1], [0], [0], [1], [0, 0, 1, 1], [], []>} : vector<16x128xbf16>, vector<128x64xbf16>, vector<16x64xf32> -> vector<16x64xf32>
    %116 = arith.addf %111, %115 : vector<16x64xf32>
    %c0_79 = arith.constant 0 : index
    %c0_80 = arith.constant 0 : index
    %117 = vector.load %arg8[%c0_79, %c0_80] : memref<1x64xf32, #tpu.memory_space<vmem>>, vector<1x64xf32>
    %118 = vector.broadcast %117 : vector<1x64xf32> to vector<16x64xf32>
    %119 = arith.addf %116, %118 : vector<16x64xf32>
    %cst_81 = arith.constant 0.000000e+00 : f32
    %120 = vector.broadcast %cst_81 : f32 to vector<16x64xf32>
    %121 = arith.maximumf %119, %120 : vector<16x64xf32>
    %122 = arith.truncf %121 : vector<16x64xf32> to vector<16x64xbf16>
    %c0_82 = arith.constant 0 : index
    %c0_83 = arith.constant 0 : index
    %123 = vector.load %arg5[%c0_82, %c0_83] : memref<64x128xbf16, #tpu.memory_space<vmem>>, vector<64x128xbf16>
    %cst_84 = arith.constant dense<0.000000e+00> : vector<16x128xf32>
    %124 = tpu.matmul %122, %123, %cst_84 {dimension_numbers = #tpu.dot_dimension_numbers<[1], [0], [0], [1], [0, 0, 1, 1], [], []>} : vector<16x64xbf16>, vector<64x128xbf16>, vector<16x128xf32> -> vector<16x128xf32>
    %c0_85 = arith.constant 0 : index
    %c0_86 = arith.constant 0 : index
    %125 = vector.load %arg9[%c0_85, %c0_86] : memref<1x128xf32, #tpu.memory_space<vmem>>, vector<1x128xf32>
    %126 = vector.broadcast %125 : vector<1x128xf32> to vector<16x128xf32>
    %127 = arith.addf %124, %126 : vector<16x128xf32>
    %c0_87 = arith.constant 0 : index
    %c0_88 = arith.constant 0 : index
    %128 = vector.load %arg10[%c0_87, %c0_88] : memref<16x128xf32, #tpu.memory_space<vmem>>, vector<16x128xf32>
    tpu.vector_store %arg10[%c0_87, %c0_88], %127 {strides = array<i32>} : memref<16x128xf32, #tpu.memory_space<vmem>>, vector<16x128xf32>,
    return
  }
  func.func @transform_0(%arg0: i32) -> (i32, i32, i32, i32) {
    %c0_i32 = arith.constant 0 : i32
    %c0_i32_0 = arith.constant 0 : i32
    %c0_i32_1 = arith.constant 0 : i32
    %c0_i32_2 = arith.constant 0 : i32
    return %c0_i32, %c0_i32_0, %arg0, %c0_i32_1 : i32, i32, i32, i32
  }
  func.func @transform_1(%arg0: i32) -> (i32, i32) {
    %c0_i32 = arith.constant 0 : i32
    %c0_i32_0 = arith.constant 0 : i32
    %c0_i32_1 = arith.constant 0 : i32
    return %c0_i32, %c0_i32_0 : i32, i32
  }
  func.func @transform_2(%arg0: i32) -> (i32, i32, i32) {
    %c0_i32 = arith.constant 0 : i32
    %c0_i32_0 = arith.constant 0 : i32
    %c0_i32_1 = arith.constant 0 : i32
    %c0_i32_2 = arith.constant 0 : i32
    return %c0_i32, %c0_i32_0, %c0_i32_1 : i32, i32, i32
  }
  func.func @transform_3(%arg0: i32) -> (i32, i32, i32) {
    %c0_i32 = arith.constant 0 : i32
    %c0_i32_0 = arith.constant 0 : i32
    %c0_i32_1 = arith.constant 0 : i32
    %c0_i32_2 = arith.constant 0 : i32
    return %c0_i32, %c0_i32_0, %c0_i32_1 : i32, i32, i32
  }
  func.func @transform_4(%arg0: i32) -> (i32, i32) {
    %c0_i32 = arith.constant 0 : i32
    %c0_i32_0 = arith.constant 0 : i32
    %c0_i32_1 = arith.constant 0 : i32
    return %c0_i32, %c0_i32_0 : i32, i32
  }
  func.func @transform_5(%arg0: i32) -> (i32, i32) {
    %c0_i32 = arith.constant 0 : i32
    %c0_i32_0 = arith.constant 0 : i32
    %c0_i32_1 = arith.constant 0 : i32
    return %c0_i32, %c0_i32_0 : i32, i32
  }
  func.func @transform_6(%arg0: i32) -> (i32, i32) {
    %c0_i32 = arith.constant 0 : i32
    %c0_i32_0 = arith.constant 0 : i32
    %c0_i32_1 = arith.constant 0 : i32
    return %c0_i32, %c0_i32_0 : i32, i32
  }
  func.func @transform_7(%arg0: i32) -> (i32, i32) {
    %c0_i32 = arith.constant 0 : i32
    %c0_i32_0 = arith.constant 0 : i32
    %c0_i32_1 = arith.constant 0 : i32
    return %c0_i32, %c0_i32_0 : i32, i32
  }
  func.func @transform_8(%arg0: i32) -> (i32, i32) {
    %c0_i32 = arith.constant 0 : i32
    %c0_i32_0 = arith.constant 0 : i32
    %c0_i32_1 = arith.constant 0 : i32
    return %c0_i32, %c0_i32_0 : i32, i32
  }
  func.func @transform_9(%arg0: i32) -> (i32, i32) {
    %c0_i32 = arith.constant 0 : i32
    %c0_i32_0 = arith.constant 0 : i32
    return %arg0, %c0_i32 : i32, i32
  }
}

</mosaic_0001>

<bundles_post_ra>
// kernel: cnn_mnist_forward.1
= control target key start
LH: loop header
LB: loop body
LE: loop exit
PB: predicated region body
PF: predicated region fallthrough
CT: control target
= control target key end

     0   :  { %vm195_vm0 = vcmask 1045504   ;;  %vm176_vm1 = vcmask 97280   ;;  %vm2810_vm2 = vcmask 523264   ;;  %s6026_s1 = inlined_call_operand.vmem [shape: bf16[140,256], index: 1, kind: input, shape index: {}]   ;;  %s6027_s0 = inlined_call_operand.vmem [shape: f32[4,6,16,140], index: 0, kind: input, shape index: {}]   ;;  %s6028_s5 = inlined_call_operand.vmem [shape: f32[1,128], index: 5, kind: input, shape index: {}]   ;;  %s6029_s2 = inlined_call_operand.vmem [shape: bf16[5,128,256], index: 2, kind: input, shape index: {}]   ;;  %s6030_s6 = inlined_call_operand.vmem [shape: f32[1,128], index: 6, kind: input, shape index: {}]   ;;  %s6031_s3 = inlined_call_operand.vmem [shape: bf16[4,128,64], index: 3, kind: input, shape index: {}]   ;;  %s6032_s7 = inlined_call_operand.vmem [shape: f32[1,64], index: 7, kind: input, shape index: {}]   ;;  %s6033_s8 = inlined_call_operand.vmem [shape: f32[1,128], index: 8, kind: input, shape index: {}]   ;;  %s6034_s4 = inlined_call_operand.vmem [shape: bf16[64,128], index: 4, kind: input, shape index: {}]   ;;  %s6035_s9 = inlined_call_operand.vmem [shape: f32[16,128], index: 9, kind: output, shape index: {}]  }
   0x1   :  { %v2892_v0 = vld [vmem:[%s6026_s1 + $0x70] sm:$0xf]  ;;  %v3618_v1 = vld [vmem:[%s6026_s1 + $0x74] sm:$0xf0]  ;;  %v3617_v2 = vld [vmem:[%s6026_s1 + $0x74] sm:$0xf] }
   0x2   :  { %v3801_v3 = vor.u32 %v3618_v1, %v2892_v0  ;;  %v2894_v4 = vld [vmem:[%s6026_s1 + $0x78] sm:$0xf0]  ;;  %v3619_v5 = vld [vmem:[%s6026_s1 + $0x84] sm:$0xf]  ;;  %v2902_v6 = vld [vmem:[%s6026_s1 + $0x88] sm:$0x30] }
   0x3   :  { %v3812_v7 = vor.u32 %v3617_v2, %v2894_v4  ;;  %v2905_v8 = vor.u32 %v3619_v5, %v2902_v6  ;;  %v2884_v9 = vld [vmem:[%s6026_s1 + $0x60] sm:$0xf]  ;;  %v3616_v10 = vld [vmem:[%s6026_s1 + $0x64] sm:$0xf0]  ;;  %v3615_v11 = vld [vmem:[%s6026_s1 + $0x64] sm:$0xf] }
   0x4   :  { %202 = vmatpush.bf16.msra.mxu0 %v3801_v3  ;;  %v3824_v12 = vor.u32 %v3616_v10, %v2884_v9  ;;  %v2886_v13 = vld [vmem:[%s6026_s1 + $0x68] sm:$0xf0]  ;;  %v55_v15 = vld [vmem:[%s6027_s0 + $0x18] sm:$0xff]  ;;  %v2900_v19 = vld [vmem:[%s6026_s1 + $0x80] sm:$0xf] }
   0x5   :  { %v53_v14 = vld [vmem:[%s6027_s0 + $0x8] sm:$0xff]  ;;  %280 = vmatpush.bf16.msra.mxu2 %v3812_v7  ;;  %v3837_v16 = vsel %vm195_vm0, %v2905_v8, 0  ;;  %v3839_v17 = vor.u32 %v3615_v11, %v2886_v13  ;;  %v2876_v22 = vld [vmem:[%s6026_s1 + $0x50] sm:$0xf]  ;;  %v3614_v23 = vld [vmem:[%s6026_s1 + $0x54] sm:$0xf0] }
   0x6   :  { %v77_v18 = vpack.c.bf16 %v55_v15, %v53_v14  ;;  %v3620_v20 = vld [vmem:[%s6026_s1 + $0x84] sm:$0x30]  ;;  %326 = vmatpush.bf16.msra.mxu3 %v3837_v16  ;;  %v3613_v24 = vld [vmem:[%s6026_s1 + $0x54] sm:$0xf]  ;;  %v2878_v25 = vld [vmem:[%s6026_s1 + $0x58] sm:$0xf0]  ;;  %v3864_v27 = vor.u32 %v3614_v23, %v2876_v22 }
   0x7   :  { %v2901_v21 = vor.u32 %v3620_v20, %v2900_v19  ;;  %v3868_v28 = vor.u32 %v3613_v24, %v2878_v25  ;;  %v2868_v29 = vld [vmem:[%s6026_s1 + $0x40] sm:$0xf]  ;;  %v3612_v30 = vld [vmem:[%s6026_s1 + $0x44] sm:$0xf0]  ;;  %v3611_v31 = vld [vmem:[%s6026_s1 + $0x44] sm:$0xf] }
   0x8   :  { %203 = vmatpush.bf16.msra.mxu0 %v3824_v12  ;;  %v2870_v32 = vld [vmem:[%s6026_s1 + $0x48] sm:$0xf0]  ;;  %v3887_v33 = vor.u32 %v3612_v30, %v2868_v29  ;;  %v2860_v35 = vld [vmem:[%s6026_s1 + $0x30] sm:$0xf]  ;;  %v3610_v36 = vld [vmem:[%s6026_s1 + $0x34] sm:$0xf0] }
   0x9   :  { %v3862_v26 = vsel %vm195_vm0, %v2901_v21, 0  ;;  %281 = vmatpush.bf16.msra.mxu2 %v3839_v17  ;;  %2912 = vmatmul.msk.bf16.vlgmr.msra.gmra.mxu3 %vm176_vm1, %v77_v18  ;;  %v3891_v34 = vor.u32 %v3611_v31, %v2870_v32  ;;  %v3609_v37 = vld [vmem:[%s6026_s1 + $0x34] sm:$0xf]  ;;  %v2862_v38 = vld [vmem:[%s6026_s1 + $0x38] sm:$0xf0]  ;;  %v3907_v39 = vor.u32 %v3610_v36, %v2860_v35  ;;  %v57_v43 = vld [vmem:[%s6027_s0 + $0x28] sm:$0xff] }
   0xa   :  { %248 = vmatpush.bf16.msra.mxu1 %v3862_v26  ;;  %459 = vmatpush.bf16.msrb.mxu3 %v3862_v26  ;;  %v3910_v40 = vor.u32 %v3609_v37, %v2862_v38  ;;  %v2852_v41 = vld [vmem:[%s6026_s1 + $0x20] sm:$0xf]  ;;  %v3608_v42 = vld [vmem:[%s6026_s1 + $0x24] sm:$0xf0]  ;;  %v3607_v44 = vld [vmem:[%s6026_s1 + $0x24] sm:$0xf] }
   0xb   :  { %v2854_v45 = vld [vmem:[%s6026_s1 + $0x28] sm:$0xf0]  ;;  %v59_v46 = vld [vmem:[%s6027_s0 + $0x38] sm:$0xff]  ;;  %v3932_v47 = vor.u32 %v3608_v42, %v2852_v41  ;;  %v2844_v50 = vld [vmem:[%s6026_s1 + $0x10] sm:$0xf] }
   0xc   :  { %204 = vmatpush.bf16.msra.mxu0 %v3864_v27  ;;  %v3935_v48 = vor.u32 %v3607_v44, %v2854_v45  ;;  %v79_v49 = vpack.c.bf16 %v59_v46, %v57_v43  ;;  %v3606_v51 = vld [vmem:[%s6026_s1 + $0x14] sm:$0xf0]  ;;  %v3605_v52 = vld [vmem:[%s6026_s1 + $0x14] sm:$0xf]  ;;  %v2846_v53 = vld [vmem:[%s6026_s1 + $0x18] sm:$0xf0] }
   0xd   :  { %282 = vmatpush.bf16.msra.mxu2 %v3868_v28  ;;  %2906 = vmatmul.msk.bf16.vlgmr.msra.gmra.mxu1 %vm176_vm1, %v77_v18  ;;  %v3951_v54 = vor.u32 %v3606_v51, %v2844_v50  ;;  %v3955_v55 = vor.u32 %v3605_v52, %v2846_v53  ;;  %v2836_v56 = vld [vmem:[%s6026_s1] sm:$0xf]  ;;  %v3604_v57 = vld [vmem:[%s6026_s1 + $0x4] sm:$0xf0]  ;;  %v3603_v58 = vld [vmem:[%s6026_s1 + $0x4] sm:$0xf] }
   0xe   :  { %413 = vmatpush.bf16.msrb.mxu1 %v3801_v3  ;;  %745 = vmatpush.bf16.msra.mxu3 %v3862_v26  ;;  %v2838_v59 = vld [vmem:[%s6026_s1 + $0x8] sm:$0xf0]  ;;  %v3971_v60 = vor.u32 %v3604_v57, %v2836_v56  ;;  %v52_v61 = vld [vmem:[%s6027_s0] sm:$0xff]  ;;  %v54_v62 = vld [vmem:[%s6027_s0 + $0x10] sm:$0xff] }
   0xf   :  { %v3981_v63 = vor.u32 %v3603_v58, %v2838_v59  ;;  %v76_v0 = vpack.c.bf16 %v54_v62, %v52_v61  ;;  %v61_v1 = vld [vmem:[%s6027_s0 + $0x48] sm:$0xff]  ;;  %v63_v2 = vld [vmem:[%s6027_s0 + $0x58] sm:$0xff]  ;;  %v56_v5 = vld [vmem:[%s6027_s0 + $0x20] sm:$0xff] }
  0x10   :  { %205 = vmatpush.bf16.msra.mxu0 %v3887_v33  ;;  %v81_v4 = vpack.c.bf16 %v63_v2, %v61_v1  ;;  %v58_v6 = vld [vmem:[%s6027_s0 + $0x30] sm:$0xff]  ;;  %v65_v9 = vld [vmem:[%s6027_s0 + $0x68] sm:$0xff]  ;;  %v67_v10 = vld [vmem:[%s6027_s0 + $0x78] sm:$0xff] }
  0x11   :  { %283 = vmatpush.bf16.msra.mxu2 %v3891_v34  ;;  %v78_v8 = vpack.c.bf16 %v58_v6, %v56_v5  ;;  %v83_v11 = vpack.c.bf16 %v67_v10, %v65_v9  ;;  %v60_v13 = vld [vmem:[%s6027_s0 + $0x40] sm:$0xff]  ;;  %v62_v14 = vld [vmem:[%s6027_s0 + $0x50] sm:$0xff]  ;;  %v69_v18 = vld [vmem:[%s6027_s0 + $0x88] sm:$0xff] }
  0x12   :  { %414 = vmatpush.bf16.msrb.mxu1 %v3824_v12  ;;  %v80_v15 = vpack.c.bf16 %v62_v14, %v60_v13  ;;  %v71_v19 = vld [vmem:[%s6027_s0 + $0x98] sm:$0xff]  ;;  %v64_v21 = vld [vmem:[%s6027_s0 + $0x60] sm:$0xff]  ;;  %v66_v22 = vld [vmem:[%s6027_s0 + $0x70] sm:$0xff] }
  0x13   :  { %v85_v20 = vpack.c.bf16 %v71_v19, %v69_v18  ;;  %v82_v23 = vpack.c.bf16 %v66_v22, %v64_v21  ;;  %v73_v24 = vld [vmem:[%s6027_s0 + $0xa8] sm:$0xff]  ;;  %v75_v25 = vld [vmem:[%s6027_s0 + $0xb8] sm:$0xff]  ;;  %v68_v30 = vld [vmem:[%s6027_s0 + $0x80] sm:$0xff] }
  0x14   :  { %206 = vmatpush.bf16.msra.mxu0 %v3907_v39  ;;  %v87_v29 = vpack.c.bf16 %v75_v25, %v73_v24  ;;  %v70_v31 = vld [vmem:[%s6027_s0 + $0x90] sm:$0xff]  ;;  %v2919_v35 = vld [vmem:[%s6027_s0 + $0xc8] sm:$0xff]  ;;  %v2921_v36 = vld [vmem:[%s6027_s0 + $0xd8] sm:$0xff] }
  0x15   :  { %284 = vmatpush.bf16.msra.mxu2 %v3910_v40  ;;  %v84_v32 = vpack.c.bf16 %v70_v31, %v68_v30  ;;  %v384_v37 = vpack.c.bf16 %v2921_v36, %v2919_v35  ;;  %v2918_v38 = vld [vmem:[%s6027_s0 + $0xc0] sm:$0xff]  ;;  %v2920_v41 = vld [vmem:[%s6027_s0 + $0xd0] sm:$0xff]  ;;  %v2923_v46 = vld [vmem:[%s6027_s0 + $0xe8] sm:$0xff] }
  0x16   :  { %415 = vmatpush.bf16.msrb.mxu1 %v3864_v27  ;;  %v383_v42 = vpack.c.bf16 %v2920_v41, %v2918_v38  ;;  %v72_v43 = vld [vmem:[%s6027_s0 + $0xa0] sm:$0xff]  ;;  %v74_v44 = vld [vmem:[%s6027_s0 + $0xb0] sm:$0xff]  ;;  %v2929_v52 = vld [vmem:[%s6027_s0 + $0x118] sm:$0xff] }
  0x17   :  { %v86_v45 = vpack.c.bf16 %v74_v44, %v72_v43  ;;  %v2922_v50 = vld [vmem:[%s6027_s0 + $0xe0] sm:$0xff]  ;;  %v2931_v56 = vld [vmem:[%s6027_s0 + $0x128] sm:$0xff]  ;;  %v2936_v2 = vld [vmem:[%s6027_s0 + $0x150] sm:$0xff] }
  0x18   :  { %207 = vmatpush.bf16.msra.mxu0 %v3932_v47  ;;  %v2941_v21 = vld [vmem:[%s6027_s0 + $0x178] sm:$0xff]  ;;  %v2938_v24 = vld [vmem:[%s6027_s0 + $0x160] sm:$0xff]  ;;  %v2940_v25 = vld [vmem:[%s6027_s0 + $0x170] sm:$0xff] }
  0x19   :  { %285 = vmatpush.bf16.msra.mxu2 %v3935_v48  ;;  %2913 = vmatmul.msk.bf16.gmra.mxu3 %vm176_vm1, %v79_v49  ;;  %v393_v35 = vpack.c.bf16 %v2940_v25, %v2938_v24 }
  0x1a   :  { %416 = vmatpush.bf16.msrb.mxu1 %v3887_v33 }
  0x1c   :  { %208 = vmatpush.bf16.msra.mxu0 %v3951_v54 }
  0x1d   :  { %286 = vmatpush.bf16.msra.mxu2 %v3955_v55  ;;  %2907 = vmatmul.msk.bf16.gmra.mxu1 %vm176_vm1, %v79_v49 }
  0x1e   :  { %417 = vmatpush.bf16.msrb.mxu1 %v3907_v39 }
  0x20   :  { %209 = vmatpush.bf16.msra.mxu0 %v3971_v60 }
  0x21   :  { %287 = vmatpush.bf16.msra.mxu2 %v3981_v63 }
  0x22   :  { %418 = vmatpush.bf16.msrb.mxu1 %v3932_v47 }
  0x23   :  { %210 = vmatmul.bf16.vlgmr.msra.gmra.mxu0 %v76_v0 }
  0x24   :  { %491 = vmatpush.bf16.msrb.mxu0 %v3812_v7  ;;  %288 = vmatmul.bf16.vlgmr.msra.gmra.mxu2 %v76_v0  ;;  %v2935_v0 = vld [vmem:[%s6027_s0 + $0x148] sm:$0xff] }
  0x25   :  { %537 = vmatpush.bf16.msrb.mxu2 %v3837_v16 }
  0x26   :  { %419 = vmatpush.bf16.msrb.mxu1 %v3951_v54 }
  0x28   :  { %492 = vmatpush.bf16.msrb.mxu0 %v3839_v17 }
  0x29   :  { %823 = vmatpush.bf16.msra.mxu2 %v3837_v16  ;;  %2914 = vmatmul.msk.bf16.gmra.mxu3 %vm176_vm1, %v81_v4 }
  0x2a   :  { %420 = vmatpush.bf16.msrb.mxu1 %v3971_v60 }
  0x2c   :  { %493 = vmatpush.bf16.msrb.mxu0 %v3868_v28 }
  0x2d   :  { %2908 = vmatmul.msk.bf16.gmra.mxu1 %vm176_vm1, %v81_v4 }
  0x2e   :  { %699 = vmatpush.bf16.msra.mxu1 %v3801_v3 }
  0x30   :  { %494 = vmatpush.bf16.msrb.mxu0 %v3891_v34 }
  0x32   :  { %700 = vmatpush.bf16.msra.mxu1 %v3824_v12 }
  0x33   :  { %215 = vmatmul.bf16.gmra.mxu0 %v78_v8 }
  0x34   :  { %495 = vmatpush.bf16.msrb.mxu0 %v3910_v40  ;;  %293 = vmatmul.bf16.gmra.mxu2 %v78_v8 }
  0x36   :  { %701 = vmatpush.bf16.msra.mxu1 %v3864_v27 }
  0x38   :  { %496 = vmatpush.bf16.msrb.mxu0 %v3935_v48 }
  0x39   :  { %2915 = vmatmul.msk.bf16.gmra.mxu3 %vm176_vm1, %v83_v11 }
  0x3a   :  { %702 = vmatpush.bf16.msra.mxu1 %v3887_v33 }
  0x3c   :  { %497 = vmatpush.bf16.msrb.mxu0 %v3955_v55 }
  0x3d   :  { %2909 = vmatmul.msk.bf16.gmra.mxu1 %vm176_vm1, %v83_v11 }
  0x3e   :  { %703 = vmatpush.bf16.msra.mxu1 %v3907_v39 }
  0x40   :  { %498 = vmatpush.bf16.msrb.mxu0 %v3981_v63 }
  0x42   :  { %704 = vmatpush.bf16.msra.mxu1 %v3932_v47 }
  0x43   :  { %220 = vmatmul.bf16.gmra.mxu0 %v80_v15 }
  0x44   :  { %777 = vmatpush.bf16.msra.mxu0 %v3812_v7  ;;  %298 = vmatmul.bf16.gmra.mxu2 %v80_v15 }
  0x46   :  { %705 = vmatpush.bf16.msra.mxu1 %v3951_v54 }
  0x48   :  { %778 = vmatpush.bf16.msra.mxu0 %v3839_v17 }
  0x49   :  { %2916 = vmatmul.msk.bf16.gmra.mxu3 %vm176_vm1, %v85_v20 }
  0x4a   :  { %706 = vmatpush.bf16.msra.mxu1 %v3971_v60 }
  0x4c   :  { %779 = vmatpush.bf16.msra.mxu0 %v3868_v28 }
  0x4d   :  { %2910 = vmatmul.msk.bf16.gmra.mxu1 %vm176_vm1, %v85_v20  ;;  %v2939_v20 = vld [vmem:[%s6027_s0 + $0x168] sm:$0xff] }
  0x50   :  { %780 = vmatpush.bf16.msra.mxu0 %v3891_v34 }
  0x53   :  { %225 = vmatmul.bf16.gmra.mxu0 %v82_v23 }
  0x54   :  { %781 = vmatpush.bf16.msra.mxu0 %v3910_v40  ;;  %303 = vmatmul.bf16.gmra.mxu2 %v82_v23  ;;  %v394_v23 = vpack.c.bf16 %v2941_v21, %v2939_v20  ;;  %v2964_v20 = vld [vmem:[%s6027_s0 + $0x1d0] sm:$0xff] }
  0x58   :  { %782 = vmatpush.bf16.msra.mxu0 %v3935_v48 }
  0x59   :  { %2917 = vmatmul.msk.bf16.gmra.mxu3 %vm176_vm1, %v87_v29 }
  0x5c   :  { %783 = vmatpush.bf16.msra.mxu0 %v3955_v55 }
  0x5d   :  { %2911 = vmatmul.msk.bf16.gmra.mxu1 %vm176_vm1, %v87_v29 }
  0x60   :  { %784 = vmatpush.bf16.msra.mxu0 %v3981_v63 }
  0x63   :  { %230 = vmatmul.bf16.gmra.mxu0 %v84_v32 }
  0x64   :  { %308 = vmatmul.bf16.gmra.mxu2 %v84_v32 }
  0x69   :  { %2942 = vmatmul.msk.bf16.vlgmr.msrb.gmra.mxu3 %vm176_vm1, %v384_v37 }
  0x6a   :  { %956 = vmatpush.bf16.msrb.mxu3 %v3862_v26  ;;  %v2925_v26 = vld [vmem:[%s6027_s0 + $0xf8] sm:$0xff] }
  0x6b   :  { %v386_v49 = vpack.c.bf16 %v2925_v26, %v2923_v46  ;;  %v2957_v46 = vld [vmem:[%s6027_s0 + $0x198] sm:$0xff] }
  0x6d   :  { %421 = vmatmul.bf16.vlgmr.msrb.gmra.mxu1 %v383_v42 }
  0x6e   :  { %910 = vmatpush.bf16.msrb.mxu1 %v3801_v3  ;;  %v2924_v3 = vld [vmem:[%s6027_s0 + $0xf0] sm:$0xff] }
  0x6f   :  { %v385_v51 = vpack.c.bf16 %v2924_v3, %v2922_v50  ;;  %v2954_v50 = vld [vmem:[%s6027_s0 + $0x180] sm:$0xff]  ;;  %v2956_v3 = vld [vmem:[%s6027_s0 + $0x190] sm:$0xff] }
  0x72   :  { %911 = vmatpush.bf16.msrb.mxu1 %v3824_v12  ;;  %v2927_v12 = vld [vmem:[%s6027_s0 + $0x108] sm:$0xff] }
  0x73   :  { %235 = vmatmul.bf16.gmra.mxu0 %v86_v45 }
  0x74   :  { %313 = vmatmul.bf16.gmra.mxu2 %v86_v45  ;;  %v2955_v45 = vld [vmem:[%s6027_s0 + $0x188] sm:$0xff] }
  0x76   :  { %912 = vmatpush.bf16.msrb.mxu1 %v3864_v27  ;;  %v388_v27 = vpack.c.bf16 %v2929_v52, %v2927_v12 }
  0x79   :  { %2943 = vmatmul.msk.bf16.gmra.mxu3 %vm176_vm1, %v386_v49 }
  0x7a   :  { %913 = vmatpush.bf16.msrb.mxu1 %v3887_v33  ;;  %v2926_v33 = vld [vmem:[%s6027_s0 + $0x100] sm:$0xff] }
  0x7d   :  { %426 = vmatmul.bf16.gmra.mxu1 %v385_v51 }
  0x7e   :  { %914 = vmatpush.bf16.msrb.mxu1 %v3907_v39  ;;  %v2928_v39 = vld [vmem:[%s6027_s0 + $0x110] sm:$0xff] }
  0x82   :  { %915 = vmatpush.bf16.msrb.mxu1 %v3932_v47  ;;  %v387_v47 = vpack.c.bf16 %v2928_v39, %v2926_v33  ;;  %v669_v33 = vpack.c.bf16 %v2956_v3, %v2954_v50  ;;  %v2966_v3 = vld [vmem:[%s6027_s0 + $0x1e0] sm:$0xff] }
  0x83   :  { %499 = vmatmul.bf16.vlgmr.msrb.gmra.mxu0 %v383_v42 }
  0x84   :  { %2948 = vmatmul.msk.bf16.vlgmr.msrb.gmra.mxu2 %vm176_vm1, %v384_v37  ;;  %988 = vmatpush.bf16.msrb.mxu0 %v3812_v7 }
  0x85   :  { %1034 = vmatpush.bf16.msrb.mxu2 %v3837_v16 }
  0x86   :  { %916 = vmatpush.bf16.msrb.mxu1 %v3951_v54 }
  0x88   :  { %989 = vmatpush.bf16.msrb.mxu0 %v3839_v17  ;;  %v2933_v17 = vld [vmem:[%s6027_s0 + $0x138] sm:$0xff] }
  0x89   :  { %2944 = vmatmul.msk.bf16.gmra.mxu3 %vm176_vm1, %v388_v27  ;;  %v390_v57 = vpack.c.bf16 %v2933_v17, %v2931_v56 }
  0x8a   :  { %v250_v53 = vpop.f32.mrf.mxu1  ;;  %917 = vmatpush.bf16.msrb.mxu1 %v3971_v60 }
  0x8c   :  { %v328_v7 = vpop.f32.mrf.mxu3  ;;  %990 = vmatpush.bf16.msrb.mxu0 %v3868_v28  ;;  %v2930_v28 = vld [vmem:[%s6027_s0 + $0x120] sm:$0xff] }
  0x8d   :  { %431 = vmatmul.bf16.gmra.mxu1 %v387_v47 }
  0x90   :  { %991 = vmatpush.bf16.msrb.mxu0 %v3891_v34  ;;  %v2932_v34 = vld [vmem:[%s6027_s0 + $0x130] sm:$0xff] }
  0x91   :  { %v389_v58 = vpack.c.bf16 %v2932_v34, %v2930_v28 }
  0x92   :  { %v252_v16 = vpop.f32.mrf.mxu1 }
  0x93   :  { %504 = vmatmul.bf16.gmra.mxu0 %v385_v51 }
  0x94   :  { %v330_v54 = vpop.f32.mrf.mxu3  ;;  %2949 = vmatmul.msk.bf16.gmra.mxu2 %vm176_vm1, %v386_v49  ;;  %992 = vmatpush.bf16.msrb.mxu0 %v3910_v40  ;;  %v670_v49 = vpack.c.bf16 %v2957_v46, %v2955_v45  ;;  %v2967_v46 = vld [vmem:[%s6027_s0 + $0x1e8] sm:$0xff] }
  0x98   :  { %993 = vmatpush.bf16.msrb.mxu0 %v3935_v48  ;;  %v2937_v48 = vld [vmem:[%s6027_s0 + $0x158] sm:$0xff] }
  0x99   :  { %2945 = vmatmul.msk.bf16.gmra.mxu3 %vm176_vm1, %v390_v57 }
  0x9a   :  { %v255_v59 = vpop.f32.mrf.mxu1 }
  0x9c   :  { %v333_v60 = vpop.f32.mrf.mxu3  ;;  %994 = vmatpush.bf16.msrb.mxu0 %v3955_v55  ;;  %v392_v55 = vpack.c.bf16 %v2937_v48, %v2935_v0 }
  0x9d   :  { %436 = vmatmul.bf16.gmra.mxu1 %v389_v58 }
  0xa0   :  { %v211_v40 = vpop.f32.mrf.mxu0  ;;  %995 = vmatpush.bf16.msrb.mxu0 %v3981_v63  ;;  %v2934_v63 = vld [vmem:[%s6027_s0 + $0x140] sm:$0xff] }
  0xa1   :  { %v4148_v61 = vadd.f32 %v250_v53, %v211_v40  ;;  %v391_v9 = vpack.c.bf16 %v2936_v2, %v2934_v63 }
  0xa2   :  { %v257_v62 = vpop.f32.mrf.mxu1 }
  0xa3   :  { %509 = vmatmul.bf16.gmra.mxu0 %v387_v47 }
  0xa4   :  { %v335_v1 = vpop.f32.mrf.mxu3  ;;  %2950 = vmatmul.msk.bf16.gmra.mxu2 %vm176_vm1, %v388_v27 }
  0xa7   :  { %v289_v4 = vpop.f32.mrf.mxu2 }
  0xa8   :  { %v4163_v5 = vadd.f32 %v328_v7, %v289_v4  ;;  %v213_v6 = vpop.f32.mrf.mxu0 }
  0xa9   :  { %v4165_v8 = vadd.f32 %v252_v16, %v213_v6  ;;  %2946 = vmatmul.msk.bf16.gmra.mxu3 %vm176_vm1, %v392_v55 }
  0xaa   :  { %v260_v10 = vpop.f32.mrf.mxu1 }
  0xac   :  { %v338_v11 = vpop.f32.mrf.mxu3 }
  0xad   :  { %441 = vmatmul.bf16.gmra.mxu1 %v391_v9 }
  0xaf   :  { %v291_v13 = vpop.f32.mrf.mxu2 }
  0xb0   :  { %v4168_v14 = vadd.f32 %v330_v54, %v291_v13  ;;  %v216_v15 = vpop.f32.mrf.mxu0  ;;  %v2959_v54 = vld [vmem:[%s6027_s0 + $0x1a8] sm:$0xff] }
  0xb1   :  { %v4170_v18 = vadd.f32 %v255_v59, %v216_v15  ;;  %v2960_v59 = vld [vmem:[%s6027_s0 + $0x1b0] sm:$0xff] }
  0xb2   :  { %v262_v19 = vpop.f32.mrf.mxu1 }
  0xb3   :  { %514 = vmatmul.bf16.gmra.mxu0 %v389_v58  ;;  %v2958_v58 = vld [vmem:[%s6027_s0 + $0x1a0] sm:$0xff] }
  0xb4   :  { %v340_v22 = vpop.f32.mrf.mxu3  ;;  %2951 = vmatmul.msk.bf16.gmra.mxu2 %vm176_vm1, %v390_v57  ;;  %v2961_v57 = vld [vmem:[%s6027_s0 + $0x1b8] sm:$0xff]  ;;  %v671_v48 = vpack.c.bf16 %v2960_v59, %v2958_v58 }
  0xb5   :  { %v672_v34 = vpack.c.bf16 %v2961_v57, %v2959_v54 }
  0xb7   :  { %v294_v29 = vpop.f32.mrf.mxu2 }
  0xb8   :  { %v4185_v30 = vadd.f32 %v333_v60, %v294_v29  ;;  %v218_v31 = vpop.f32.mrf.mxu0 }
  0xb9   :  { %v4187_v32 = vadd.f32 %v257_v62, %v218_v31  ;;  %2947 = vmatmul.msk.bf16.gmra.mxu3 %vm176_vm1, %v394_v23 }
  0xba   :  { %v265_v36 = vpop.f32.mrf.mxu1 }
  0xbc   :  { %v343_v37 = vpop.f32.mrf.mxu3 }
  0xbd   :  { %446 = vmatmul.bf16.gmra.mxu1 %v393_v35 }
  0xbf   :  { %v296_v38 = vpop.f32.mrf.mxu2 }
  0xc0   :  { %v4190_v41 = vadd.f32 %v335_v1, %v296_v38  ;;  %v221_v42 = vpop.f32.mrf.mxu0 }
  0xc1   :  { %v4192_v43 = vadd.f32 %v260_v10, %v221_v42  ;;  %v2963_v10 = vld [vmem:[%s6027_s0 + $0x1c8] sm:$0xff] }
  0xc2   :  { %v267_v44 = vpop.f32.mrf.mxu1 }
  0xc3   :  { %519 = vmatmul.bf16.gmra.mxu0 %v391_v9 }
  0xc4   :  { %v345_v26 = vpop.f32.mrf.mxu3  ;;  %2952 = vmatmul.msk.bf16.gmra.mxu2 %vm176_vm1, %v392_v55 }
  0xc7   :  { %v299_v51 = vpop.f32.mrf.mxu2 }
  0xc8   :  { %v4207_v12 = vadd.f32 %v338_v11, %v299_v51  ;;  %v223_v52 = vpop.f32.mrf.mxu0  ;;  %v2965_v11 = vld [vmem:[%s6027_s0 + $0x1d8] sm:$0xff]  ;;  %v2968_v51 = vld [vmem:[%s6027_s0 + $0x1f0] sm:$0xff] }
  0xc9   :  { %v4209_v27 = vadd.f32 %v262_v19, %v223_v52  ;;  %2978 = vmatmul.msk.bf16.vlgmr.msra.gmra.mxu3 %vm176_vm1, %v670_v49  ;;  %v674_v15 = vpack.c.bf16 %v2965_v11, %v2963_v10  ;;  %v2962_v19 = vld [vmem:[%s6027_s0 + $0x1c0] sm:$0xff] }
  0xca   :  { %v270_v39 = vpop.f32.mrf.mxu1  ;;  %v673_v25 = vpack.c.bf16 %v2964_v20, %v2962_v19 }
  0xcc   :  { %v348_v47 = vpop.f32.mrf.mxu3 }
  0xcd   :  { %707 = vmatmul.bf16.vlgmr.msra.gmra.mxu1 %v669_v33 }
  0xcf   :  { %v301_v53 = vpop.f32.mrf.mxu2 }
  0xd0   :  { %v4212_v7 = vadd.f32 %v340_v22, %v301_v53  ;;  %v226_v16 = vpop.f32.mrf.mxu0 }
  0xd1   :  { %v4214_v56 = vadd.f32 %v265_v36, %v226_v16  ;;  %v675_v16 = vpack.c.bf16 %v2968_v51, %v2966_v3  ;;  %v2974_v51 = vld [vmem:[%s6027_s0 + $0x220] sm:$0xff] }
  0xd2   :  { %v272_v17 = vpop.f32.mrf.mxu1 }
  0xd3   :  { %524 = vmatmul.bf16.gmra.mxu0 %v393_v35 }
  0xd4   :  { %v350_v28 = vpop.f32.mrf.mxu3  ;;  %2953 = vmatmul.msk.bf16.gmra.mxu2 %vm176_vm1, %v394_v23 }
  0xd7   :  { %v304_v60 = vpop.f32.mrf.mxu2 }
  0xd8   :  { %v4229_v40 = vadd.f32 %v343_v37, %v304_v60  ;;  %v228_v62 = vpop.f32.mrf.mxu0  ;;  %v2971_v60 = vld [vmem:[%s6027_s0 + $0x208] sm:$0xff] }
  0xd9   :  { %v4231_v0 = vadd.f32 %v267_v44, %v228_v62  ;;  %2979 = vmatmul.msk.bf16.gmra.mxu3 %vm176_vm1, %v672_v34  ;;  %v2973_v62 = vld [vmem:[%s6027_s0 + $0x218] sm:$0xff] }
  0xda   :  { %v275_v1 = vpop.f32.mrf.mxu1 }
  0xdc   :  { %v353_v55 = vpop.f32.mrf.mxu3 }
  0xdd   :  { %712 = vmatmul.bf16.gmra.mxu1 %v671_v48 }
  0xdf   :  { %v306_v63 = vpop.f32.mrf.mxu2 }
  0xe0   :  { %v4234_v2 = vadd.f32 %v345_v26, %v306_v63  ;;  %v231_v4 = vpop.f32.mrf.mxu0  ;;  %v2969_v26 = vld [vmem:[%s6027_s0 + $0x1f8] sm:$0xff]  ;;  %v2972_v63 = vld [vmem:[%s6027_s0 + $0x210] sm:$0xff] }
  0xe1   :  { %v4236_v6 = vadd.f32 %v270_v39, %v231_v4  ;;  %v676_v50 = vpack.c.bf16 %v2969_v26, %v2967_v46 }
  0xe2   :  { %v277_v9 = vpop.f32.mrf.mxu1 }
  0xe3   :  { %785 = vmatmul.bf16.vlgmr.msra.gmra.mxu0 %v669_v33 }
  0xe4   :  { %v355_v13 = vpop.f32.mrf.mxu3  ;;  %2984 = vmatmul.msk.bf16.vlgmr.msra.gmra.mxu2 %vm176_vm1, %v670_v49 }
  0xe7   :  { %v309_v21 = vpop.f32.mrf.mxu2 }
  0xe8   :  { %v4251_v22 = vadd.f32 %v348_v47, %v309_v21  ;;  %v233_v23 = vpop.f32.mrf.mxu0  ;;  %v4308_v21 = vld [vmem:[%s6028_s5] ss:$0 sm:$0xff] }
  0xe9   :  { %v4253_v24 = vadd.f32 %v272_v17, %v233_v23  ;;  %2980 = vmatmul.msk.bf16.gmra.mxu3 %vm176_vm1, %v674_v15 }
  0xea   :  { %v422_v29 = vpop.f32.mrf.mxu1 }
  0xec   :  { %v461_v31 = vpop.f32.mrf.mxu3 }
  0xed   :  { %v462_v35 = vadd.f32 %v461_v31, %v422_v29  ;;  %717 = vmatmul.bf16.gmra.mxu1 %v673_v25 }
  0xef   :  { %v569_v36 = vmax.f32 %v4148_v61, %v462_v35  ;;  %v311_v37 = vpop.f32.mrf.mxu2 }
  0xf0   :  { %v4257_v38 = vadd.f32 %v350_v28, %v311_v37  ;;  %v236_v42 = vpop.f32.mrf.mxu0 }
  0xf1   :  { %v4259_v44 = vadd.f32 %v275_v1, %v236_v42  ;;  %v2975_v42 = vld [vmem:[%s6027_s0 + $0x228] sm:$0xff] }
  0xf2   :  { %v424_v45 = vpop.f32.mrf.mxu1 }
  0xf3   :  { %790 = vmatmul.bf16.gmra.mxu0 %v671_v48 }
  0xf4   :  { %v463_v49 = vpop.f32.mrf.mxu3  ;;  %2985 = vmatmul.msk.bf16.gmra.mxu2 %vm176_vm1, %v672_v34 }
  0xf5   :  { %v464_v61 = vadd.f32 %v463_v49, %v424_v45  ;;  %v2977_v45 = vld [vmem:[%s6027_s0 + $0x238] sm:$0xff] }
  0xf6   :  { %v4325_v3 = vpack.c.bf16 %v2977_v45, %v2975_v42 }
  0xf7   :  { %v571_v52 = vmax.f32 %v4165_v8, %v464_v61  ;;  %v314_v33 = vpop.f32.mrf.mxu2 }
  0xf8   :  { %v4275_v39 = vadd.f32 %v353_v55, %v314_v33  ;;  %v238_v47 = vpop.f32.mrf.mxu0  ;;  %v2970_v55 = vld [vmem:[%s6027_s0 + $0x200] sm:$0xff]  ;;  %v2976_v33 = vld [vmem:[%s6027_s0 + $0x230] sm:$0xff] }
  0xf9   :  { %v4277_v53 = vadd.f32 %v277_v9, %v238_v47  ;;  %2981 = vmatmul.msk.bf16.gmra.mxu3 %vm176_vm1, %v676_v50 }
  0xfa   :  { %v427_v17 = vpop.f32.mrf.mxu1 }
  0xfc   :  { %v466_v54 = vpop.f32.mrf.mxu3 }
  0xfd   :  { %v467_v57 = vadd.f32 %v466_v54, %v427_v17  ;;  %722 = vmatmul.bf16.gmra.mxu1 %v675_v16 }
  0xff   :  { %v573_v28 = vmax.f32 %v4170_v18, %v467_v57  ;;  %v316_v34 = vpop.f32.mrf.mxu2  ;;  %v4292_v18 = vpack.c.bf16 %v2973_v62, %v2971_v60  ;;  %v679_v57 = vpack.c.bf16 %v2976_v33, %v2974_v51 }
 0x100   :  { %v4281_v58 = vadd.f32 %v355_v13, %v316_v34  ;;  %v500_v59 = vpop.f32.mrf.mxu0  ;;  %v677_v13 = vpack.c.bf16 %v2972_v63, %v2970_v55 }
 0x102   :  { %v429_v8 = vpop.f32.mrf.mxu1 }
 0x103   :  { %795 = vmatmul.bf16.gmra.mxu0 %v673_v25 }
 0x104   :  { %v468_v48 = vpop.f32.mrf.mxu3  ;;  %2986 = vmatmul.msk.bf16.gmra.mxu2 %vm176_vm1, %v674_v15 }
 0x105   :  { %v4290_v1 = vadd.f32 %v468_v48, %v429_v8 }
 0x107   :  { %v575_v4 = vmax.f32 %v4187_v32, %v4290_v1  ;;  %v539_v9 = vpop.f32.mrf.mxu2 }
 0x108   :  { %v540_v10 = vadd.f32 %v539_v9, %v500_v59  ;;  %v502_v11 = vpop.f32.mrf.mxu0 }
 0x109   :  { %2982 = vmatmul.msk.bf16.gmra.mxu3 %vm176_vm1, %v4292_v18 }
 0x10a   :  { %v570_v15 = vmax.f32 %v4163_v5, %v540_v10  ;;  %v432_v19 = vpop.f32.mrf.mxu1 }
 0x10c   :  { %v593_v20 = vmax.f32 %v569_v36, %v570_v15  ;;  %v471_v23 = vpop.f32.mrf.mxu3 }
 0x10d   :  { %v4310_v25 = vadd.f32 %v471_v23, %v432_v19  ;;  %727 = vmatmul.bf16.gmra.mxu1 %v677_v13  ;;  %v2993_v23 = vld [vmem:[%s6027_s0 + $0x258] sm:$0xff] }
 0x10e   :  { %v608_v31 = vadd.f32 %v4308_v21, %v593_v20 }
 0x10f   :  { %v577_v32 = vmax.f32 %v4192_v43, %v4310_v25  ;;  %v541_v29 = vpop.f32.mrf.mxu2  ;;  %v2995_v43 = vld [vmem:[%s6027_s0 + $0x268] sm:$0xff]  ;;  %v2997_v25 = vld [vmem:[%s6027_s0 + $0x278] sm:$0xff] }
 0x110   :  { %v542_v35 = vadd.f32 %v541_v29, %v502_v11  ;;  %v505_v37 = vpop.f32.mrf.mxu0  ;;  %v620_v46 = vmax.f32 %v608_v31, 0.0 }
 0x112   :  { %v572_v5 = vmax.f32 %v4168_v14, %v542_v35  ;;  %v434_v36 = vpop.f32.mrf.mxu1 }
 0x113   :  { %800 = vmatmul.bf16.gmra.mxu0 %v675_v16  ;;  %v632_v16 = vpack.c.bf16 %v620_v46, %v620_v46 }
 0x114   :  { %v594_v26 = vmax.f32 %v571_v52, %v572_v5  ;;  %v473_v49 = vpop.f32.mrf.mxu3  ;;  %2987 = vmatmul.msk.bf16.gmra.mxu2 %vm176_vm1, %v676_v50 }
 0x115   :  { %v4323_v61 = vadd.f32 %v473_v49, %v434_v36  ;;  %v1341_v60 = vunpack.c.l.b16 %v632_v16  ;;  %v2990_v36 = vld [vmem:[%s6027_s0 + $0x240] sm:$0xff] }
 0x116   :  { %v609_v14 = vadd.f32 %v4308_v21, %v594_v26 }
 0x117   :  { %v579_v52 = vmax.f32 %v4209_v27, %v4323_v61  ;;  %v544_v47 = vpop.f32.mrf.mxu2 }
 0x118   :  { %v621_v50 = vmax.f32 %v609_v14, 0.0  ;;  %v545_v17 = vadd.f32 %v544_v47, %v505_v37  ;;  %v507_v54 = vpop.f32.mrf.mxu0 }
 0x119   :  { %2983 = vmatmul.msk.bf16.gmra.mxu3 %vm176_vm1, %v4325_v3 }
 0x11a   :  { %v633_v34 = vpack.c.bf16 %v621_v50, %v621_v50  ;;  %v574_v59 = vmax.f32 %v4185_v30, %v545_v17  ;;  %v437_v8 = vpop.f32.mrf.mxu1 }
 0x11c   :  { %v1342_v62 = vunpack.c.l.b16 %v633_v34  ;;  %v595_v48 = vmax.f32 %v573_v28, %v574_v59  ;;  %v476_v1 = vpop.f32.mrf.mxu3  ;;  %v2991_v28 = vld [vmem:[%s6027_s0 + $0x248] sm:$0xff] }
 0x11d   :  { %v4339_v55 = vadd.f32 %v476_v1, %v437_v8  ;;  %732 = vmatmul.bf16.gmra.mxu1 %v679_v57  ;;  %v4357_v5 = vpack.c.bf16 %v2993_v23, %v2991_v28 }
 0x11e   :  { %v4341_v63 = vpack.c.b16 %v1342_v62, %v1341_v60  ;;  %v610_v11 = vadd.f32 %v4308_v21, %v595_v48 }
 0x11f   :  { %v581_v9 = vmax.f32 %v4214_v56, %v4339_v55  ;;  %v546_v10 = vpop.f32.mrf.mxu2  ;;  %v2999_v56 = vld [vmem:[%s6027_s0 + $0x288] sm:$0xff]  ;;  %v3001_v55 = vld [vmem:[%s6027_s0 + $0x298] sm:$0xff] }
 0x120   :  { %v547_v15 = vadd.f32 %v546_v10, %v507_v54  ;;  %v510_v19 = vpop.f32.mrf.mxu0  ;;  %v622_v29 = vmax.f32 %v610_v11, 0.0 }
 0x122   :  { %v576_v30 = vmax.f32 %v4190_v41, %v547_v15  ;;  %v439_v20 = vpop.f32.mrf.mxu1  ;;  %v634_v45 = vpack.c.bf16 %v622_v29, %v622_v29  ;;  %v4395_v15 = vpack.c.bf16 %v2997_v25, %v2995_v43 }
 0x123   :  { %805 = vmatmul.bf16.gmra.mxu0 %v677_v13  ;;  %v2992_v13 = vld [vmem:[%s6027_s0 + $0x250] sm:$0xff] }
 0x124   :  { %v596_v31 = vmax.f32 %v575_v4, %v576_v30  ;;  %v478_v35 = vpop.f32.mrf.mxu3  ;;  %2988 = vmatmul.msk.bf16.gmra.mxu2 %vm176_vm1, %v4292_v18  ;;  %v880_v49 = vpack.c.bf16 %v2992_v13, %v2990_v36  ;;  %v1343_v47 = vunpack.c.l.b16 %v634_v45  ;;  %v2994_v30 = vld [vmem:[%s6027_s0 + $0x260] sm:$0xff] }
 0x125   :  { %v4355_v37 = vadd.f32 %v478_v35, %v439_v20 }
 0x126   :  { %v611_v41 = vadd.f32 %v4308_v21, %v596_v31 }
 0x127   :  { %v583_v4 = vmax.f32 %v4231_v0, %v4355_v37  ;;  %v549_v42 = vpop.f32.mrf.mxu2 }
 0x128   :  { %v623_v18 = vmax.f32 %v611_v41, 0.0  ;;  %v550_v46 = vadd.f32 %v549_v42, %v510_v19  ;;  %v512_v26 = vpop.f32.mrf.mxu0 }
 0x129   :  { %3014 = vmatmul.msk.bf16.vlgmr.msrb.gmra.mxu3 %vm176_vm1, %v4357_v5 }
 0x12a   :  { %v635_v14 = vpack.c.bf16 %v623_v18, %v623_v18  ;;  %v578_v51 = vmax.f32 %v4207_v12, %v550_v46  ;;  %v442_v33 = vpop.f32.mrf.mxu1 }
 0x12c   :  { %v1344_v16 = vunpack.c.l.b16 %v635_v14  ;;  %v597_v50 = vmax.f32 %v577_v32, %v578_v51  ;;  %v481_v17 = vpop.f32.mrf.mxu3 }
 0x12d   :  { %v4374_v54 = vadd.f32 %v481_v17, %v442_v33  ;;  %918 = vmatmul.bf16.vlgmr.msrb.gmra.mxu1 %v880_v49  ;;  %v4433_v17 = vpack.c.bf16 %v3001_v55, %v2999_v56 }
 0x12e   :  { %v4376_v34 = vpack.c.b16 %v1344_v16, %v1343_v47  ;;  %v612_v60 = vadd.f32 %v4308_v21, %v597_v50 }
 0x12f   :  { %v585_v59 = vmax.f32 %v4236_v6, %v4374_v54  ;;  %v551_v8 = vpop.f32.mrf.mxu2  ;;  %v3003_v6 = vld [vmem:[%s6027_s0 + $0x2a8] sm:$0xff]  ;;  %v3005_v54 = vld [vmem:[%s6027_s0 + $0x2b8] sm:$0xff] }
 0x130   :  { %6071 = vst [vmem:[#allocation2_spill] sm:$0xff] %v4376_v34  ;;  %v552_v12 = vadd.f32 %v551_v8, %v512_v26  ;;  %v515_v62 = vpop.f32.mrf.mxu0  ;;  %v624_v32 = vmax.f32 %v612_v60, 0.0  ;;  %v2998_v60 = vld [vmem:[%s6027_s0 + $0x280] sm:$0xff] }
 0x132   :  { %v580_v48 = vmax.f32 %v4212_v7, %v552_v12  ;;  %v444_v1 = vpop.f32.mrf.mxu1 }
 0x133   :  { %810 = vmatmul.bf16.gmra.mxu0 %v679_v57  ;;  %v2996_v57 = vld [vmem:[%s6027_s0 + $0x270] sm:$0xff] }
 0x134   :  { %v598_v10 = vmax.f32 %v579_v52, %v580_v48  ;;  %v483_v11 = vpop.f32.mrf.mxu3  ;;  %2989 = vmatmul.msk.bf16.gmra.mxu2 %vm176_vm1, %v4325_v3  ;;  %v636_v52 = vpack.c.bf16 %v624_v32, %v624_v32  ;;  %v882_v23 = vpack.c.bf16 %v2996_v57, %v2994_v30 }
 0x135   :  { %v4393_v7 = vadd.f32 %v483_v11, %v444_v1 }
 0x136   :  { %v613_v19 = vadd.f32 %v4308_v21, %v598_v10  ;;  %v1345_v41 = vunpack.c.l.b16 %v636_v52 }
 0x137   :  { %v587_v27 = vmax.f32 %v4253_v24, %v4393_v7  ;;  %v554_v61 = vpop.f32.mrf.mxu2 }
 0x138   :  { %v625_v3 = vmax.f32 %v613_v19, 0.0  ;;  %v555_v20 = vadd.f32 %v554_v61, %v515_v62  ;;  %v517_v28 = vpop.f32.mrf.mxu0 }
 0x139   :  { %3015 = vmatmul.msk.bf16.gmra.mxu3 %vm176_vm1, %v4395_v15 }
 0x13a   :  { %v637_v29 = vpack.c.bf16 %v625_v3, %v625_v3  ;;  %v582_v31 = vmax.f32 %v4229_v40, %v555_v20  ;;  %v447_v35 = vpop.f32.mrf.mxu1 }
 0x13c   :  { %v1346_v36 = vunpack.c.l.b16 %v637_v29  ;;  %v599_v13 = vmax.f32 %v581_v9, %v582_v31  ;;  %v486_v42 = vpop.f32.mrf.mxu3 }
 0x13d   :  { %v4412_v45 = vadd.f32 %v486_v42, %v447_v35  ;;  %923 = vmatmul.bf16.gmra.mxu1 %v882_v23 }
 0x13e   :  { %v4414_v18 = vpack.c.b16 %v1346_v36, %v1345_v41  ;;  %v614_v14 = vadd.f32 %v4308_v21, %v599_v13  ;;  %v3002_v41 = vld [vmem:[%s6027_s0 + $0x2a0] sm:$0xff] }
 0x13f   :  { %v589_v46 = vmax.f32 %v4259_v44, %v4412_v45  ;;  %v556_v26 = vpop.f32.mrf.mxu2  ;;  %v3102_v44 = vld [vmem:[%s6029_s2 + $0xf8] sm:$0xf0]  ;;  %v3007_v45 = vld [vmem:[%s6027_s0 + $0x2c8] sm:$0xff] }
 0x140   :  { %6072 = vst [vmem:[#allocation3_spill] sm:$0xff] %v4414_v18  ;;  %v557_v40 = vadd.f32 %v556_v26, %v517_v28  ;;  %v520_v51 = vpop.f32.mrf.mxu0  ;;  %v626_v9 = vmax.f32 %v614_v14, 0.0 }
 0x142   :  { %v584_v33 = vmax.f32 %v4234_v2, %v557_v40  ;;  %v449_v47 = vpop.f32.mrf.mxu1 }
 0x143   :  { %996 = vmatmul.bf16.vlgmr.msrb.gmra.mxu0 %v880_v49  ;;  %v3000_v49 = vld [vmem:[%s6027_s0 + $0x290] sm:$0xff] }
 0x144   :  { %v600_v16 = vmax.f32 %v583_v4, %v584_v33  ;;  %v488_v50 = vpop.f32.mrf.mxu3  ;;  %3020 = vmatmul.msk.bf16.vlgmr.msrb.gmra.mxu2 %vm176_vm1, %v4357_v5  ;;  %v638_v4 = vpack.c.bf16 %v626_v9, %v626_v9  ;;  %v884_v48 = vpack.c.bf16 %v3000_v49, %v2998_v60  ;;  %v3635_v60 = vld [vmem:[%s6029_s2 + $0x74] sm:$0xf]  ;;  %v3166_v49 = vld [vmem:[%s6029_s2 + $0x78] sm:$0xf0] }
 0x145   :  { %v4431_v2 = vadd.f32 %v488_v50, %v449_v47 }
 0x146   :  { %v615_v8 = vadd.f32 %v4308_v21, %v600_v16  ;;  %v1347_v32 = vunpack.c.l.b16 %v638_v4 }
 0x147   :  { %v591_v0 = vmax.f32 %v4277_v53, %v4431_v2  ;;  %v559_v37 = vpop.f32.mrf.mxu2  ;;  %v3100_v53 = vld [vmem:[%s6029_s2 + $0xf0] sm:$0xf]  ;;  %v3652_v2 = vld [vmem:[%s6029_s2 + $0xf4] sm:$0xf0] }
 0x148   :  { %v627_v5 = vmax.f32 %v615_v8, 0.0  ;;  %v560_v12 = vadd.f32 %v559_v37, %v520_v51  ;;  %v522_v62 = vpop.f32.mrf.mxu0 }
 0x149   :  { %3016 = vmatmul.msk.bf16.gmra.mxu3 %vm176_vm1, %v4433_v17 }
 0x14a   :  { %v639_v1 = vpack.c.bf16 %v627_v5, %v627_v5  ;;  %v586_v43 = vmax.f32 %v4251_v22, %v560_v12  ;;  %v708_v25 = vpop.f32.mrf.mxu1  ;;  %v3009_v5 = vld [vmem:[%s6027_s0 + $0x2d8] sm:$0xff]  ;;  %v4517_v12 = vor.u32 %v3635_v60, %v3166_v49  ;;  %v3142_v49 = vld [vmem:[%s6029_s2 + $0x48] sm:$0xf0] }
 0x14c   :  { %v1348_v10 = vunpack.c.l.b16 %v639_v1  ;;  %v601_v11 = vmax.f32 %v585_v59, %v586_v43  ;;  %v747_v19 = vpop.f32.mrf.mxu3  ;;  %6074 = vst [vmem:[#allocation5_spill] sm:$0xff] %v4517_v12  ;;  %v3636_v1 = vld [vmem:[%s6029_s2 + $0x74] sm:$0xf0]  ;;  %1466 = vmatpush.bf16.msra.mxu2 %v4517_v12 }
 0x14d   :  { %v4450_v30 = vadd.f32 %v747_v19, %v708_v25  ;;  %928 = vmatmul.bf16.gmra.mxu1 %v884_v48  ;;  %v3156_v19 = vld [vmem:[%s6029_s2 + $0x60] sm:$0xf] }
 0x14e   :  { %v4452_v57 = vpack.c.b16 %v1348_v10, %v1347_v32  ;;  %v616_v52 = vadd.f32 %v4308_v21, %v601_v11  ;;  %v3006_v10 = vld [vmem:[%s6027_s0 + $0x2c0] sm:$0xff]  ;;  %v4538_v11 = vpack.c.bf16 %v3009_v5, %v3007_v45 }
 0x14f   :  { %v561_v61 = vpop.f32.mrf.mxu2 }
 0x150   :  { %v562_v3 = vadd.f32 %v561_v61, %v522_v62  ;;  %v525_v20 = vpop.f32.mrf.mxu0  ;;  %v628_v59 = vmax.f32 %v616_v52, 0.0  ;;  %v3164_v62 = vld [vmem:[%s6029_s2 + $0x70] sm:$0xf]  ;;  %v3634_v61 = vld [vmem:[%s6029_s2 + $0x64] sm:$0xf0] }
 0x151   :  { %v3633_v52 = vld [vmem:[%s6029_s2 + $0x64] sm:$0xf] }
 0x152   :  { %v588_v22 = vmax.f32 %v4257_v38, %v562_v3  ;;  %v4456_v28 = vpop.f32.mrf.mxu1  ;;  %v4471_v38 = vpack.c.bf16 %v3005_v54, %v3003_v6  ;;  %v640_v24 = vpack.c.bf16 %v628_v59, %v628_v59 }
 0x153   :  { %1001 = vmatmul.bf16.gmra.mxu0 %v882_v23  ;;  %v3004_v23 = vld [vmem:[%s6027_s0 + $0x2b0] sm:$0xff] }
 0x154   :  { %v602_v29 = vmax.f32 %v587_v27, %v588_v22  ;;  %v4467_v31 = vpop.f32.mrf.mxu3  ;;  %3021 = vmatmul.msk.bf16.gmra.mxu2 %vm176_vm1, %v4395_v15  ;;  %v4482_v15 = vpack.c.bf16 %v3004_v23, %v3002_v41  ;;  %v1514_v40 = vunpack.c.l.b16 %v640_v24  ;;  %v3158_v22 = vld [vmem:[%s6029_s2 + $0x68] sm:$0xf0]  ;;  %v3148_v24 = vld [vmem:[%s6029_s2 + $0x50] sm:$0xf] }
 0x156   :  { %v617_v35 = vadd.f32 %v4308_v21, %v602_v29 }
 0x157   :  { %v564_v36 = vpop.f32.mrf.mxu2 }
 0x158   :  { %v629_v7 = vmax.f32 %v617_v35, 0.0  ;;  %v565_v27 = vadd.f32 %v564_v36, %v525_v20  ;;  %v527_v13 = vpop.f32.mrf.mxu0  ;;  %v4563_v20 = vor.u32 %v3634_v61, %v3156_v19  ;;  %v4571_v35 = vor.u32 %v3633_v52, %v3158_v22  ;;  %v3627_v19 = vld [vmem:[%s6029_s2 + $0x34] sm:$0xf]  ;;  %v3134_v52 = vld [vmem:[%s6029_s2 + $0x38] sm:$0xf0] }
 0x159   :  { %3017 = vmatmul.msk.bf16.gmra.mxu3 %vm176_vm1, %v4471_v38  ;;  %v4667_v22 = vor.u32 %v3627_v19, %v3134_v52  ;;  %v3108_v19 = vld [vmem:[%s6029_s2] sm:$0xf]  ;;  %v3622_v52 = vld [vmem:[%s6029_s2 + $0x4] sm:$0xf0] }
 0x15a   :  { %v641_v42 = vpack.c.bf16 %v629_v7, %v629_v7  ;;  %v590_v26 = vmax.f32 %v4275_v39, %v565_v27  ;;  %v713_v14 = vpop.f32.mrf.mxu1  ;;  %v3651_v39 = vld [vmem:[%s6029_s2 + $0xf4] sm:$0xf]  ;;  %6076 = vst [vmem:[#allocation7_spill] sm:$0xff] %v4563_v20  ;;  %1467 = vmatpush.bf16.msra.mxu2 %v4571_v35  ;;  %v3632_v7 = vld [vmem:[%s6029_s2 + $0x54] sm:$0xf0] }
 0x15b   :  { %6077 = vst [vmem:[#allocation8_spill] sm:$0xff] %v4571_v35  ;;  %v3631_v27 = vld [vmem:[%s6029_s2 + $0x54] sm:$0xf] }
 0x15c   :  { %v1515_v51 = vunpack.c.l.b16 %v641_v42  ;;  %v603_v33 = vmax.f32 %v589_v46, %v590_v26  ;;  %v752_v47 = vpop.f32.mrf.mxu3  ;;  %v4503_v46 = vor.u32 %v3651_v39, %v3102_v44  ;;  %v3150_v42 = vld [vmem:[%s6029_s2 + $0x58] sm:$0xf0]  ;;  %v3629_v39 = vld [vmem:[%s6029_s2 + $0x44] sm:$0xf]  ;;  %6084 = vst [vmem:[#allocation15_spill] sm:$0xff] %v4667_v22 }
 0x15d   :  { %v4488_v56 = vadd.f32 %v752_v47, %v713_v14  ;;  %933 = vmatmul.bf16.gmra.mxu1 %v4482_v15  ;;  %v3649_v47 = vld [vmem:[%s6029_s2 + $0xe4] sm:$0xf] }
 0x15e   :  { %v4491_v55 = vpack.c.b16 %v1515_v51, %v1514_v40  ;;  %v618_v16 = vadd.f32 %v4308_v21, %v603_v33  ;;  %1304 = vmatpush.bf16.msra.mxu3 %v4503_v46  ;;  %v4593_v51 = vor.u32 %v3631_v27, %v3150_v42 }
 0x15f   :  { %v566_v9 = vpop.f32.mrf.mxu2 }
 0x160   :  { %6073 = vst [vmem:[#allocation4_spill] sm:$0xff] %v4491_v55  ;;  %v567_v50 = vadd.f32 %v566_v9, %v527_v13  ;;  %v786_v8 = vpop.f32.mrf.mxu0  ;;  %v630_v43 = vmax.f32 %v618_v16, 0.0  ;;  %v4588_v13 = vor.u32 %v3632_v7, %v3148_v24  ;;  %v3094_v9 = vld [vmem:[%s6029_s2 + $0xe8] sm:$0xf0]  ;;  %1468 = vmatpush.bf16.msra.mxu2 %v4593_v51 }
 0x161   :  { %6079 = vst [vmem:[#allocation10_spill] sm:$0xff] %v4593_v51  ;;  %v4605_v16 = vor.u32 %v3649_v47, %v3094_v9  ;;  %v3126_v7 = vld [vmem:[%s6029_s2 + $0x28] sm:$0xf0] }
 0x162   :  { %v592_v37 = vmax.f32 %v4281_v58, %v567_v50  ;;  %v4512_v4 = vpop.f32.mrf.mxu1  ;;  %v4526_v58 = vor.u32 %v3636_v1, %v3164_v62  ;;  %v642_v6 = vpack.c.bf16 %v630_v43, %v630_v43  ;;  %6078 = vst [vmem:[#allocation9_spill] sm:$0xff] %v4588_v13  ;;  %v3140_v50 = vld [vmem:[%s6029_s2 + $0x40] sm:$0xf]  ;;  %v4627_v62 = vor.u32 %v3629_v39, %v3142_v49  ;;  %v3650_v43 = vld [vmem:[%s6029_s2 + $0xe4] sm:$0xf0] }
 0x163   :  { %1006 = vmatmul.bf16.gmra.mxu0 %v884_v48  ;;  %v3008_v48 = vld [vmem:[%s6027_s0 + $0x2d0] sm:$0xff]  ;;  %1305 = vmatpush.bf16.msra.mxu3 %v4605_v16  ;;  %v3092_v1 = vld [vmem:[%s6029_s2 + $0xe0] sm:$0xf]  ;;  %v3624_v39 = vld [vmem:[%s6029_s2 + $0x14] sm:$0xf0] }
 0x164   :  { %6075 = vst [vmem:[#allocation6_spill] sm:$0xff] %v4526_v58  ;;  %v604_v25 = vmax.f32 %v591_v0, %v592_v37  ;;  %v4531_v32 = vpop.f32.mrf.mxu3  ;;  %3022 = vmatmul.msk.bf16.gmra.mxu2 %vm176_vm1, %v4433_v17  ;;  %1437 = vmatpush.bf16.msra.mxu0 %v4526_v58  ;;  %v4552_v0 = vor.u32 %v3652_v2, %v3100_v53  ;;  %v1868_v26 = vunpack.c.l.b16 %v642_v6  ;;  %v3132_v2 = vld [vmem:[%s6029_s2 + $0x30] sm:$0xf] }
 0x165   :  { %v4575_v41 = vpack.c.bf16 %v3008_v48, %v3006_v10  ;;  %6082 = vst [vmem:[#allocation13_spill] sm:$0xff] %v4627_v62  ;;  %v3013_v10 = vld [vmem:[%s6027_s0 + $0x2f8] sm:$0xff]  ;;  %v4642_v48 = vor.u32 %v3650_v43, %v3092_v1  ;;  %1469 = vmatpush.bf16.msra.mxu2 %v4627_v62 }
 0x166   :  { %v619_v17 = vadd.f32 %v4308_v21, %v604_v25  ;;  %1275 = vmatpush.bf16.msra.mxu1 %v4552_v0  ;;  %v3011_v25 = vld [vmem:[%s6027_s0 + $0x2e8] sm:$0xff] }
 0x167   :  { %v825_v3 = vpop.f32.mrf.mxu2  ;;  %v4669_v6 = vpack.c.bf16 %v3013_v10, %v3011_v25  ;;  %v3084_v10 = vld [vmem:[%s6029_s2 + $0xd0] sm:$0xf] }
 0x168   :  { %v631_v54 = vmax.f32 %v619_v17, 0.0  ;;  %v4568_v59 = vadd.f32 %v825_v3, %v786_v8  ;;  %v788_v29 = vpop.f32.mrf.mxu0  ;;  %1438 = vmatpush.bf16.msra.mxu0 %v4563_v20  ;;  %v3630_v8 = vld [vmem:[%s6029_s2 + $0x44] sm:$0xf0]  ;;  %v3628_v17 = vld [vmem:[%s6029_s2 + $0x34] sm:$0xf0] }
 0x169   :  { %3018 = vmatmul.msk.bf16.gmra.mxu3 %vm176_vm1, %v4538_v11  ;;  %v4619_v60 = vor.u32 %v3630_v8, %v3140_v50  ;;  %v4658_v61 = vor.u32 %v3628_v17, %v3132_v2  ;;  %1470 = vmatpush.bf16.msra.mxu2 %v4667_v22  ;;  %v3116_v8 = vld [vmem:[%s6029_s2 + $0x10] sm:$0xf]  ;;  %v3648_v2 = vld [vmem:[%s6029_s2 + $0xd4] sm:$0xf0] }
 0x16a   :  { %v643_v23 = vpack.c.bf16 %v631_v54, %v631_v54  ;;  %v718_v36 = vpop.f32.mrf.mxu1  ;;  %1276 = vmatpush.bf16.msra.mxu1 %v4642_v48  ;;  %v3012_v54 = vld [vmem:[%s6027_s0 + $0x2f0] sm:$0xff]  ;;  %v4719_v49 = vor.u32 %v3624_v39, %v3116_v8  ;;  %v4736_v17 = vor.u32 %v3648_v2, %v3084_v10 }
 0x16b   :  { %6081 = vst [vmem:[#allocation12_spill] sm:$0xff] %v4619_v60 }
 0x16c   :  { %v1869_v14 = vunpack.c.l.b16 %v643_v23  ;;  %v757_v40 = vpop.f32.mrf.mxu3  ;;  %1439 = vmatpush.bf16.msra.mxu0 %v4588_v13  ;;  %6083 = vst [vmem:[#allocation14_spill] sm:$0xff] %v4658_v61  ;;  %v3625_v23 = vld [vmem:[%s6029_s2 + $0x24] sm:$0xf]  ;;  %v3308_v13 = vld [vmem:[%s6029_s2 + $0x1d0] sm:$0xf] }
 0x16d   :  { %v4595_v33 = vadd.f32 %v757_v40, %v718_v36  ;;  %938 = vmatmul.bf16.gmra.mxu1 %v4575_v41  ;;  %v4701_v40 = vor.u32 %v3625_v23, %v3126_v7  ;;  %6087 = vst [vmem:[#allocation18_spill] sm:$0xff] %v4719_v49 }
 0x16e   :  { %v4617_v44 = vpack.c.b16 %v1869_v14, %v1868_v26  ;;  %v3647_v26 = vld [vmem:[%s6029_s2 + $0xd4] sm:$0xf]  ;;  %v3086_v14 = vld [vmem:[%s6029_s2 + $0xd8] sm:$0xf0]  ;;  %1277 = vmatpush.bf16.msra.mxu1 %v4736_v17 }
 0x16f   :  { %v827_v45 = vpop.f32.mrf.mxu2  ;;  %6086 = vst [vmem:[#allocation17_spill] sm:$0xff] %v4701_v40  ;;  %v4705_v9 = vor.u32 %v3647_v26, %v3086_v14  ;;  %1471 = vmatpush.bf16.msra.mxu2 %v4701_v40  ;;  %v3316_v40 = vld [vmem:[%s6029_s2 + $0x1e0] sm:$0xf] }
 0x170   :  { %6080 = vst [vmem:[#allocation11_spill] sm:$0xff] %v4617_v44  ;;  %v4624_v37 = vadd.f32 %v827_v45, %v788_v29  ;;  %v791_v5 = vpop.f32.mrf.mxu0  ;;  %1440 = vmatpush.bf16.msra.mxu0 %v4619_v60  ;;  %v3626_v29 = vld [vmem:[%s6029_s2 + $0x24] sm:$0xf0]  ;;  %v3623_v45 = vld [vmem:[%s6029_s2 + $0x14] sm:$0xf] }
 0x171   :  { %1306 = vmatpush.bf16.msra.mxu3 %v4705_v9  ;;  %v3641_v44 = vld [vmem:[%s6029_s2 + $0xa4] sm:$0xf]  ;;  %v3640_v60 = vld [vmem:[%s6029_s2 + $0x94] sm:$0xf0] }
 0x172   :  { %v4644_v53 = vpop.f32.mrf.mxu1 }
 0x173   :  { %1011 = vmatmul.bf16.gmra.mxu0 %v4482_v15  ;;  %v3010_v15 = vld [vmem:[%s6027_s0 + $0x2e0] sm:$0xff] }
 0x174   :  { %v4663_v3 = vpop.f32.mrf.mxu3  ;;  %3023 = vmatmul.msk.bf16.gmra.mxu2 %vm176_vm1, %v4471_v38  ;;  %1441 = vmatpush.bf16.msra.mxu0 %v4658_v61  ;;  %v3124_v38 = vld [vmem:[%s6029_s2 + $0x20] sm:$0xf]  ;;  %v890_v47 = vpack.c.bf16 %v3012_v54, %v3010_v15  ;;  %v3621_v15 = vld [vmem:[%s6029_s2 + $0x4] sm:$0xf]  ;;  %v3054_v61 = vld [vmem:[%s6029_s2 + $0x98] sm:$0xf0] }
 0x175   :  { %v4688_v24 = vor.u32 %v3626_v29, %v3124_v38  ;;  %v4747_v38 = vor.u32 %v3622_v52, %v3108_v19  ;;  %v3110_v29 = vld [vmem:[%s6029_s2 + $0x8] sm:$0xf0] }
 0x176   :  { %v4755_v7 = vor.u32 %v3621_v15, %v3110_v29  ;;  %v3643_v29 = vld [vmem:[%s6029_s2 + $0xb4] sm:$0xf] }
 0x177   :  { %v830_v36 = vpop.f32.mrf.mxu2  ;;  %6085 = vst [vmem:[#allocation16_spill] sm:$0xff] %v4688_v24 }
 0x178   :  { %v4693_v27 = vadd.f32 %v830_v36, %v791_v5  ;;  %v793_v42 = vpop.f32.mrf.mxu0  ;;  %1442 = vmatpush.bf16.msra.mxu0 %v4688_v24  ;;  %v3118_v5 = vld [vmem:[%s6029_s2 + $0x18] sm:$0xf0]  ;;  %6089 = vst [vmem:[#allocation20_spill] sm:$0xff] %v4747_v38 }
 0x179   :  { %3019 = vmatmul.msk.bf16.gmra.mxu3 %vm176_vm1, %v4669_v6  ;;  %v4724_v43 = vor.u32 %v3623_v45, %v3118_v5  ;;  %6090 = vst [vmem:[#allocation21_spill] sm:$0xff] %v4755_v7 }
 0x17a   :  { %v723_v50 = vpop.f32.mrf.mxu1 }
 0x17b   :  { %6088 = vst [vmem:[#allocation19_spill] sm:$0xff] %v4724_v43  ;;  %1472 = vmatpush.bf16.msra.mxu2 %v4724_v43 }
 0x17c   :  { %v762_v1 = vpop.f32.mrf.mxu3  ;;  %1443 = vmatpush.bf16.msra.mxu0 %v4719_v49 }
 0x17d   :  { %v4726_v25 = vadd.f32 %v762_v1, %v723_v50  ;;  %943 = vmatmul.bf16.gmra.mxu1 %v890_v47  ;;  %v3078_v50 = vld [vmem:[%s6029_s2 + $0xc8] sm:$0xf0] }
 0x17f   :  { %v832_v54 = vpop.f32.mrf.mxu2  ;;  %1473 = vmatpush.bf16.msra.mxu2 %v4755_v7 }
 0x180   :  { %v4752_v23 = vadd.f32 %v832_v54, %v793_v42  ;;  %v796_v36 = vpop.f32.mrf.mxu0  ;;  %1444 = vmatpush.bf16.msra.mxu0 %v4747_v38  ;;  %v3645_v42 = vld [vmem:[%s6029_s2 + $0xc4] sm:$0xf]  ;;  %v3062_v38 = vld [vmem:[%s6029_s2 + $0xa8] sm:$0xf0] }
 0x181   :  { %v4772_v8 = vor.u32 %v3645_v42, %v3078_v50 }
 0x182   :  { %v4758_v26 = vpop.f32.mrf.mxu1 }
 0x183   :  { %1016 = vmatmul.bf16.gmra.mxu0 %v4575_v41  ;;  %1307 = vmatpush.bf16.msra.mxu3 %v4772_v8  ;;  %v3646_v41 = vld [vmem:[%s6029_s2 + $0xc4] sm:$0xf0] }
 0x184   :  { %v4762_v14 = vpop.f32.mrf.mxu3  ;;  %3024 = vmatmul.msk.bf16.gmra.mxu2 %vm176_vm1, %v4538_v11  ;;  %v3076_v11 = vld [vmem:[%s6029_s2 + $0xc0] sm:$0xf] }
 0x185   :  { %v4783_v1 = vor.u32 %v3646_v41, %v3076_v11  ;;  %v3068_v11 = vld [vmem:[%s6029_s2 + $0xb0] sm:$0xf]  ;;  %v3644_v41 = vld [vmem:[%s6029_s2 + $0xb4] sm:$0xf0] }
 0x187   :  { %v835_v39 = vpop.f32.mrf.mxu2  ;;  %1278 = vmatpush.bf16.msra.mxu1 %v4783_v1 }
 0x188   :  { %v4774_v45 = vadd.f32 %v835_v39, %v796_v36  ;;  %v798_v5 = vpop.f32.mrf.mxu0  ;;  %v3070_v36 = vld [vmem:[%s6029_s2 + $0xb8] sm:$0xf0] }
 0x189   :  { %v4796_v42 = vor.u32 %v3643_v29, %v3070_v36 }
 0x18a   :  { %v728_v10 = vpop.f32.mrf.mxu1 }
 0x18b   :  { %1308 = vmatpush.bf16.msra.mxu3 %v4796_v42 }
 0x18c   :  { %v767_v2 = vpop.f32.mrf.mxu3 }
 0x18d   :  { %v4786_v19 = vadd.f32 %v767_v2, %v728_v10 }
 0x18f   :  { %v837_v52 = vpop.f32.mrf.mxu2 }
 0x190   :  { %v4788_v15 = vadd.f32 %v837_v52, %v798_v5  ;;  %v801_v54 = vpop.f32.mrf.mxu0 }
 0x192   :  { %v4798_v50 = vpop.f32.mrf.mxu1 }
 0x193   :  { %1021 = vmatmul.bf16.gmra.mxu0 %v890_v47  ;;  %v4813_v47 = vor.u32 %v3644_v41, %v3068_v11  ;;  %v4826_v11 = vor.u32 %v3641_v44, %v3062_v38  ;;  %v3060_v41 = vld [vmem:[%s6029_s2 + $0xa0] sm:$0xf] }
 0x194   :  { %v4801_v39 = vpop.f32.mrf.mxu3  ;;  %3025 = vmatmul.msk.bf16.gmra.mxu2 %vm176_vm1, %v4669_v6 }
 0x195   :  { %1279 = vmatpush.bf16.msra.mxu1 %v4813_v47  ;;  %1309 = vmatpush.bf16.msra.mxu3 %v4826_v11 }
 0x197   :  { %v840_v5 = vpop.f32.mrf.mxu2 }
 0x198   :  { %v4811_v10 = vadd.f32 %v840_v5, %v801_v54  ;;  %v803_v2 = vpop.f32.mrf.mxu0 }
 0x19a   :  { %v733_v52 = vpop.f32.mrf.mxu1 }
 0x19c   :  { %v772_v29 = vpop.f32.mrf.mxu3 }
 0x19d   :  { %v4816_v36 = vadd.f32 %v772_v29, %v733_v52  ;;  %v3642_v52 = vld [vmem:[%s6029_s2 + $0xa4] sm:$0xf0] }
 0x19e   :  { %v4834_v29 = vor.u32 %v3642_v52, %v3060_v41  ;;  %v3324_v52 = vld [vmem:[%s6029_s2 + $0x1f0] sm:$0xf] }
 0x19f   :  { %v842_v6 = vpop.f32.mrf.mxu2 }
 0x1a0   :  { %v4824_v54 = vadd.f32 %v842_v6, %v803_v2  ;;  %v806_v5 = vpop.f32.mrf.mxu0  ;;  %1280 = vmatpush.bf16.msra.mxu1 %v4834_v29 }
 0x1a2   :  { %v4836_v7 = vpop.f32.mrf.mxu1 }
 0x1a3   :  { %6091 = vst [vmem:[#allocation22_spill] sm:$0xff] %v4836_v7  ;;  %1445 = vmatmul.bf16.vlgmr.msra.gmra.mxu0 %v4341_v63  ;;  %v3684_v7 = vld [vmem:[%s6029_s2 + $0x1f4] sm:$0xf0] }
 0x1a4   :  { %v4841_v44 = vpop.f32.mrf.mxu3  ;;  %1474 = vmatmul.bf16.vlgmr.msra.gmra.mxu2 %v4341_v63  ;;  %v3683_v63 = vld [vmem:[%s6029_s2 + $0x1f4] sm:$0xf] }
 0x1a5   :  { %6092 = vst [vmem:[#allocation23_spill] sm:$0xff] %v4841_v44  ;;  %v3326_v44 = vld [vmem:[%s6029_s2 + $0x1f8] sm:$0xf0] }
 0x1a6   :  { %v4868_v24 = vor.u32 %v3683_v63, %v3326_v44  ;;  %v3318_v63 = vld [vmem:[%s6029_s2 + $0x1e8] sm:$0xf0] }
 0x1a7   :  { %v845_v38 = vpop.f32.mrf.mxu2 }
 0x1a8   :  { %v4844_v2 = vadd.f32 %v845_v38, %v806_v5  ;;  %v4846_v6 = vpop.f32.mrf.mxu0  ;;  %v4863_v38 = vor.u32 %v3684_v7, %v3324_v52  ;;  %6096 = vst [vmem:[#allocation27_spill] sm:$0xff] %v4868_v24  ;;  %1804 = vmatpush.bf16.msrb.mxu2 %v4868_v24  ;;  %v3682_v7 = vld [vmem:[%s6029_s2 + $0x1e4] sm:$0xf0]  ;;  %v3681_v52 = vld [vmem:[%s6029_s2 + $0x1e4] sm:$0xf] }
 0x1a9   :  { %6093 = vst [vmem:[#allocation24_spill] sm:$0xff] %v4846_v6  ;;  %v4884_v44 = vor.u32 %v3682_v7, %v3316_v40  ;;  %v3639_v24 = vld [vmem:[%s6029_s2 + $0x94] sm:$0xf]  ;;  %v3052_v40 = vld [vmem:[%s6029_s2 + $0x90] sm:$0xf]  ;;  %v4901_v7 = vor.u32 %v3681_v52, %v3318_v63 }
 0x1aa   :  { %v4848_v49 = vpop.f32.mrf.mxu1  ;;  %6095 = vst [vmem:[#allocation26_spill] sm:$0xff] %v4863_v38  ;;  %1775 = vmatpush.bf16.msrb.mxu0 %v4863_v38  ;;  %v4903_v22 = vor.u32 %v3639_v24, %v3054_v61  ;;  %v4909_v62 = vor.u32 %v3640_v60, %v3052_v40  ;;  %v3680_v52 = vld [vmem:[%s6029_s2 + $0x1d4] sm:$0xf0]  ;;  %v3679_v61 = vld [vmem:[%s6029_s2 + $0x1d4] sm:$0xf] }
 0x1ab   :  { %6097 = vst [vmem:[#allocation28_spill] sm:$0xff] %v4884_v44  ;;  %v4922_v63 = vor.u32 %v3680_v52, %v3308_v13  ;;  %v3310_v60 = vld [vmem:[%s6029_s2 + $0x1d8] sm:$0xf0]  ;;  %v3637_v13 = vld [vmem:[%s6029_s2 + $0x84] sm:$0xf] }
 0x1ac   :  { %v4850_v41 = vpop.f32.mrf.mxu3  ;;  %6098 = vst [vmem:[#allocation29_spill] sm:$0xff] %v4901_v7  ;;  %1805 = vmatpush.bf16.msrb.mxu2 %v4901_v7  ;;  %1310 = vmatpush.bf16.msra.mxu3 %v4903_v22  ;;  %v4932_v7 = vor.u32 %v3679_v61, %v3310_v60  ;;  %v3046_v52 = vld [vmem:[%s6029_s2 + $0x88] sm:$0xf0]  ;;  %v3300_v60 = vld [vmem:[%s6029_s2 + $0x1c0] sm:$0xf] }
 0x1ad   :  { %6099 = vst [vmem:[#allocation30_spill] sm:$0xff] %v4922_v63  ;;  %1281 = vmatpush.bf16.msra.mxu1 %v4909_v62  ;;  %v4947_v61 = vor.u32 %v3637_v13, %v3046_v52  ;;  %v3677_v13 = vld [vmem:[%s6029_s2 + $0x1c4] sm:$0xf]  ;;  %v3302_v52 = vld [vmem:[%s6029_s2 + $0x1c8] sm:$0xf0] }
 0x1ae   :  { %1776 = vmatpush.bf16.msrb.mxu0 %v4884_v44  ;;  %6102 = vst [vmem:[#allocation33_spill] sm:$0xff] %v4932_v7  ;;  %v4971_v35 = vor.u32 %v3677_v13, %v3302_v52  ;;  %v3294_v52 = vld [vmem:[%s6029_s2 + $0x1b8] sm:$0xf0] }
 0x1af   :  { %v4861_v5 = vpop.f32.mrf.mxu2 }
 0x1b0   :  { %6094 = vst [vmem:[#allocation25_spill] sm:$0xff] %v4861_v5  ;;  %v811_v43 = vpop.f32.mrf.mxu0  ;;  %1806 = vmatpush.bf16.msrb.mxu2 %v4932_v7  ;;  %1311 = vmatpush.bf16.msra.mxu3 %v4947_v61 }
 0x1b1   :  { %6104 = vst [vmem:[#allocation35_spill] sm:$0xff] %v4971_v35 }
 0x1b2   :  { %v4871_v55 = vpop.f32.mrf.mxu1  ;;  %1777 = vmatpush.bf16.msrb.mxu0 %v4922_v63 }
 0x1b3   :  { %1450 = vmatmul.bf16.gmra.mxu0 %v4376_v34 }
 0x1b4   :  { %v4889_v38 = vpop.f32.mrf.mxu3  ;;  %1479 = vmatmul.bf16.gmra.mxu2 %v4376_v34  ;;  %v3284_v34 = vld [vmem:[%s6029_s2 + $0x1a0] sm:$0xf] }
 0x1b5   :  { %1807 = vmatpush.bf16.msrb.mxu2 %v4971_v35  ;;  %v959_v35 = vadd.f32 %v4850_v41, %v4848_v49  ;;  %v3278_v49 = vld [vmem:[%s6029_s2 + $0x198] sm:$0xf0] }
 0x1b7   :  { %v850_v24 = vpop.f32.mrf.mxu2 }
 0x1b8   :  { %v4927_v40 = vadd.f32 %v850_v24, %v811_v43  ;;  %v4929_v44 = vpop.f32.mrf.mxu0  ;;  %v3044_v43 = vld [vmem:[%s6029_s2 + $0x80] sm:$0xf]  ;;  %v3638_v24 = vld [vmem:[%s6029_s2 + $0x84] sm:$0xf0] }
 0x1b9   :  { %6101 = vst [vmem:[#allocation32_spill] sm:$0xff] %v4929_v44  ;;  %v3678_v44 = vld [vmem:[%s6029_s2 + $0x1c4] sm:$0xf0]  ;;  %v4960_v7 = vor.u32 %v3638_v24, %v3044_v43  ;;  %v3676_v43 = vld [vmem:[%s6029_s2 + $0x1b4] sm:$0xf0] }
 0x1ba   :  { %6100 = vst [vmem:[#allocation31_spill] sm:$0xff] %v4927_v40  ;;  %v4935_v51 = vpop.f32.mrf.mxu1  ;;  %v4962_v20 = vor.u32 %v3678_v44, %v3300_v60  ;;  %v3292_v44 = vld [vmem:[%s6029_s2 + $0x1b0] sm:$0xf]  ;;  %v3675_v24 = vld [vmem:[%s6029_s2 + $0x1b4] sm:$0xf]  ;;  %v1066_v40 = vmax.f32 %v4450_v30, %v959_v35 }
 0x1bb   :  { %1282 = vmatpush.bf16.msra.mxu1 %v4960_v7  ;;  %v4987_v13 = vor.u32 %v3676_v43, %v3292_v44  ;;  %v4992_v58 = vor.u32 %v3675_v24, %v3294_v52  ;;  %v3674_v44 = vld [vmem:[%s6029_s2 + $0x1a4] sm:$0xf0]  ;;  %v3673_v43 = vld [vmem:[%s6029_s2 + $0x1a4] sm:$0xf]  ;;  %v3286_v52 = vld [vmem:[%s6029_s2 + $0x1a8] sm:$0xf0] }
 0x1bc   :  { %v4958_v63 = vpop.f32.mrf.mxu3  ;;  %6103 = vst [vmem:[#allocation34_spill] sm:$0xff] %v4962_v20  ;;  %1778 = vmatpush.bf16.msrb.mxu0 %v4962_v20  ;;  %v5008_v24 = vor.u32 %v3674_v44, %v3284_v34  ;;  %v3276_v34 = vld [vmem:[%s6029_s2 + $0x190] sm:$0xf]  ;;  %v3672_v44 = vld [vmem:[%s6029_s2 + $0x194] sm:$0xf0] }
 0x1bd   :  { %6106 = vst [vmem:[#allocation37_spill] sm:$0xff] %v4987_v13  ;;  %1808 = vmatpush.bf16.msrb.mxu2 %v4992_v58 }
 0x1be   :  { %6107 = vst [vmem:[#allocation38_spill] sm:$0xff] %v4992_v58  ;;  %v3671_v58 = vld [vmem:[%s6029_s2 + $0x194] sm:$0xf] }
 0x1bf   :  { %v4984_v60 = vpop.f32.mrf.mxu2  ;;  %6108 = vst [vmem:[#allocation39_spill] sm:$0xff] %v5008_v24 }
 0x1c0   :  { %6105 = vst [vmem:[#allocation36_spill] sm:$0xff] %v4984_v60  ;;  %v997_v20 = vpop.f32.mrf.mxu0  ;;  %1779 = vmatpush.bf16.msrb.mxu0 %v4987_v13  ;;  %v5016_v13 = vor.u32 %v3673_v43, %v3286_v52  ;;  %v5031_v43 = vor.u32 %v3672_v44, %v3276_v34  ;;  %v3268_v34 = vld [vmem:[%s6029_s2 + $0x180] sm:$0xf]  ;;  %v3670_v44 = vld [vmem:[%s6029_s2 + $0x184] sm:$0xf0] }
 0x1c1   :  { %v5053_v30 = vor.u32 %v3670_v44, %v3268_v34  ;;  %v3246_v34 = vld [vmem:[%s6029_s2 + $0x178] sm:$0xf0]  ;;  %v3244_v44 = vld [vmem:[%s6029_s2 + $0x170] sm:$0xf] }
 0x1c2   :  { %v4994_v12 = vpop.f32.mrf.mxu1  ;;  %1809 = vmatpush.bf16.msrb.mxu2 %v5016_v13  ;;  %6109 = vst [vmem:[#allocation40_spill] sm:$0xff] %v5031_v43 }
 0x1c3   :  { %1455 = vmatmul.bf16.gmra.mxu0 %v4414_v18 }
 0x1c4   :  { %v5013_v60 = vpop.f32.mrf.mxu3  ;;  %1484 = vmatmul.bf16.gmra.mxu2 %v4414_v18  ;;  %1780 = vmatpush.bf16.msrb.mxu0 %v5008_v24  ;;  %v5036_v24 = vor.u32 %v3671_v58, %v3278_v49  ;;  %v3270_v58 = vld [vmem:[%s6029_s2 + $0x188] sm:$0xf0]  ;;  %v961_v49 = vadd.f32 %v4889_v38, %v4871_v55  ;;  %v3668_v55 = vld [vmem:[%s6029_s2 + $0x174] sm:$0xf0]  ;;  %v750_v38 = vadd.f32 %v4467_v31, %v4456_v28  ;;  %v3665_v31 = vld [vmem:[%s6029_s2 + $0x164] sm:$0xf] }
 0x1c6   :  { %6110 = vst [vmem:[#allocation41_spill] sm:$0xff] %v5036_v24  ;;  %1810 = vmatpush.bf16.msrb.mxu2 %v5036_v24  ;;  %v5084_v24 = vor.u32 %v3668_v55, %v3244_v44  ;;  %v964_v44 = vadd.f32 %v4958_v63, %v4935_v51 }
 0x1c7   :  { %v1036_v18 = vpop.f32.mrf.mxu2 }
 0x1c8   :  { %v1037_v41 = vadd.f32 %v1036_v18, %v997_v20  ;;  %v999_v52 = vpop.f32.mrf.mxu0  ;;  %1781 = vmatpush.bf16.msrb.mxu0 %v5031_v43  ;;  %v3669_v18 = vld [vmem:[%s6029_s2 + $0x184] sm:$0xf]  ;;  %1598 = vmatpush.bf16.msrb.mxu1 %v5084_v24  ;;  %v1070_v51 = vmax.f32 %v4488_v56, %v964_v44  ;;  %v3663_v56 = vld [vmem:[%s6029_s2 + $0x154] sm:$0xf] }
 0x1c9   :  { %v5060_v35 = vor.u32 %v3669_v18, %v3270_v58 }
 0x1ca   :  { %v1067_v5 = vmax.f32 %v4568_v59, %v1037_v41  ;;  %v5040_v6 = vpop.f32.mrf.mxu1  ;;  %v3667_v41 = vld [vmem:[%s6029_s2 + $0x174] sm:$0xf] }
 0x1cb   :  { %v5075_v18 = vor.u32 %v3667_v41, %v3246_v34  ;;  %1811 = vmatpush.bf16.msrb.mxu2 %v5060_v35 }
 0x1cc   :  { %v1090_v20 = vmax.f32 %v1066_v40, %v1067_v5  ;;  %v5058_v59 = vpop.f32.mrf.mxu3  ;;  %1782 = vmatpush.bf16.msrb.mxu0 %v5053_v30 }
 0x1cd   :  { %1627 = vmatpush.bf16.msrb.mxu3 %v5075_v18 }
 0x1ce   :  { %v1102_v5 = vadd.f32 %v4308_v21, %v1090_v20  ;;  %v1068_v21 = vmax.f32 %v750_v38, %v961_v49  ;;  %v3666_v49 = vld [vmem:[%s6029_s2 + $0x164] sm:$0xf0] }
 0x1cf   :  { %v1038_v40 = vpop.f32.mrf.mxu2  ;;  %2055 = vmatpush.bf16.msra.mxu2 %v4503_v46  ;;  %v3238_v46 = vld [vmem:[%s6029_s2 + $0x168] sm:$0xf0] }
 0x1d0   :  { %2026 = vmatpush.bf16.msra.mxu0 %v4552_v0  ;;  %v1039_v58 = vadd.f32 %v1038_v40, %v999_v52  ;;  %v1002_v43 = vpop.f32.mrf.mxu0  ;;  %v1114_v34 = vmax.f32 %v1102_v5, 0.0  ;;  %v5106_v52 = vor.u32 %v3665_v31, %v3238_v46  ;;  %v5117_v5 = vld [vmem:[%s6028_s5] ss:$0 sm:$0xff] }
 0x1d2   :  { %v1069_v20 = vmax.f32 %v4624_v37, %v1039_v58  ;;  %v5089_v41 = vpop.f32.mrf.mxu1  ;;  %v3236_v37 = vld [vmem:[%s6029_s2 + $0x160] sm:$0xf]  ;;  %1628 = vmatpush.bf16.msrb.mxu3 %v5106_v52  ;;  %v1126_v38 = vpack.c.bf16 %v1114_v34, %v1114_v34 }
 0x1d3   :  { %1460 = vmatmul.bf16.gmra.mxu0 %v4452_v57  ;;  %2056 = vmatpush.bf16.msra.mxu2 %v4605_v16  ;;  %v5120_v55 = vor.u32 %v3666_v49, %v3236_v37 }
 0x1d4   :  { %v1091_v0 = vmax.f32 %v1068_v21, %v1069_v20  ;;  %v5093_v28 = vpop.f32.mrf.mxu3  ;;  %1489 = vmatmul.bf16.gmra.mxu2 %v4452_v57  ;;  %2027 = vmatpush.bf16.msra.mxu0 %v4642_v48  ;;  %v1179_v31 = vunpack.c.l.b16 %v1126_v38 }
 0x1d5   :  { %1599 = vmatpush.bf16.msrb.mxu1 %v5120_v55 }
 0x1d6   :  { %v1103_v40 = vadd.f32 %v5117_v5, %v1091_v0 }
 0x1d7   :  { %v1041_v48 = vpop.f32.mrf.mxu2  ;;  %2057 = vmatpush.bf16.msra.mxu2 %v4705_v9 }
 0x1d8   :  { %v1115_v58 = vmax.f32 %v1103_v40, 0.0  ;;  %v1042_v21 = vadd.f32 %v1041_v48, %v1002_v43  ;;  %v1004_v20 = vpop.f32.mrf.mxu0  ;;  %2028 = vmatpush.bf16.msra.mxu0 %v4736_v17  ;;  %v966_v17 = vadd.f32 %v5013_v60, %v4994_v12  ;;  %v3228_v43 = vld [vmem:[%s6029_s2 + $0x150] sm:$0xf]  ;;  %v3664_v12 = vld [vmem:[%s6029_s2 + $0x154] sm:$0xf0]  ;;  %v755_v60 = vadd.f32 %v4531_v32, %v4512_v4 }
 0x1d9   :  { %v5157_v48 = vor.u32 %v3664_v12, %v3228_v43 }
 0x1da   :  { %v1127_v16 = vpack.c.bf16 %v1115_v58, %v1115_v58  ;;  %v1071_v63 = vmax.f32 %v4693_v27, %v1042_v21  ;;  %v5128_v0 = vpop.f32.mrf.mxu1  ;;  %v3230_v27 = vld [vmem:[%s6029_s2 + $0x158] sm:$0xf0]  ;;  %v1072_v38 = vmax.f32 %v755_v60, %v966_v17 }
 0x1db   :  { %2058 = vmatpush.bf16.msra.mxu2 %v4772_v8  ;;  %v5148_v49 = vor.u32 %v3663_v56, %v3230_v27  ;;  %1600 = vmatpush.bf16.msrb.mxu1 %v5157_v48 }
 0x1dc   :  { %v1180_v46 = vunpack.c.l.b16 %v1127_v16  ;;  %v1092_v37 = vmax.f32 %v1070_v51, %v1071_v63  ;;  %v5130_v34 = vpop.f32.mrf.mxu3  ;;  %2029 = vmatpush.bf16.msra.mxu0 %v4783_v1  ;;  %v3661_v51 = vld [vmem:[%s6029_s2 + $0x144] sm:$0xf]  ;;  %v969_v63 = vadd.f32 %v5058_v59, %v5040_v6 }
 0x1dd   :  { %1629 = vmatpush.bf16.msrb.mxu3 %v5148_v49 }
 0x1de   :  { %v5136_v9 = vpack.c.b16 %v1180_v46, %v1179_v31  ;;  %v1104_v1 = vadd.f32 %v5117_v5, %v1092_v37 }
 0x1df   :  { %v1043_v8 = vpop.f32.mrf.mxu2  ;;  %2059 = vmatpush.bf16.msra.mxu2 %v4796_v42  ;;  %v3662_v42 = vld [vmem:[%s6029_s2 + $0x144] sm:$0xf0] }
 0x1e0   :  { %v1044_v44 = vadd.f32 %v1043_v8, %v1004_v20  ;;  %1283 = vmatmul.bf16.vlgmr.msra.gmra.mxu1 %v5136_v9  ;;  %1312 = vmatmul.bf16.vlgmr.msra.gmra.mxu3 %v5136_v9  ;;  %v1007_v40 = vpop.f32.mrf.mxu0  ;;  %v1116_v4 = vmax.f32 %v1104_v1, 0.0 }
 0x1e1   :  { %2030 = vmatpush.bf16.msra.mxu0 %v4813_v47  ;;  %v3222_v47 = vld [vmem:[%s6029_s2 + $0x148] sm:$0xf0] }
 0x1e2   :  { %v1073_v58 = vmax.f32 %v4752_v23, %v1044_v44  ;;  %v5162_v21 = vpop.f32.mrf.mxu1  ;;  %v3220_v23 = vld [vmem:[%s6029_s2 + $0x140] sm:$0xf]  ;;  %v5177_v16 = vor.u32 %v3661_v51, %v3222_v47  ;;  %v1128_v17 = vpack.c.bf16 %v1116_v4, %v1116_v4  ;;  %v971_v44 = vadd.f32 %v5093_v28, %v5089_v41  ;;  %v3657_v51 = vld [vmem:[%s6029_s2 + $0x124] sm:$0xf]  ;;  %v3206_v47 = vld [vmem:[%s6029_s2 + $0x128] sm:$0xf0] }
 0x1e3   :  { %v5186_v46 = vor.u32 %v3662_v42, %v3220_v23  ;;  %2060 = vmatpush.bf16.msra.mxu2 %v4826_v11  ;;  %v3204_v23 = vld [vmem:[%s6029_s2 + $0x120] sm:$0xf] }
 0x1e4   :  { %v1093_v32 = vmax.f32 %v1072_v38, %v1073_v58  ;;  %v5166_v20 = vpop.f32.mrf.mxu3  ;;  %1630 = vmatpush.bf16.msrb.mxu3 %v5177_v16  ;;  %v1181_v11 = vunpack.c.l.b16 %v1128_v17 }
 0x1e5   :  { %2031 = vmatpush.bf16.msra.mxu0 %v4834_v29  ;;  %1601 = vmatpush.bf16.msrb.mxu1 %v5186_v46  ;;  %v1074_v29 = vmax.f32 %v4595_v33, %v969_v63  ;;  %v3659_v33 = vld [vmem:[%s6029_s2 + $0x134] sm:$0xf] }
 0x1e6   :  { %v1105_v31 = vadd.f32 %v5117_v5, %v1093_v32 }
 0x1e7   :  { %v1046_v37 = vpop.f32.mrf.mxu2  ;;  %2061 = vmatpush.bf16.msra.mxu2 %v4903_v22  ;;  %v3214_v22 = vld [vmem:[%s6029_s2 + $0x138] sm:$0xf0] }
 0x1e8   :  { %v1117_v56 = vmax.f32 %v1105_v31, 0.0  ;;  %v1047_v27 = vadd.f32 %v1046_v37, %v1007_v40  ;;  %v1009_v43 = vpop.f32.mrf.mxu0  ;;  %v5216_v28 = vor.u32 %v3659_v33, %v3214_v22  ;;  %v3660_v40 = vld [vmem:[%s6029_s2 + $0x134] sm:$0xf0]  ;;  %v5246_v31 = vor.u32 %v3657_v51, %v3206_v47  ;;  %v3658_v37 = vld [vmem:[%s6029_s2 + $0x124] sm:$0xf0] }
 0x1e9   :  { %2032 = vmatpush.bf16.msra.mxu0 %v4909_v62  ;;  %v5251_v17 = vor.u32 %v3658_v37, %v3204_v23 }
 0x1ea   :  { %v1129_v6 = vpack.c.bf16 %v1117_v56, %v1117_v56  ;;  %v1075_v59 = vmax.f32 %v4774_v45, %v1047_v27  ;;  %v5194_v1 = vpop.f32.mrf.mxu1  ;;  %v3212_v45 = vld [vmem:[%s6029_s2 + $0x130] sm:$0xf]  ;;  %1631 = vmatpush.bf16.msrb.mxu3 %v5216_v28  ;;  %v974_v56 = vadd.f32 %v5130_v34, %v5128_v0 }
 0x1eb   :  { %2062 = vmatpush.bf16.msra.mxu2 %v4947_v61  ;;  %v5224_v32 = vor.u32 %v3660_v40, %v3212_v45  ;;  %v3653_v45 = vld [vmem:[%s6029_s2 + $0x104] sm:$0xf] }
 0x1ec   :  { %v1182_v8 = vunpack.c.l.b16 %v1129_v6  ;;  %v1094_v12 = vmax.f32 %v1074_v29, %v1075_v59  ;;  %v5197_v60 = vpop.f32.mrf.mxu3  ;;  %v3196_v29 = vld [vmem:[%s6029_s2 + $0x110] sm:$0xf] }
 0x1ed   :  { %2033 = vmatpush.bf16.msra.mxu0 %v4960_v7  ;;  %v760_v7 = vadd.f32 %v4663_v3, %v4644_v53  ;;  %1602 = vmatpush.bf16.msrb.mxu1 %v5224_v32 }
 0x1ee   :  { %v5202_v62 = vpack.c.b16 %v1182_v8, %v1181_v11  ;;  %v1106_v38 = vadd.f32 %v5117_v5, %v1094_v12  ;;  %1632 = vmatpush.bf16.msrb.mxu3 %v5246_v31  ;;  %v3656_v8 = vld [vmem:[%s6029_s2 + $0x114] sm:$0xf0] }
 0x1ef   :  { %v1048_v41 = vpop.f32.mrf.mxu2  ;;  %v1076_v53 = vmax.f32 %v760_v7, %v971_v44  ;;  %v5274_v12 = vor.u32 %v3656_v8, %v3196_v29  ;;  %v1078_v44 = vmax.f32 %v4726_v25, %v974_v56  ;;  %v3188_v25 = vld [vmem:[%s6029_s2 + $0x100] sm:$0xf]  ;;  %v3404_v56 = vld [vmem:[%s6029_s2 + $0x270] sm:$0xf]  ;;  %v3398_v29 = vld [vmem:[%s6029_s2 + $0x268] sm:$0xf0] }
 0x1f0   :  { %v1049_v58 = vadd.f32 %v1048_v41, %v1009_v43  ;;  %1288 = vmatmul.bf16.gmra.mxu1 %v5202_v62  ;;  %1317 = vmatmul.bf16.gmra.mxu3 %v5202_v62  ;;  %v1012_v4 = vpop.f32.mrf.mxu0  ;;  %v3198_v43 = vld [vmem:[%s6029_s2 + $0x118] sm:$0xf0] }
 0x1f1   :  { %1783 = vmatmul.bf16.vlgmr.msrb.gmra.mxu0 %v5202_v62  ;;  %1812 = vmatmul.bf16.vlgmr.msrb.gmra.mxu2 %v5202_v62 }
 0x1f2   :  { %v1077_v3 = vmax.f32 %v4788_v15, %v1049_v58  ;;  %v5229_v61 = vpop.f32.mrf.mxu1  ;;  %2142 = vmatpush.bf16.msrb.mxu0 %v5084_v24  ;;  %2171 = vmatpush.bf16.msrb.mxu2 %v5075_v18  ;;  %v1118_v15 = vmax.f32 %v1106_v38, 0.0  ;;  %v3655_v18 = vld [vmem:[%s6029_s2 + $0x114] sm:$0xf]  ;;  %v3654_v58 = vld [vmem:[%s6029_s2 + $0x104] sm:$0xf0] }
 0x1f3   :  { %1603 = vmatpush.bf16.msrb.mxu1 %v5251_v17  ;;  %v5268_v11 = vor.u32 %v3655_v18, %v3198_v43  ;;  %v3697_v43 = vld [vmem:[%s6029_s2 + $0x264] sm:$0xf] }
 0x1f4   :  { %v1095_v42 = vmax.f32 %v1076_v53, %v1077_v3  ;;  %v5244_v63 = vpop.f32.mrf.mxu3  ;;  %v1130_v0 = vpack.c.bf16 %v1118_v15, %v1118_v15  ;;  %v3189_v53 = vor.u32 %v3654_v58, %v3188_v25  ;;  %v976_v3 = vadd.f32 %v5166_v20, %v5162_v21 }
 0x1f5   :  { %1633 = vmatpush.bf16.msrb.mxu3 %v5268_v11 }
 0x1f6   :  { %v1107_v27 = vadd.f32 %v5117_v5, %v1095_v42  ;;  %2143 = vmatpush.bf16.msrb.mxu0 %v5120_v55  ;;  %2172 = vmatpush.bf16.msrb.mxu2 %v5106_v52  ;;  %v3190_v52 = vld [vmem:[%s6029_s2 + $0x108] sm:$0xf0] }
 0x1f7   :  { %v1051_v24 = vpop.f32.mrf.mxu2  ;;  %1604 = vmatpush.bf16.msrb.mxu1 %v5274_v12  ;;  %v5290_v38 = vor.u32 %v3653_v45, %v3190_v52  ;;  %v981_v52 = vadd.f32 %v5244_v63, %v5229_v61  ;;  %v3695_v63 = vld [vmem:[%s6029_s2 + $0x254] sm:$0xf] }
 0x1f8   :  { %v1119_v34 = vmax.f32 %v1107_v27, 0.0  ;;  %v1052_v6 = vadd.f32 %v1051_v24, %v1012_v4  ;;  %v1014_v59 = vpop.f32.mrf.mxu0 }
 0x1f9   :  { %1634 = vmatpush.bf16.msrb.mxu3 %v5290_v38 }
 0x1fa   :  { %v1131_v33 = vpack.c.bf16 %v1119_v34, %v1119_v34  ;;  %v1079_v22 = vmax.f32 %v4811_v10, %v1052_v6  ;;  %v944_v55 = vpop.f32.mrf.mxu1  ;;  %2144 = vmatpush.bf16.msrb.mxu0 %v5157_v48  ;;  %v1183_v10 = vunpack.c.l.b16 %v1130_v0  ;;  %2173 = vmatpush.bf16.msrb.mxu2 %v5148_v49  ;;  %v765_v49 = vadd.f32 %v4762_v14, %v4758_v26  ;;  %v3699_v26 = vld [vmem:[%s6029_s2 + $0x274] sm:$0xf]  ;;  %v3406_v14 = vld [vmem:[%s6029_s2 + $0x278] sm:$0xf0]  ;;  %v3396_v6 = vld [vmem:[%s6029_s2 + $0x260] sm:$0xf] }
 0x1fb   :  { %1605 = vmatpush.bf16.msrb.mxu1 %v3189_v53  ;;  %v5325_v27 = vor.u32 %v3699_v26, %v3406_v14  ;;  %v3380_v14 = vld [vmem:[%s6029_s2 + $0x240] sm:$0xf] }
 0x1fc   :  { %v1184_v7 = vunpack.c.l.b16 %v1131_v33  ;;  %v1096_v41 = vmax.f32 %v1078_v44, %v1079_v22  ;;  %v983_v40 = vpop.f32.mrf.mxu3  ;;  %v1080_v20 = vmax.f32 %v765_v49, %v976_v3 }
 0x1fd   :  { %v5296_v4 = vadd.f32 %v983_v40, %v944_v55  ;;  %1981 = vmatpush.bf16.msra.mxu3 %v5325_v27  ;;  %v3696_v40 = vld [vmem:[%s6029_s2 + $0x254] sm:$0xf0] }
 0x1fe   :  { %v5300_v51 = vpack.c.b16 %v1184_v7, %v1183_v10  ;;  %v1108_v48 = vadd.f32 %v5117_v5, %v1096_v41  ;;  %2145 = vmatpush.bf16.msrb.mxu0 %v5186_v46  ;;  %2174 = vmatpush.bf16.msrb.mxu2 %v5177_v16  ;;  %v979_v16 = vadd.f32 %v5197_v60, %v5194_v1  ;;  %v6112_v10 = vld [vmem:[#allocation25_spill] sm:$0xff] }
 0x1ff   :  { %v1086_v47 = vmax.f32 %v4816_v36, %v5296_v4  ;;  %v1053_v23 = vpop.f32.mrf.mxu2  ;;  %v3374_v36 = vld [vmem:[%s6029_s2 + $0x238] sm:$0xf0] }
 0x200   :  { %v1054_v15 = vadd.f32 %v1053_v23, %v1014_v59  ;;  %1293 = vmatmul.bf16.gmra.mxu1 %v5300_v51  ;;  %1322 = vmatmul.bf16.gmra.mxu3 %v5300_v51  ;;  %v1017_v21 = vpop.f32.mrf.mxu0  ;;  %v1120_v37 = vmax.f32 %v1108_v48, 0.0  ;;  %v3698_v59 = vld [vmem:[%s6029_s2 + $0x264] sm:$0xf0] }
 0x201   :  { %1788 = vmatmul.bf16.gmra.mxu0 %v5300_v51  ;;  %1817 = vmatmul.bf16.gmra.mxu2 %v5300_v51  ;;  %v5353_v8 = vor.u32 %v3698_v59, %v3396_v6  ;;  %v3691_v59 = vld [vmem:[%s6029_s2 + $0x234] sm:$0xf] }
 0x202   :  { %v1081_v42 = vmax.f32 %v4824_v54, %v1054_v15  ;;  %2146 = vmatpush.bf16.msrb.mxu0 %v5224_v32  ;;  %v3700_v54 = vld [vmem:[%s6029_s2 + $0x274] sm:$0xf0]  ;;  %2175 = vmatpush.bf16.msrb.mxu2 %v5216_v28  ;;  %v1132_v1 = vpack.c.bf16 %v1120_v37, %v1120_v37  ;;  %v5345_v28 = vor.u32 %v3697_v43, %v3398_v29 }
 0x203   :  { %v5333_v24 = vor.u32 %v3700_v54, %v3404_v56  ;;  %v3694_v56 = vld [vmem:[%s6029_s2 + $0x244] sm:$0xf0]  ;;  %v3377_v4 = vor.u32 %v3691_v59, %v3374_v36  ;;  %v6130_v59 = vld [vmem:[#allocation18_spill] sm:$0xff]  ;;  %v6131_v36 = vld [vmem:[#allocation21_spill] sm:$0xff] }
 0x204   :  { %v1097_v46 = vmax.f32 %v1080_v20, %v1081_v42  ;;  %1982 = vmatpush.bf16.msra.mxu3 %v5345_v28  ;;  %v1185_v22 = vunpack.c.l.b16 %v1132_v1  ;;  %v3382_v20 = vld [vmem:[%s6029_s2 + $0x248] sm:$0xf0]  ;;  %v5411_v54 = vor.u32 %v3694_v56, %v3380_v14  ;;  %v6123_v14 = vld [vmem:[#allocation12_spill] sm:$0xff] }
 0x205   :  { %1952 = vmatpush.bf16.msra.mxu1 %v5333_v24 }
 0x206   :  { %v1109_v32 = vadd.f32 %v5117_v5, %v1097_v46  ;;  %2147 = vmatpush.bf16.msrb.mxu0 %v5251_v17  ;;  %v1082_v17 = vmax.f32 %v4786_v19, %v979_v16  ;;  %2176 = vmatpush.bf16.msrb.mxu2 %v5246_v31  ;;  %v770_v19 = vadd.f32 %v4801_v39, %v4798_v50  ;;  %v6111_v31 = vld [vmem:[#allocation24_spill] sm:$0xff]  ;;  %v3390_v50 = vld [vmem:[%s6029_s2 + $0x258] sm:$0xf0] }
 0x207   :  { %v1056_v18 = vpop.f32.mrf.mxu2  ;;  %v5381_v39 = vor.u32 %v3695_v63, %v3390_v50  ;;  %v3356_v63 = vld [vmem:[%s6029_s2 + $0x210] sm:$0xf]  ;;  %v3688_v50 = vld [vmem:[%s6029_s2 + $0x214] sm:$0xf0] }
 0x208   :  { %v1121_v60 = vmax.f32 %v1109_v32, 0.0  ;;  %v1057_v0 = vadd.f32 %v1056_v18, %v1017_v21  ;;  %v1019_v34 = vpop.f32.mrf.mxu0  ;;  %v1084_v58 = vmax.f32 %v770_v19, %v981_v52  ;;  %v3693_v21 = vld [vmem:[%s6029_s2 + $0x244] sm:$0xf]  ;;  %v6113_v32 = vld [vmem:[#allocation31_spill] sm:$0xff]  ;;  %v3364_v52 = vld [vmem:[%s6029_s2 + $0x220] sm:$0xf] }
 0x209   :  { %1953 = vmatpush.bf16.msra.mxu1 %v5353_v8  ;;  %1983 = vmatpush.bf16.msra.mxu3 %v5381_v39  ;;  %v5403_v26 = vor.u32 %v3693_v21, %v3382_v20  ;;  %v3690_v19 = vld [vmem:[%s6029_s2 + $0x224] sm:$0xf0]  ;;  %v6120_v21 = vld [vmem:[#allocation10_spill] sm:$0xff] }
 0x20a   :  { %v1133_v44 = vpack.c.bf16 %v1121_v60, %v1121_v60  ;;  %v1083_v33 = vmax.f32 %v4844_v2, %v1057_v0  ;;  %2148 = vmatpush.bf16.msrb.mxu0 %v5274_v12  ;;  %2177 = vmatpush.bf16.msrb.mxu2 %v5268_v11  ;;  %v848_v12 = vadd.f32 %v6112_v10, %v6111_v31  ;;  %v3388_v11 = vld [vmem:[%s6029_s2 + $0x250] sm:$0xf] }
 0x20b   :  { %v5389_v3 = vor.u32 %v3696_v40, %v3388_v11  ;;  %v3357_v11 = vor.u32 %v3688_v50, %v3356_v63  ;;  %v6136_v63 = vld [vmem:[#allocation28_spill] sm:$0xff]  ;;  %v6137_v50 = vld [vmem:[#allocation33_spill] sm:$0xff] }
 0x20c   :  { %v1186_v55 = vunpack.c.l.b16 %v1133_v44  ;;  %v1098_v45 = vmax.f32 %v1082_v17, %v1083_v33  ;;  %v3692_v17 = vld [vmem:[%s6029_s2 + $0x234] sm:$0xf0] }
 0x20d   :  { %1954 = vmatpush.bf16.msra.mxu1 %v5389_v3  ;;  %1984 = vmatpush.bf16.msra.mxu3 %v5403_v26 }
 0x20e   :  { %v5363_v25 = vpack.c.b16 %v1186_v55, %v1185_v22  ;;  %2149 = vmatpush.bf16.msrb.mxu0 %v3189_v53  ;;  %v1110_v7 = vadd.f32 %v5117_v5, %v1098_v45  ;;  %2178 = vmatpush.bf16.msrb.mxu2 %v5290_v38  ;;  %v3689_v22 = vld [vmem:[%s6029_s2 + $0x224] sm:$0xf]  ;;  %v3366_v55 = vld [vmem:[%s6029_s2 + $0x228] sm:$0xf0] }
 0x20f   :  { %v1058_v2 = vpop.f32.mrf.mxu2  ;;  %v3369_v45 = vor.u32 %v3689_v22, %v3366_v55 }
 0x210   :  { %v1059_v41 = vadd.f32 %v1058_v2, %v1019_v34  ;;  %1298 = vmatmul.bf16.gmra.mxu1 %v5363_v25  ;;  %1327 = vmatmul.bf16.gmra.mxu3 %v5363_v25  ;;  %v1022_v61 = vpop.f32.mrf.mxu0  ;;  %v1122_v48 = vmax.f32 %v1110_v7, 0.0  ;;  %v6114_v34 = vld [vmem:[#allocation2_spill] sm:$0xff]  ;;  %v3365_v2 = vor.u32 %v3690_v19, %v3364_v52  ;;  %v3687_v7 = vld [vmem:[%s6029_s2 + $0x214] sm:$0xf]  ;;  %v6133_v52 = vld [vmem:[#allocation27_spill] sm:$0xff] }
 0x211   :  { %1793 = vmatmul.bf16.gmra.mxu0 %v5363_v25  ;;  %1822 = vmatmul.bf16.gmra.mxu2 %v5363_v25  ;;  %v6134_v19 = vld [vmem:[#allocation26_spill] sm:$0xff] }
 0x212   :  { %v1085_v53 = vmax.f32 %v848_v12, %v1059_v41  ;;  %v1134_v42 = vpack.c.bf16 %v1122_v48, %v1122_v48  ;;  %1955 = vmatpush.bf16.msra.mxu1 %v5411_v54  ;;  %1985 = vmatpush.bf16.msra.mxu3 %v3377_v4  ;;  %v6115_v12 = vld [vmem:[#allocation3_spill] sm:$0xff]  ;;  %v3358_v41 = vld [vmem:[%s6029_s2 + $0x218] sm:$0xf0] }
 0x214   :  { %v1099_v23 = vmax.f32 %v1084_v58, %v1085_v53  ;;  %v1691_v43 = vunpack.c.l.b16 %v1134_v42  ;;  %v3685_v58 = vld [vmem:[%s6029_s2 + $0x204] sm:$0xf]  ;;  %v3350_v53 = vld [vmem:[%s6029_s2 + $0x208] sm:$0xf0]  ;;  %v6121_v42 = vld [vmem:[#allocation9_spill] sm:$0xff] }
 0x215   :  { %v3353_v48 = vor.u32 %v3685_v58, %v3350_v53 }
 0x216   :  { %v1111_v49 = vadd.f32 %v5117_v5, %v1099_v23  ;;  %1986 = vmatpush.bf16.msra.mxu3 %v3369_v45 }
 0x217   :  { %v1061_v15 = vpop.f32.mrf.mxu2 }
 0x218   :  { %v1123_v37 = vmax.f32 %v1111_v49, 0.0  ;;  %v1062_v38 = vadd.f32 %v1061_v15, %v1022_v61  ;;  %v5401_v46 = vpop.f32.mrf.mxu0  ;;  %v3361_v61 = vor.u32 %v3687_v7, %v3358_v41  ;;  %v6117_v15 = vld [vmem:[#allocation6_spill] sm:$0xff] }
 0x21a   :  { %v1135_v16 = vpack.c.bf16 %v1123_v37, %v1123_v37  ;;  %v1087_v18 = vmax.f32 %v6113_v32, %v1062_v38  ;;  %1987 = vmatpush.bf16.msra.mxu3 %v3361_v61  ;;  %v6122_v37 = vld [vmem:[#allocation13_spill] sm:$0xff]  ;;  %v6127_v32 = vld [vmem:[#allocation4_spill] sm:$0xff] }
 0x21c   :  { %v1692_v29 = vunpack.c.l.b16 %v1135_v16  ;;  %v5419_v1 = vmax.f32 %v1086_v47, %v1087_v18  ;;  %v3372_v47 = vld [vmem:[%s6029_s2 + $0x230] sm:$0xf]  ;;  %v6126_v16 = vld [vmem:[#allocation17_spill] sm:$0xff] }
 0x21d   :  { %v3373_v44 = vor.u32 %v3692_v17, %v3372_v47  ;;  %v5536_v47 = vpop.f32.mrf.mxu3  ;;  %v6132_v17 = vld [vmem:[#allocation20_spill] sm:$0xff] }
 0x21e   :  { %v5421_v60 = vpack.c.b16 %v1692_v29, %v1691_v43  ;;  %1988 = vmatpush.bf16.msra.mxu3 %v3353_v48  ;;  %v6128_v43 = vld [vmem:[#allocation16_spill] sm:$0xff]  ;;  %v6129_v29 = vld [vmem:[#allocation19_spill] sm:$0xff] }
 0x21f   :  { %v5423_v0 = vpop.f32.mrf.mxu2  ;;  %1956 = vmatpush.bf16.msra.mxu1 %v3373_v44 }
 0x220   :  { %1606 = vmatmul.bf16.vlgmr.msrb.gmra.mxu1 %v6114_v34  ;;  %1635 = vmatmul.bf16.vlgmr.msrb.gmra.mxu3 %v6114_v34  ;;  %v5427_v6 = vpop.f32.mrf.mxu0 }
 0x221   :  { %1798 = vmatmul.bf16.gmra.mxu0 %v5421_v60  ;;  %1827 = vmatmul.bf16.gmra.mxu2 %v5421_v60 }
 0x223   :  { %1957 = vmatpush.bf16.msra.mxu1 %v3365_v2 }
 0x227   :  { %v5443_v33 = vpop.f32.mrf.mxu2  ;;  %1958 = vmatpush.bf16.msra.mxu1 %v3357_v11 }
 0x228   :  { %v5457_v31 = vpop.f32.mrf.mxu0 }
 0x22f   :  { %v5459_v10 = vpop.f32.mrf.mxu2 }
 0x230   :  { %1611 = vmatmul.bf16.gmra.mxu1 %v6115_v12  ;;  %1640 = vmatmul.bf16.gmra.mxu3 %v6115_v12  ;;  %v5479_v40 = vpop.f32.mrf.mxu0 }
 0x231   :  { %2034 = vmatmul.bf16.vlgmr.msra.gmra.mxu0 %v6114_v34  ;;  %2063 = vmatmul.bf16.vlgmr.msra.gmra.mxu2 %v6114_v34  ;;  %v5532_v34 = vpop.f32.mrf.mxu1 }
 0x232   :  { %2296 = vmatpush.bf16.msra.mxu0 %v5333_v24  ;;  %2325 = vmatpush.bf16.msra.mxu2 %v5325_v27  ;;  %v3348_v27 = vld [vmem:[%s6029_s2 + $0x200] sm:$0xf] }
 0x236   :  { %2297 = vmatpush.bf16.msra.mxu0 %v5353_v8  ;;  %2326 = vmatpush.bf16.msra.mxu2 %v5345_v28  ;;  %v3686_v28 = vld [vmem:[%s6029_s2 + $0x204] sm:$0xf0]  ;;  %v6116_v8 = vld [vmem:[#allocation5_spill] sm:$0xff] }
 0x237   :  { %v5489_v24 = vpop.f32.mrf.mxu2  ;;  %2113 = vmatpush.bf16.msrb.mxu3 %v6116_v8  ;;  %v3349_v23 = vor.u32 %v3686_v28, %v3348_v27  ;;  %v6139_v8 = vld [vmem:[#allocation35_spill] sm:$0xff] }
 0x238   :  { %v5500_v49 = vpop.f32.mrf.mxu0 }
 0x239   :  { %1959 = vmatpush.bf16.msra.mxu1 %v3349_v23 }
 0x23a   :  { %2298 = vmatpush.bf16.msra.mxu0 %v5389_v3  ;;  %2327 = vmatpush.bf16.msra.mxu2 %v5381_v39  ;;  %v6118_v3 = vld [vmem:[#allocation8_spill] sm:$0xff]  ;;  %v6119_v39 = vld [vmem:[#allocation7_spill] sm:$0xff] }
 0x23b   :  { %2114 = vmatpush.bf16.msrb.mxu3 %v6118_v3 }
 0x23d   :  { %2084 = vmatpush.bf16.msrb.mxu1 %v6117_v15  ;;  %v6141_v15 = vld [vmem:[#allocation38_spill] sm:$0xff] }
 0x23e   :  { %2299 = vmatpush.bf16.msra.mxu0 %v5411_v54  ;;  %2328 = vmatpush.bf16.msra.mxu2 %v5403_v26  ;;  %v6124_v26 = vld [vmem:[#allocation15_spill] sm:$0xff]  ;;  %v6125_v54 = vld [vmem:[#allocation14_spill] sm:$0xff] }
 0x23f   :  { %2115 = vmatpush.bf16.msrb.mxu3 %v6120_v21  ;;  %v5512_v20 = vpop.f32.mrf.mxu2 }
 0x240   :  { %1616 = vmatmul.bf16.gmra.mxu1 %v4452_v57  ;;  %1645 = vmatmul.bf16.gmra.mxu3 %v4452_v57  ;;  %v5516_v38 = vpop.f32.mrf.mxu0 }
 0x241   :  { %2039 = vmatmul.bf16.gmra.mxu0 %v6115_v12  ;;  %2068 = vmatmul.bf16.gmra.mxu2 %v6115_v12 }
 0x242   :  { %2300 = vmatpush.bf16.msra.mxu0 %v3373_v44  ;;  %2085 = vmatpush.bf16.msrb.mxu1 %v6119_v39 }
 0x243   :  { %2329 = vmatpush.bf16.msra.mxu2 %v3377_v4  ;;  %2116 = vmatpush.bf16.msrb.mxu3 %v6122_v37  ;;  %v6143_v37 = vld [vmem:[#allocation39_spill] sm:$0xff] }
 0x246   :  { %2301 = vmatpush.bf16.msra.mxu0 %v3365_v2  ;;  %2086 = vmatpush.bf16.msrb.mxu1 %v6121_v42 }
 0x247   :  { %2330 = vmatpush.bf16.msra.mxu2 %v3369_v45  ;;  %2117 = vmatpush.bf16.msrb.mxu3 %v6124_v26  ;;  %v5520_v56 = vpop.f32.mrf.mxu2  ;;  %v6145_v26 = vld [vmem:[#allocation40_spill] sm:$0xff] }
 0x248   :  { %v5528_v18 = vpop.f32.mrf.mxu0 }
 0x24a   :  { %2302 = vmatpush.bf16.msra.mxu0 %v3357_v11  ;;  %2087 = vmatpush.bf16.msrb.mxu1 %v6123_v14  ;;  %v6138_v11 = vld [vmem:[#allocation30_spill] sm:$0xff]  ;;  %v6144_v14 = vld [vmem:[#allocation41_spill] sm:$0xff] }
 0x24b   :  { %2331 = vmatpush.bf16.msra.mxu2 %v3361_v61  ;;  %2118 = vmatpush.bf16.msrb.mxu3 %v6126_v16  ;;  %v6135_v61 = vld [vmem:[#allocation29_spill] sm:$0xff] }
 0x24e   :  { %2303 = vmatpush.bf16.msra.mxu0 %v3349_v23  ;;  %2088 = vmatpush.bf16.msrb.mxu1 %v6125_v54  ;;  %v6140_v23 = vld [vmem:[#allocation34_spill] sm:$0xff] }
 0x24f   :  { %2332 = vmatpush.bf16.msra.mxu2 %v3353_v48  ;;  %2119 = vmatpush.bf16.msrb.mxu3 %v6129_v29  ;;  %v1487_v4 = vpop.f32.mrf.mxu2 }
 0x250   :  { %1621 = vmatmul.bf16.gmra.mxu1 %v6127_v32  ;;  %1650 = vmatmul.bf16.gmra.mxu3 %v6127_v32  ;;  %v1461_v44 = vpop.f32.mrf.mxu0 }
 0x251   :  { %2044 = vmatmul.bf16.gmra.mxu0 %v4452_v57  ;;  %2073 = vmatmul.bf16.gmra.mxu2 %v4452_v57 }
 0x252   :  { %2089 = vmatpush.bf16.msrb.mxu1 %v6128_v43 }
 0x253   :  { %2120 = vmatpush.bf16.msrb.mxu3 %v6131_v36 }
 0x256   :  { %2090 = vmatpush.bf16.msrb.mxu1 %v6130_v59 }
 0x257   :  { %v1490_v45 = vpop.f32.mrf.mxu2 }
 0x25a   :  { %2091 = vmatpush.bf16.msrb.mxu1 %v6132_v17 }
 0x25d   :  { %v1284_v22 = vpop.f32.mrf.mxu1 }
 0x25e   :  { %v5540_v55 = vadd.f32 %v5427_v6, %v1284_v22  ;;  %v1463_v6 = vpop.f32.mrf.mxu0 }
 0x25f   :  { %v1492_v53 = vpop.f32.mrf.mxu2 }
 0x260   :  { %1960 = vmatmul.bf16.vlgmr.msra.gmra.mxu1 %v6115_v12  ;;  %1989 = vmatmul.bf16.vlgmr.msra.gmra.mxu3 %v6115_v12 }
 0x261   :  { %2049 = vmatmul.bf16.gmra.mxu0 %v6127_v32  ;;  %2078 = vmatmul.bf16.gmra.mxu2 %v6127_v32 }
 0x262   :  { %2245 = vmatpush.bf16.msra.mxu3 %v6133_v52  ;;  %2216 = vmatpush.bf16.msra.mxu1 %v6134_v19 }
 0x263   :  { %v1313_v2 = vpop.f32.mrf.mxu3 }
 0x264   :  { %v5549_v7 = vadd.f32 %v5443_v33, %v1313_v2 }
 0x265   :  { %v5551_v41 = vpop.f32.mrf.mxu1 }
 0x266   :  { %2246 = vmatpush.bf16.msra.mxu3 %v6135_v61  ;;  %2217 = vmatpush.bf16.msra.mxu1 %v6136_v63  ;;  %v6146_v61 = vld [vmem:[#allocation11_spill] sm:$0xff] }
 0x26a   :  { %2247 = vmatpush.bf16.msra.mxu3 %v6137_v50  ;;  %2218 = vmatpush.bf16.msra.mxu1 %v6138_v11 }
 0x26b   :  { %v1315_v58 = vpop.f32.mrf.mxu3 }
 0x26c   :  { %v5558_v48 = vadd.f32 %v5459_v10, %v1315_v58  ;;  %v6142_v10 = vld [vmem:[#allocation37_spill] sm:$0xff] }
 0x26d   :  { %v1289_v27 = vpop.f32.mrf.mxu1 }
 0x26e   :  { %v5561_v33 = vadd.f32 %v5479_v40, %v1289_v27  ;;  %v1784_v28 = vpop.f32.mrf.mxu0  ;;  %2248 = vmatpush.bf16.msra.mxu3 %v6139_v8  ;;  %2219 = vmatpush.bf16.msra.mxu1 %v6140_v23 }
 0x270   :  { %1965 = vmatmul.bf16.gmra.mxu1 %v4452_v57  ;;  %1994 = vmatmul.bf16.gmra.mxu3 %v4452_v57 }
 0x271   :  { %2150 = vmatmul.bf16.vlgmr.msrb.gmra.mxu0 %v5202_v62  ;;  %2179 = vmatmul.bf16.vlgmr.msrb.gmra.mxu2 %v5202_v62 }
 0x272   :  { %2249 = vmatpush.bf16.msra.mxu3 %v6141_v15  ;;  %2220 = vmatpush.bf16.msra.mxu1 %v6142_v10 }
 0x273   :  { %v1318_v3 = vpop.f32.mrf.mxu3 }
 0x274   :  { %v5572_v40 = vadd.f32 %v5489_v24, %v1318_v3  ;;  %v1813_v39 = vpop.f32.mrf.mxu2 }
 0x275   :  { %v5574_v21 = vpop.f32.mrf.mxu1 }
 0x276   :  { %v1786_v42 = vpop.f32.mrf.mxu0  ;;  %2250 = vmatpush.bf16.msra.mxu3 %v5016_v13  ;;  %2221 = vmatpush.bf16.msra.mxu1 %v6143_v37 }
 0x27a   :  { %2251 = vmatpush.bf16.msra.mxu3 %v6144_v14  ;;  %2222 = vmatpush.bf16.msra.mxu1 %v6145_v26 }
 0x27b   :  { %v1320_v54 = vpop.f32.mrf.mxu3 }
 0x27c   :  { %v5581_v16 = vadd.f32 %v5512_v20, %v1320_v54  ;;  %v1815_v43 = vpop.f32.mrf.mxu2 }
 0x27d   :  { %v1294_v29 = vpop.f32.mrf.mxu1 }
 0x27e   :  { %v5584_v24 = vadd.f32 %v5516_v38, %v1294_v29  ;;  %v1789_v59 = vpop.f32.mrf.mxu0  ;;  %2252 = vmatpush.bf16.msra.mxu3 %v5060_v35  ;;  %2223 = vmatpush.bf16.msra.mxu1 %v5053_v30 }
 0x280   :  { %1970 = vmatmul.bf16.gmra.mxu1 %v6127_v32  ;;  %1999 = vmatmul.bf16.gmra.mxu3 %v6127_v32 }
 0x281   :  { %2155 = vmatmul.bf16.gmra.mxu0 %v5300_v51  ;;  %2184 = vmatmul.bf16.gmra.mxu2 %v5300_v51 }
 0x283   :  { %v1323_v13 = vpop.f32.mrf.mxu3 }
 0x284   :  { %v5593_v20 = vadd.f32 %v5520_v56, %v1323_v13  ;;  %v1818_v36 = vpop.f32.mrf.mxu2 }
 0x285   :  { %v5595_v38 = vpop.f32.mrf.mxu1 }
 0x286   :  { %v1791_v17 = vpop.f32.mrf.mxu0 }
 0x28b   :  { %v1325_v22 = vpop.f32.mrf.mxu3 }
 0x28c   :  { %v5597_v35 = vadd.f32 %v1487_v4, %v1325_v22  ;;  %v1820_v30 = vpop.f32.mrf.mxu2 }
 0x28d   :  { %v1299_v52 = vpop.f32.mrf.mxu1 }
 0x28e   :  { %v5599_v19 = vadd.f32 %v1461_v44, %v1299_v52  ;;  %v1794_v2 = vpop.f32.mrf.mxu0 }
 0x290   :  { %1975 = vmatmul.bf16.gmra.mxu1 %v6146_v61  ;;  %2004 = vmatmul.bf16.gmra.mxu3 %v6146_v61 }
 0x291   :  { %2160 = vmatmul.bf16.gmra.mxu0 %v5363_v25  ;;  %2189 = vmatmul.bf16.gmra.mxu2 %v5363_v25 }
 0x293   :  { %v1328_v56 = vpop.f32.mrf.mxu3 }
 0x294   :  { %v5605_v63 = vadd.f32 %v1490_v45, %v1328_v56  ;;  %v5607_v50 = vpop.f32.mrf.mxu2 }
 0x295   :  { %v1301_v4 = vpop.f32.mrf.mxu1 }
 0x296   :  { %v5609_v11 = vadd.f32 %v1463_v6, %v1301_v4  ;;  %v5611_v58 = vpop.f32.mrf.mxu0 }
 0x29b   :  { %v1330_v44 = vpop.f32.mrf.mxu3 }
 0x29c   :  { %v5613_v27 = vadd.f32 %v1492_v53, %v1330_v44  ;;  %v5615_v8 = vpop.f32.mrf.mxu2  ;;  %v1449_v53 = vadd.f32 %v5457_v31, %v5551_v41 }
 0x29d   :  { %v1607_v23 = vpop.f32.mrf.mxu1 }
 0x29e   :  { %v1656_v15 = vadd.f32 %v1607_v23, %v5540_v55  ;;  %v5618_v10 = vpop.f32.mrf.mxu0 }
 0x2a0   :  { %2092 = vmatmul.bf16.vlgmr.msrb.gmra.mxu1 %v5136_v9  ;;  %2121 = vmatmul.bf16.vlgmr.msrb.gmra.mxu3 %v5136_v9  ;;  %v5622_v45 = vadd.f32 %v1784_v28, %v1656_v15 }
 0x2a1   :  { %2165 = vmatmul.bf16.gmra.mxu0 %v5421_v60  ;;  %2194 = vmatmul.bf16.gmra.mxu2 %v5421_v60 }
 0x2a3   :  { %v1636_v6 = vpop.f32.mrf.mxu3 }
 0x2a4   :  { %v1657_v3 = vadd.f32 %v1636_v6, %v5549_v7  ;;  %v5629_v37 = vpop.f32.mrf.mxu2 }
 0x2a5   :  { %v1609_v55 = vpop.f32.mrf.mxu1 }
 0x2a6   :  { %v1658_v14 = vadd.f32 %v1609_v55, %v1449_v53  ;;  %v5631_v26 = vadd.f32 %v1813_v39, %v1657_v3  ;;  %v5635_v9 = vpop.f32.mrf.mxu0 }
 0x2a8   :  { %v5633_v54 = vadd.f32 %v1786_v42, %v1658_v14  ;;  %v1454_v42 = vadd.f32 %v5500_v49, %v5574_v21  ;;  %v1064_v21 = vadd.f32 %v5423_v0, %v5401_v46 }
 0x2ab   :  { %v1638_v28 = vpop.f32.mrf.mxu3 }
 0x2ac   :  { %v1659_v29 = vadd.f32 %v1638_v28, %v5558_v48  ;;  %v5638_v13 = vpop.f32.mrf.mxu2  ;;  %v6149_v28 = vld [vmem:[#allocation22_spill] sm:$0xff] }
 0x2ad   :  { %v1612_v22 = vpop.f32.mrf.mxu1 }
 0x2ae   :  { %v1660_v31 = vadd.f32 %v1612_v22, %v5561_v33  ;;  %v5641_v41 = vadd.f32 %v1815_v43, %v1659_v29  ;;  %v5649_v39 = vpop.f32.mrf.mxu0  ;;  %v6150_v29 = vld [vmem:[#allocation23_spill] sm:$0xff] }
 0x2af   :  { %v775_v46 = vadd.f32 %v6150_v29, %v6149_v28 }
 0x2b0   :  { %2097 = vmatmul.bf16.gmra.mxu1 %v5202_v62  ;;  %2126 = vmatmul.bf16.gmra.mxu3 %v5202_v62  ;;  %v5645_v7 = vadd.f32 %v1789_v59, %v1660_v31 }
 0x2b1   :  { %2304 = vmatmul.bf16.vlgmr.msra.gmra.mxu0 %v5300_v51  ;;  %2333 = vmatmul.bf16.vlgmr.msra.gmra.mxu2 %v5300_v51 }
 0x2b3   :  { %v1641_v48 = vpop.f32.mrf.mxu3 }
 0x2b4   :  { %v1661_v33 = vadd.f32 %v1641_v48, %v5572_v40  ;;  %v5656_v4 = vpop.f32.mrf.mxu2 }
 0x2b5   :  { %v1614_v43 = vpop.f32.mrf.mxu1 }
 0x2b6   :  { %v1662_v52 = vadd.f32 %v1614_v43, %v1454_v42  ;;  %v5654_v56 = vadd.f32 %v1818_v36, %v1661_v33  ;;  %v5661_v23 = vpop.f32.mrf.mxu0  ;;  %v1112_v43 = vadd.f32 %v5117_v5, %v5419_v1 }
 0x2b8   :  { %v5658_v62 = vadd.f32 %v1791_v17, %v1662_v52  ;;  %v6147_v17 = vld [vmem:[#allocation32_spill] sm:$0xff] }
 0x2bb   :  { %v1643_v59 = vpop.f32.mrf.mxu3 }
 0x2bc   :  { %v1663_v44 = vadd.f32 %v1643_v59, %v5581_v16  ;;  %v5670_v40 = vpop.f32.mrf.mxu2 }
 0x2bd   :  { %v1617_v15 = vpop.f32.mrf.mxu1 }
 0x2be   :  { %v1664_v6 = vadd.f32 %v1617_v15, %v5584_v24  ;;  %v5664_v53 = vadd.f32 %v1820_v30, %v1663_v44  ;;  %v1459_v24 = vadd.f32 %v5528_v18, %v5595_v38  ;;  %v6148_v30 = vld [vmem:[#allocation36_spill] sm:$0xff]  ;;  %v5688_v22 = vpop.f32.mrf.mxu0 }
 0x2c0   :  { %2102 = vmatmul.bf16.gmra.mxu1 %v5300_v51  ;;  %2131 = vmatmul.bf16.gmra.mxu3 %v5300_v51  ;;  %v5668_v49 = vadd.f32 %v1794_v2, %v1664_v6  ;;  %v853_v51 = vadd.f32 %v6148_v30, %v6147_v17  ;;  %v986_v2 = vadd.f32 %v5536_v47, %v5532_v34 }
 0x2c1   :  { %2309 = vmatmul.bf16.gmra.mxu0 %v5363_v25  ;;  %2338 = vmatmul.bf16.gmra.mxu2 %v5363_v25 }
 0x2c2   :  { %v1089_v0 = vmax.f32 %v853_v51, %v1064_v21 }
 0x2c3   :  { %v1646_v16 = vpop.f32.mrf.mxu3 }
 0x2c4   :  { %v1665_v36 = vadd.f32 %v1646_v16, %v5593_v20  ;;  %v1088_v20 = vmax.f32 %v775_v46, %v986_v2  ;;  %v5693_v31 = vpop.f32.mrf.mxu2 }
 0x2c5   :  { %v1619_v3 = vpop.f32.mrf.mxu1 }
 0x2c6   :  { %v1666_v55 = vadd.f32 %v1619_v3, %v1459_v24  ;;  %v5684_v14 = vadd.f32 %v5607_v50, %v1665_v36  ;;  %v1101_v38 = vmax.f32 %v1088_v20, %v1089_v0  ;;  %v5708_v52 = vpop.f32.mrf.mxu0 }
 0x2c8   :  { %v5691_v18 = vadd.f32 %v5611_v58, %v1666_v55  ;;  %v1113_v33 = vadd.f32 %v5117_v5, %v1101_v38 }
 0x2cb   :  { %v1648_v48 = vpop.f32.mrf.mxu3 }
 0x2cc   :  { %v1667_v34 = vadd.f32 %v1648_v48, %v5597_v35  ;;  %v5713_v59 = vpop.f32.mrf.mxu2 }
 0x2cd   :  { %v1622_v47 = vpop.f32.mrf.mxu1 }
 0x2ce   :  { %v1668_v50 = vadd.f32 %v1622_v47, %v5599_v19  ;;  %v5698_v42 = vadd.f32 %v5615_v8, %v1667_v34  ;;  %v1125_v19 = vmax.f32 %v1113_v33, 0.0  ;;  %v5718_v21 = vpop.f32.mrf.mxu0 }
 0x2d0   :  { %2107 = vmatmul.bf16.gmra.mxu1 %v5363_v25  ;;  %2136 = vmatmul.bf16.gmra.mxu3 %v5363_v25  ;;  %v5704_v58 = vadd.f32 %v5618_v10, %v1668_v50  ;;  %v1124_v25 = vmax.f32 %v1112_v43, 0.0  ;;  %v1137_v6 = vpack.c.bf16 %v1125_v19, %v1125_v19 }
 0x2d1   :  { %2314 = vmatmul.bf16.gmra.mxu0 %v5421_v60  ;;  %2343 = vmatmul.bf16.gmra.mxu2 %v5421_v60 }
 0x2d2   :  { %v1136_v1 = vpack.c.bf16 %v1124_v25, %v1124_v25  ;;  %v2293_v60 = vunpack.c.l.b16 %v1137_v6 }
 0x2d3   :  { %v1651_v35 = vpop.f32.mrf.mxu3 }
 0x2d4   :  { %v1669_v8 = vadd.f32 %v1651_v35, %v5605_v63  ;;  %v2292_v63 = vunpack.c.l.b16 %v1136_v1 }
 0x2d5   :  { %v1624_v44 = vpop.f32.mrf.mxu1 }
 0x2d6   :  { %v1670_v10 = vadd.f32 %v1624_v44, %v5609_v11  ;;  %v1846_v15 = vadd.f32 %v5629_v37, %v1669_v8  ;;  %v5725_v11 = vpop.f32.mrf.mxu2  ;;  %v2294_v37 = vpack.c.b16 %v2293_v60, %v2292_v63 }
 0x2d8   :  { %v1847_v5 = vadd.f32 %v5635_v9, %v1670_v10 }
 0x2db   :  { %v1653_v16 = vpop.f32.mrf.mxu3 }
 0x2dc   :  { %v1671_v24 = vadd.f32 %v1653_v16, %v5613_v27  ;;  %v5732_v27 = vpop.f32.mrf.mxu0 }
 0x2dd   :  { %v1961_v36 = vpop.f32.mrf.mxu1 }
 0x2de   :  { %v5722_v17 = vadd.f32 %v1961_v36, %v5622_v45  ;;  %v1848_v30 = vadd.f32 %v5638_v13, %v1671_v24  ;;  %v5736_v45 = vpop.f32.mrf.mxu2 }
 0x2e0   :  { %2224 = vmatmul.bf16.vlgmr.msra.gmra.mxu1 %v6115_v12  ;;  %2253 = vmatmul.bf16.vlgmr.msra.gmra.mxu3 %v6115_v12 }
 0x2e1   :  { %2319 = vmatmul.bf16.gmra.mxu0 %v2294_v37  ;;  %2348 = vmatmul.bf16.gmra.mxu2 %v2294_v37 }
 0x2e3   :  { %v1990_v9 = vpop.f32.mrf.mxu3 }
 0x2e4   :  { %v5730_v51 = vadd.f32 %v1990_v9, %v5631_v26  ;;  %v5743_v28 = vpop.f32.mrf.mxu0 }
 0x2e5   :  { %v5734_v2 = vpop.f32.mrf.mxu1 }
 0x2e6   :  { %v5747_v12 = vpop.f32.mrf.mxu2 }
 0x2eb   :  { %v5738_v13 = vpop.f32.mrf.mxu3 }
 0x2ec   :  { %v5754_v0 = vpop.f32.mrf.mxu0 }
 0x2ed   :  { %v1966_v3 = vpop.f32.mrf.mxu1 }
 0x2ee   :  { %v5741_v55 = vadd.f32 %v1966_v3, %v5645_v7  ;;  %v5759_v38 = vpop.f32.mrf.mxu2 }
 0x2f0   :  { %2229 = vmatmul.bf16.gmra.mxu1 %v4452_v57  ;;  %2258 = vmatmul.bf16.gmra.mxu3 %v4452_v57 }
 0x2f3   :  { %v1995_v26 = vpop.f32.mrf.mxu3 }
 0x2f4   :  { %v5750_v29 = vadd.f32 %v1995_v26, %v5654_v56  ;;  %v2151_v57 = vpop.f32.mrf.mxu0 }
 0x2f5   :  { %v5752_v46 = vpop.f32.mrf.mxu1 }
 0x2fb   :  { %v1997_v20 = vpop.f32.mrf.mxu3 }
 0x2fc   :  { %v5757_v7 = vadd.f32 %v1997_v20, %v5664_v53  ;;  %v2180_v53 = vpop.f32.mrf.mxu2 }
 0x2fd   :  { %v1971_v48 = vpop.f32.mrf.mxu1 }
 0x2fe   :  { %v5762_v34 = vadd.f32 %v1971_v48, %v5668_v49  ;;  %v5775_v49 = vpop.f32.mrf.mxu0 }
 0x300   :  { %2234 = vmatmul.bf16.gmra.mxu1 %v6127_v32  ;;  %2263 = vmatmul.bf16.gmra.mxu3 %v6127_v32 }
 0x303   :  { %v2000_v56 = vpop.f32.mrf.mxu3 }
 0x304   :  { %v5767_v47 = vadd.f32 %v2000_v56, %v5684_v14  ;;  %v5782_v32 = vpop.f32.mrf.mxu2 }
 0x305   :  { %v1973_v50 = vpop.f32.mrf.mxu1 }
 0x306   :  { %v5770_v33 = vadd.f32 %v1973_v50, %v5691_v18 }
 0x30b   :  { %v2002_v43 = vpop.f32.mrf.mxu3 }
 0x30c   :  { %v5773_v35 = vadd.f32 %v2002_v43, %v5698_v42  ;;  %v2156_v42 = vpop.f32.mrf.mxu0  ;;  %v2185_v10 = vpop.f32.mrf.mxu2 }
 0x30d   :  { %v1976_v19 = vpop.f32.mrf.mxu1 }
 0x30e   :  { %v5778_v8 = vadd.f32 %v1976_v19, %v5704_v58 }
 0x310   :  { %2239 = vmatmul.bf16.gmra.mxu1 %v6146_v61  ;;  %2268 = vmatmul.bf16.gmra.mxu3 %v6146_v61 }
 0x313   :  { %v2005_v14 = vpop.f32.mrf.mxu3 }
 0x314   :  { %v5784_v18 = vadd.f32 %v2005_v14, %v1846_v15  ;;  %v5793_v24 = vpop.f32.mrf.mxu0  ;;  %v5796_v15 = vpop.f32.mrf.mxu2 }
 0x315   :  { %v1978_v44 = vpop.f32.mrf.mxu1 }
 0x316   :  { %v5786_v25 = vadd.f32 %v1978_v44, %v1847_v5  ;;  %v3707_v44 = vld [vmem:[%s6031_s3 + $0x30] sm:$0xff] }
 0x31b   :  { %v2007_v6 = vpop.f32.mrf.mxu3 }
 0x31c   :  { %v5788_v1 = vadd.f32 %v2007_v6, %v1848_v30  ;;  %v2161_v37 = vpop.f32.mrf.mxu0 }
 0x31d   :  { %v2093_v16 = vpop.f32.mrf.mxu1 }
 0x31e   :  { %6151 = vst [vmem:[#allocation24_spill] sm:$0xff] %v5788_v1  ;;  %v2094_v58 = vadd.f32 %v2093_v16, %v5649_v39  ;;  %v2190_v39 = vpop.f32.mrf.mxu2 }
 0x320   :  { %v5791_v60 = vadd.f32 %v2151_v57, %v2094_v58 }
 0x323   :  { %v2122_v61 = vpop.f32.mrf.mxu3 }
 0x324   :  { %v2123_v36 = vadd.f32 %v2122_v61, %v5656_v4  ;;  %v5808_v57 = vpop.f32.mrf.mxu0 }
 0x325   :  { %v5798_v63 = vpop.f32.mrf.mxu1 }
 0x326   :  { %v5800_v5 = vadd.f32 %v2180_v53, %v2123_v36  ;;  %v5814_v50 = vpop.f32.mrf.mxu2  ;;  %v3705_v36 = vld [vmem:[%s6031_s3 + $0x20] sm:$0xff] }
 0x32b   :  { %v5802_v9 = vpop.f32.mrf.mxu3 }
 0x32c   :  { %v2166_v14 = vpop.f32.mrf.mxu0 }
 0x32d   :  { %v2098_v30 = vpop.f32.mrf.mxu1 }
 0x32e   :  { %v2099_v3 = vadd.f32 %v2098_v30, %v5688_v22  ;;  %v3708_v22 = vld [vmem:[%s6031_s3 + $0x38] sm:$0xff] }
 0x32f   :  { %2577 = vmatpush.bf16.msrb.mxu3 %v3708_v22 }
 0x330   :  { %v5805_v26 = vadd.f32 %v2156_v42, %v2099_v3  ;;  %v2195_v42 = vpop.f32.mrf.mxu2 }
 0x333   :  { %v2127_v20 = vpop.f32.mrf.mxu3  ;;  %2578 = vmatpush.bf16.msrb.mxu3 %v3707_v44 }
 0x334   :  { %v2128_v48 = vadd.f32 %v2127_v20, %v5693_v31  ;;  %v5835_v61 = vpop.f32.mrf.mxu0  ;;  %v3704_v20 = vld [vmem:[%s6031_s3 + $0x18] sm:$0xff] }
 0x335   :  { %v5810_v4 = vpop.f32.mrf.mxu1 }
 0x336   :  { %v5812_v56 = vadd.f32 %v2185_v10, %v2128_v48 }
 0x33b   :  { %v5816_v53 = vpop.f32.mrf.mxu3 }
 0x33d   :  { %v2103_v43 = vpop.f32.mrf.mxu1 }
 0x33e   :  { %v2104_v19 = vadd.f32 %v2103_v43, %v5718_v21  ;;  %v3706_v21 = vld [vmem:[%s6031_s3 + $0x28] sm:$0xff]  ;;  %v3715_v43 = vld [vmem:[%s6031_s3 + $0x70] sm:$0xff] }
 0x33f   :  { %2579 = vmatpush.bf16.msrb.mxu3 %v3706_v21 }
 0x340   :  { %v5822_v31 = vadd.f32 %v2161_v37, %v2104_v19  ;;  %v2305_v19 = vpop.f32.mrf.mxu0 }
 0x343   :  { %v2132_v10 = vpop.f32.mrf.mxu3  ;;  %2580 = vmatpush.bf16.msrb.mxu3 %v3705_v36 }
 0x344   :  { %v2133_v6 = vadd.f32 %v2132_v10, %v5725_v11  ;;  %v5842_v11 = vpop.f32.mrf.mxu2 }
 0x345   :  { %v5828_v16 = vpop.f32.mrf.mxu1 }
 0x346   :  { %v5833_v58 = vadd.f32 %v2190_v39, %v2133_v6  ;;  %v3716_v39 = vld [vmem:[%s6031_s3 + $0x78] sm:$0xff]  ;;  %v3702_v6 = vld [vmem:[%s6031_s3 + $0x8] sm:$0xff] }
 0x347   :  { %2509 = vmatpush.bf16.msrb.mxu1 %v3716_v39  ;;  %2581 = vmatpush.bf16.msrb.mxu3 %v3704_v20 }
 0x348   :  { %v2307_v20 = vpop.f32.mrf.mxu0 }
 0x34b   :  { %v5840_v37 = vpop.f32.mrf.mxu3  ;;  %2510 = vmatpush.bf16.msrb.mxu1 %v3715_v43 }
 0x34c   :  { %v2334_v36 = vpop.f32.mrf.mxu2 }
 0x34d   :  { %v2108_v30 = vpop.f32.mrf.mxu1 }
 0x34e   :  { %v2109_v3 = vadd.f32 %v2108_v30, %v5743_v28  ;;  %v3703_v28 = vld [vmem:[%s6031_s3 + $0x10] sm:$0xff]  ;;  %v3724_v30 = vld [vmem:[%s6031_s3 + $0xb8] sm:$0xff] }
 0x34f   :  { %2582 = vmatpush.bf16.msrb.mxu3 %v3703_v28  ;;  %2662 = vmatpush.bf16.msrb.mxu0 %v3724_v30  ;;  %v3711_v30 = vld [vmem:[%s6031_s3 + $0x50] sm:$0xff] }
 0x350   :  { %v5851_v48 = vadd.f32 %v2166_v14, %v2109_v3  ;;  %v3714_v14 = vld [vmem:[%s6031_s3 + $0x68] sm:$0xff]  ;;  %v3713_v3 = vld [vmem:[%s6031_s3 + $0x60] sm:$0xff] }
 0x351   :  { %2511 = vmatpush.bf16.msrb.mxu1 %v3714_v14 }
 0x353   :  { %v2137_v22 = vpop.f32.mrf.mxu3  ;;  %2583 = vmatpush.bf16.msrb.mxu3 %v3702_v6  ;;  %v2096_v6 = vadd.f32 %v5798_v63, %v5661_v23 }
 0x354   :  { %v2138_v44 = vadd.f32 %v2137_v22, %v5747_v12  ;;  %v3732_v12 = vld [vmem:[%s6031_s3 + $0xf8] sm:$0xff]  ;;  %v2336_v14 = vpop.f32.mrf.mxu2 }
 0x355   :  { %v5860_v10 = vpop.f32.mrf.mxu1  ;;  %2749 = vmatpush.bf16.msrb.mxu2 %v3732_v12  ;;  %2512 = vmatpush.bf16.msrb.mxu1 %v3713_v3  ;;  %v3712_v22 = vld [vmem:[%s6031_s3 + $0x58] sm:$0xff]  ;;  %v3731_v12 = vld [vmem:[%s6031_s3 + $0xf0] sm:$0xff] }
 0x356   :  { %v5868_v21 = vadd.f32 %v2195_v42, %v2138_v44  ;;  %v3701_v42 = vld [vmem:[%s6031_s3] sm:$0xff] }
 0x357   :  { %2584 = vmatpush.bf16.msrb.mxu3 %v3701_v42  ;;  %v2202_v42 = vadd.f32 %v5775_v49, %v2096_v6  ;;  %v3721_v6 = vld [vmem:[%s6031_s3 + $0xa0] sm:$0xff] }
 0x359   :  { %2513 = vmatpush.bf16.msrb.mxu1 %v3712_v22  ;;  %2750 = vmatpush.bf16.msrb.mxu2 %v3731_v12  ;;  %v2310_v22 = vpop.f32.mrf.mxu0 }
 0x35b   :  { %v5879_v39 = vpop.f32.mrf.mxu3 }
 0x35c   :  { %v2339_v12 = vpop.f32.mrf.mxu2 }
 0x35d   :  { %v2225_v43 = vpop.f32.mrf.mxu1  ;;  %2514 = vmatpush.bf16.msrb.mxu1 %v3711_v30 }
 0x35e   :  { %v2274_v28 = vadd.f32 %v2225_v43, %v5791_v60  ;;  %v3723_v60 = vld [vmem:[%s6031_s3 + $0xb0] sm:$0xff]  ;;  %v3722_v43 = vld [vmem:[%s6031_s3 + $0xa8] sm:$0xff] }
 0x35f   :  { %2663 = vmatpush.bf16.msrb.mxu0 %v3723_v60 }
 0x360   :  { %v2354_v44 = vadd.f32 %v2305_v19, %v2274_v28  ;;  %v3710_v28 = vld [vmem:[%s6031_s3 + $0x48] sm:$0xff] }
 0x361   :  { %2515 = vmatpush.bf16.msrb.mxu1 %v3710_v28 }
 0x362   :  { %v2370_v1 = vmax.f32 %v5722_v17, %v2354_v44  ;;  %v2125_v17 = vadd.f32 %v5802_v9, %v5670_v40  ;;  %v5914_v40 = vld [vmem:[%s6030_s6] ss:$0 sm:$0xff] }
 0x363   :  { %v2254_v19 = vpop.f32.mrf.mxu3  ;;  %2664 = vmatpush.bf16.msrb.mxu0 %v3722_v43 }
 0x364   :  { %v2275_v3 = vadd.f32 %v2254_v19, %v5800_v5  ;;  %v2203_v9 = vadd.f32 %v5782_v32, %v2125_v17  ;;  %v2012_v32 = vadd.f32 %v5734_v2, %v5633_v54  ;;  %v2101_v54 = vadd.f32 %v5810_v4, %v5708_v52  ;;  %v2312_v2 = vpop.f32.mrf.mxu0  ;;  %v2341_v52 = vpop.f32.mrf.mxu2 }
 0x365   :  { %v2227_v23 = vpop.f32.mrf.mxu1 }
 0x366   :  { %v2355_v63 = vadd.f32 %v2334_v36, %v2275_v3  ;;  %v2276_v44 = vadd.f32 %v2227_v23, %v2202_v42  ;;  %v3730_v36 = vld [vmem:[%s6031_s3 + $0xe8] sm:$0xff]  ;;  %v2013_v3 = vadd.f32 %v5738_v13, %v5641_v41  ;;  %v3729_v13 = vld [vmem:[%s6031_s3 + $0xe0] sm:$0xff]  ;;  %v2206_v4 = vadd.f32 %v5793_v24, %v2101_v54 }
 0x367   :  { %2751 = vmatpush.bf16.msrb.mxu2 %v3730_v36  ;;  %2665 = vmatpush.bf16.msrb.mxu0 %v3721_v6 }
 0x368   :  { %v2371_v5 = vmax.f32 %v5730_v51, %v2355_v63  ;;  %v3709_v51 = vld [vmem:[%s6031_s3 + $0x40] sm:$0xff]  ;;  %v2356_v30 = vadd.f32 %v2307_v20, %v2276_v44  ;;  %v3720_v20 = vld [vmem:[%s6031_s3 + $0x98] sm:$0xff] }
 0x369   :  { %2516 = vmatpush.bf16.msrb.mxu1 %v3709_v51 }
 0x36a   :  { %v2386_v49 = vmax.f32 %v2370_v1, %v2371_v5  ;;  %v2372_v42 = vmax.f32 %v2012_v32, %v2356_v30 }
 0x36b   :  { %v2256_v60 = vpop.f32.mrf.mxu3  ;;  %2666 = vmatpush.bf16.msrb.mxu0 %v3720_v20  ;;  %2752 = vmatpush.bf16.msrb.mxu2 %v3729_v13 }
 0x36c   :  { %v2277_v19 = vadd.f32 %v2256_v60, %v2203_v9  ;;  %v2398_v23 = vadd.f32 %v5914_v40, %v2386_v49  ;;  %v3718_v60 = vld [vmem:[%s6031_s3 + $0x88] sm:$0xff]  ;;  %v2344_v54 = vpop.f32.mrf.mxu2 }
 0x36d   :  { %v2230_v1 = vpop.f32.mrf.mxu1 }
 0x36e   :  { %v2357_v17 = vadd.f32 %v2336_v14, %v2277_v19  ;;  %v2278_v63 = vadd.f32 %v2230_v1, %v5805_v26  ;;  %v2406_v5 = vmax.f32 %v2398_v23, 0.0  ;;  %v3719_v26 = vld [vmem:[%s6031_s3 + $0x90] sm:$0xff] }
 0x36f   :  { %2667 = vmatpush.bf16.msrb.mxu0 %v3719_v26 }
 0x370   :  { %v2373_v43 = vmax.f32 %v2013_v3, %v2357_v17  ;;  %v2358_v28 = vadd.f32 %v2310_v22, %v2278_v63  ;;  %v2414_v36 = vpack.c.bf16 %v2406_v5, %v2406_v5 }
 0x372   :  { %v2387_v44 = vmax.f32 %v2372_v42, %v2373_v43  ;;  %v2374_v41 = vmax.f32 %v5741_v55, %v2358_v28  ;;  %v2130_v55 = vadd.f32 %v5816_v53, %v5713_v59  ;;  %v2525_v32 = vunpack.c.l.b16 %v2414_v36  ;;  %v3728_v59 = vld [vmem:[%s6031_s3 + $0xd8] sm:$0xff]  ;;  %v3717_v53 = vld [vmem:[%s6031_s3 + $0x80] sm:$0xff] }
 0x373   :  { %v2259_v14 = vpop.f32.mrf.mxu3  ;;  %2668 = vmatpush.bf16.msrb.mxu0 %v3718_v60  ;;  %2753 = vmatpush.bf16.msrb.mxu2 %v3728_v59  ;;  %v2016_v42 = vadd.f32 %v5752_v46, %v5658_v62  ;;  %v3727_v62 = vld [vmem:[%s6031_s3 + $0xd0] sm:$0xff] }
 0x374   :  { %v2399_v22 = vadd.f32 %v5914_v40, %v2387_v44  ;;  %v2279_v49 = vadd.f32 %v2259_v14, %v5812_v56  ;;  %v2207_v24 = vadd.f32 %v5796_v15, %v2130_v55 }
 0x375   :  { %v2232_v9 = vpop.f32.mrf.mxu1 }
 0x376   :  { %v2407_v6 = vmax.f32 %v2399_v22, 0.0  ;;  %v2359_v51 = vadd.f32 %v2339_v12, %v2279_v49  ;;  %v2280_v56 = vadd.f32 %v2232_v9, %v2206_v4  ;;  %v2315_v12 = vpop.f32.mrf.mxu0  ;;  %v3726_v9 = vld [vmem:[%s6031_s3 + $0xc8] sm:$0xff] }
 0x377   :  { %2669 = vmatpush.bf16.msrb.mxu0 %v3717_v53  ;;  %2754 = vmatpush.bf16.msrb.mxu2 %v3727_v62 }
 0x378   :  { %v2415_v30 = vpack.c.bf16 %v2407_v6, %v2407_v6  ;;  %v2375_v19 = vmax.f32 %v5750_v29, %v2359_v51  ;;  %v2360_v17 = vadd.f32 %v2312_v2, %v2280_v56  ;;  %v2106_v2 = vadd.f32 %v5828_v16, %v5732_v27 }
 0x379   :  { %v2135_v27 = vadd.f32 %v5840_v37, %v5736_v45  ;;  %v3725_v45 = vld [vmem:[%s6031_s3 + $0xc0] sm:$0xff] }
 0x37a   :  { %v2526_v1 = vunpack.c.l.b16 %v2415_v30  ;;  %v2388_v3 = vmax.f32 %v2374_v41, %v2375_v19  ;;  %v2376_v5 = vmax.f32 %v2016_v42, %v2360_v17 }
 0x37b   :  { %v2261_v23 = vpop.f32.mrf.mxu3  ;;  %2755 = vmatpush.bf16.msrb.mxu2 %v3726_v9  ;;  %v2211_v30 = vadd.f32 %v5814_v50, %v2135_v27 }
 0x37c   :  { %v2281_v63 = vadd.f32 %v2261_v23, %v2207_v24  ;;  %v2527_v29 = vpack.c.b16 %v2526_v1, %v2525_v32  ;;  %v2400_v15 = vadd.f32 %v5914_v40, %v2388_v3  ;;  %v2111_v23 = vadd.f32 %v5860_v10, %v5754_v0 }
 0x37d   :  { %v2235_v20 = vpop.f32.mrf.mxu1 }
 0x37e   :  { %v2361_v43 = vadd.f32 %v2341_v52, %v2281_v63  ;;  %v2282_v28 = vadd.f32 %v2235_v20, %v5822_v31  ;;  %2585 = vmatmul.bf16.vlgmr.msrb.gmra.mxu3 %v2527_v29  ;;  %v2408_v13 = vmax.f32 %v2400_v15, 0.0  ;;  %v2317_v49 = vpop.f32.mrf.mxu0 }
 0x37f   :  { %2756 = vmatpush.bf16.msrb.mxu2 %v3725_v45 }
 0x380   :  { %v2377_v44 = vmax.f32 %v5757_v7, %v2361_v43  ;;  %v2362_v41 = vadd.f32 %v2315_v12, %v2282_v28  ;;  %v2210_v7 = vadd.f32 %v5808_v57, %v2106_v2  ;;  %v2416_v16 = vpack.c.bf16 %v2408_v13, %v2408_v13 }
 0x381   :  { %v2214_v43 = vadd.f32 %v5835_v61, %v2111_v23 }
 0x382   :  { %v2389_v26 = vmax.f32 %v2376_v5, %v2377_v44  ;;  %v2378_v14 = vmax.f32 %v5762_v34, %v2362_v41  ;;  %v2457_v51 = vunpack.c.l.b16 %v2416_v16 }
 0x383   :  { %v2264_v46 = vpop.f32.mrf.mxu3 }
 0x384   :  { %v2401_v31 = vadd.f32 %v5914_v40, %v2389_v26  ;;  %v2283_v22 = vadd.f32 %v2264_v46, %v5833_v58  ;;  %v2346_v58 = vpop.f32.mrf.mxu2 }
 0x385   :  { %v2237_v52 = vpop.f32.mrf.mxu1 }
 0x386   :  { %v2409_v4 = vmax.f32 %v2401_v31, 0.0  ;;  %v2363_v34 = vadd.f32 %v2344_v54, %v2283_v22  ;;  %v2284_v6 = vadd.f32 %v2237_v52, %v2210_v7  ;;  %v2320_v59 = vpop.f32.mrf.mxu0  ;;  %v6152_v22 = vld [vmem:[#allocation24_spill] sm:$0xff] }
 0x388   :  { %v2417_v55 = vpack.c.bf16 %v2409_v4, %v2409_v4  ;;  %v2379_v36 = vmax.f32 %v5767_v47, %v2363_v34  ;;  %v2364_v19 = vadd.f32 %v2317_v49, %v2284_v6 }
 0x38a   :  { %v2458_v60 = vunpack.c.l.b16 %v2417_v55  ;;  %v2390_v57 = vmax.f32 %v2378_v14, %v2379_v36  ;;  %v2380_v53 = vmax.f32 %v5770_v33, %v2364_v19  ;;  %v2140_v33 = vadd.f32 %v5879_v39, %v5759_v38  ;;  %v3736_v55 = vld [vmem:[%s6034_s4 + $0x18] sm:$0xff]  ;;  %v3733_v36 = vld [vmem:[%s6034_s4] sm:$0xff] }
 0x38b   :  { %v2266_v37 = vpop.f32.mrf.mxu3  ;;  %2818 = vmatpush.bf16.msra.mxu1 %v3736_v55 }
 0x38c   :  { %v2285_v56 = vadd.f32 %v2266_v37, %v2211_v30  ;;  %v2459_v32 = vpack.c.b16 %v2458_v60, %v2457_v51  ;;  %v2402_v47 = vadd.f32 %v5914_v40, %v2390_v57  ;;  %v2349_v20 = vpop.f32.mrf.mxu2  ;;  %v2215_v13 = vadd.f32 %v5842_v11, %v2140_v33 }
 0x38d   :  { %v2240_v1 = vpop.f32.mrf.mxu1 }
 0x38e   :  { %v2365_v3 = vadd.f32 %v2346_v58, %v2285_v56  ;;  %v2286_v24 = vadd.f32 %v2240_v1, %v5851_v48  ;;  %2517 = vmatmul.bf16.vlgmr.msrb.gmra.mxu1 %v2459_v32  ;;  %v2410_v17 = vmax.f32 %v2402_v47, 0.0  ;;  %v2322_v26 = vpop.f32.mrf.mxu0  ;;  %v3739_v1 = vld [vmem:[%s6032_s7] ss:$0 sm:$0xff] }
 0x390   :  { %v2381_v50 = vmax.f32 %v5773_v35, %v2365_v3  ;;  %v2366_v12 = vadd.f32 %v2320_v59, %v2286_v24  ;;  %v2418_v35 = vpack.c.bf16 %v2410_v17, %v2410_v17  ;;  %v3740_v17 = vld [vmem:[%s6033_s8] ss:$0 sm:$0xff] }
 0x392   :  { %v2391_v63 = vmax.f32 %v2380_v53, %v2381_v50  ;;  %v2382_v29 = vmax.f32 %v5778_v8, %v2366_v12  ;;  %v2610_v8 = vunpack.c.l.b16 %v2418_v35 }
 0x393   :  { %v2269_v42 = vpop.f32.mrf.mxu3 }
 0x394   :  { %v2403_v15 = vadd.f32 %v5914_v40, %v2391_v63  ;;  %v2287_v48 = vadd.f32 %v2269_v42, %v5868_v21  ;;  %v2351_v46 = vpop.f32.mrf.mxu2 }
 0x395   :  { %v2242_v28 = vpop.f32.mrf.mxu1 }
 0x396   :  { %v2411_v54 = vmax.f32 %v2403_v15, 0.0  ;;  %v2367_v5 = vadd.f32 %v2349_v20, %v2287_v48  ;;  %v2288_v44 = vadd.f32 %v2242_v28, %v2214_v43 }
 0x398   :  { %v2419_v0 = vpack.c.bf16 %v2411_v54, %v2411_v54  ;;  %v2383_v10 = vmax.f32 %v5784_v18, %v2367_v5  ;;  %v2368_v14 = vadd.f32 %v2322_v26, %v2288_v44 }
 0x39a   :  { %v2611_v41 = vunpack.c.l.b16 %v2419_v0  ;;  %v2392_v2 = vmax.f32 %v2382_v29, %v2383_v10  ;;  %v2384_v31 = vmax.f32 %v5786_v25, %v2368_v14  ;;  %v3735_v25 = vld [vmem:[%s6034_s4 + $0x10] sm:$0xff] }
 0x39b   :  { %v2271_v21 = vpop.f32.mrf.mxu3  ;;  %2819 = vmatpush.bf16.msra.mxu1 %v3735_v25 }
 0x39c   :  { %v2289_v61 = vadd.f32 %v2271_v21, %v2215_v13  ;;  %v2612_v62 = vpack.c.b16 %v2611_v41, %v2610_v8  ;;  %v2404_v38 = vadd.f32 %v5914_v40, %v2392_v2 }
 0x39e   :  { %v2369_v39 = vadd.f32 %v2351_v46, %v2289_v61  ;;  %2670 = vmatmul.bf16.vlgmr.msrb.gmra.mxu0 %v2612_v62  ;;  %v2412_v49 = vmax.f32 %v2404_v38, 0.0 }
 0x3a0   :  { %v2385_v18 = vmax.f32 %v6152_v22, %v2369_v39  ;;  %v2420_v27 = vpack.c.bf16 %v2412_v49, %v2412_v49 }
 0x3a2   :  { %v2393_v7 = vmax.f32 %v2384_v31, %v2385_v18  ;;  %v2697_v4 = vunpack.c.l.b16 %v2420_v27 }
 0x3a4   :  { %v2405_v52 = vadd.f32 %v5914_v40, %v2393_v7  ;;  %v3734_v40 = vld [vmem:[%s6034_s4 + $0x8] sm:$0xff] }
 0x3a5   :  { %2820 = vmatpush.bf16.msra.mxu1 %v3734_v40 }
 0x3a6   :  { %v2413_v11 = vmax.f32 %v2405_v52, 0.0 }
 0x3a8   :  { %v2421_v16 = vpack.c.bf16 %v2413_v11, %v2413_v11 }
 0x3a9   :  { %2821 = vmatpush.bf16.msra.mxu1 %v3733_v36 }
 0x3aa   :  { %v2698_v34 = vunpack.c.l.b16 %v2421_v16 }
 0x3ac   :  { %v2699_v9 = vpack.c.b16 %v2698_v34, %v2697_v4 }
 0x3ae   :  { %2757 = vmatmul.bf16.vlgmr.msrb.gmra.mxu2 %v2699_v9 }
 0x401   :  { %v2586_v58 = vpop.f32.mrf.mxu3 }
 0x409   :  { %v2588_v37 = vpop.f32.mrf.mxu3 }
 0x40b   :  { %v2518_v6 = vpop.f32.mrf.mxu1 }
 0x40c   :  { %v2587_v57 = vadd.f32 %v2586_v58, %v2518_v6 }
 0x413   :  { %v2520_v30 = vpop.f32.mrf.mxu1 }
 0x414   :  { %v2589_v56 = vadd.f32 %v2588_v37, %v2520_v30 }
 0x41b   :  { %v2671_v51 = vpop.f32.mrf.mxu0 }
 0x41c   :  { %v2676_v45 = vadd.f32 %v2671_v51, %v2587_v57 }
 0x423   :  { %v2673_v19 = vpop.f32.mrf.mxu0 }
 0x424   :  { %v2677_v47 = vadd.f32 %v2673_v19, %v2589_v56 }
 0x431   :  { %v2758_v60 = vpop.f32.mrf.mxu2 }
 0x432   :  { %v2763_v32 = vadd.f32 %v2758_v60, %v2676_v45 }
 0x434   :  { %v2769_v24 = vadd.f32 %v3739_v1, %v2763_v32 }
 0x436   :  { %v2771_v50 = vmax.f32 %v2769_v24, 0.0 }
 0x439   :  { %v2760_v3 = vpop.f32.mrf.mxu2 }
 0x43a   :  { %v2764_v59 = vadd.f32 %v2760_v3, %v2677_v47 }
 0x43c   :  { %v2770_v53 = vadd.f32 %v3739_v1, %v2764_v59 }
 0x43e   :  { %v2772_v12 = vmax.f32 %v2770_v53, 0.0 }
 0x440   :  { %v2773_v23 = vpack.c.bf16 %v2772_v12, %v2771_v50 }
 0x442   :  { %3602 = vmatmul.msk.bf16.vlgmr.msra.gmra.mxu1 %vm2810_vm2, %v2773_v23 }
 0x4bf   :  { %v2823_v63 = vpop.f32.mrf.mxu1 }
 0x4c0   :  { %v2824_v29 = vadd.f32 %v3740_v17, %v2823_v63 }
 0x4c2   :  { %2828 = vst [vmem:[%s6035_s9] sm:$0xff] %v2824_v29 }
 0x4c7   :  { %v2825_v20 = vpop.f32.mrf.mxu1 }
 0x4c8   :  { %v2826_v42 = vadd.f32 %v3740_v17, %v2825_v20 }
 0x4ca   :  { %2829 = vst [vmem:[%s6035_s9 + $0x8] sm:$0xff] %v2826_v42 }

</bundles_post_ra>
